<compile_context>
chip_gen: v7x
topology: tpu7x:2x2x1
jax: 0.10.0
libtpu: 0.0.40
codegen_flags: <defaults>
</compile_context>

<pallas_src>
import functools

import jax
import jax.numpy as jnp
from jax import lax
from jax.experimental import pallas as pl
from jax.experimental.pallas import tpu as pltpu


# ---------------------------------------------------------------------------
# One-time weight preparation: kw-Toeplitz conv matrices (plain JAX, tiny)
# ---------------------------------------------------------------------------
def _conv1_toeplitz(w1, w_in, j_out):
    """PyTorch conv1 weight (O,C,KH,KW) -> (KH, W_in*C, 2*J*O).

    T[kh, wi*C + c, p*J*O + j*O + o] = w1[o, c, kh, wi - (2j + p)] (0 outside kernel),
    so a row of the (H, W*C)-layout input dotted with T[kh] yields conv1 outputs for
    both output-column parities p side by side; the 2x2 max-pool then only needs
    elementwise maxima.
    """
    O, C, KH, KW = w1.shape
    wi = jnp.arange(w_in)[:, None, None]                   # (Wi, 1, 1)
    j = jnp.arange(j_out)[None, :, None]                   # (1,  J, 1)
    p = jnp.arange(2)[None, None, :]                       # (1,  1, 2)
    kw = wi - (2 * j + p)                                  # (Wi, J, 2)
    valid = (kw >= 0) & (kw < KW)
    wt = jnp.transpose(w1, (2, 3, 1, 0))                   # (KH, KW, C, O)
    g = wt[:, jnp.clip(kw, 0, KW - 1), :, :]               # (KH, Wi, J, 2, C, O)
    g = jnp.where(valid[None, :, :, :, None, None], g, 0.0)
    g = jnp.transpose(g, (0, 1, 4, 3, 2, 5))               # (KH, Wi, C, 2, J, O)
    return g.reshape(KH, w_in * C, 2 * j_out * O)


def _conv2_toeplitz(w2, j_in, w_out):
    """PyTorch conv2 weight (O,C,KH,KW) -> (KH, J_in*C, W_out*O).

    T[kh, j*C + c, w*O + o] = w2[o, c, kh, j - w] (0 outside kernel).
    """
    O, C, KH, KW = w2.shape
    j = jnp.arange(j_in)[:, None]                          # (J, 1)
    w = jnp.arange(w_out)[None, :]                         # (1, W)
    kw = j - w                                             # (J, W)
    valid = (kw >= 0) & (kw < KW)
    wt = jnp.transpose(w2, (2, 3, 1, 0))                   # (KH, KW, C, O)
    g = wt[:, jnp.clip(kw, 0, KW - 1), :, :]               # (KH, J, W, C, O)
    g = jnp.where(valid[None, :, :, None, None], g, 0.0)
    g = jnp.transpose(g, (0, 1, 3, 2, 4))                  # (KH, J, C, W, O)
    return g.reshape(KH, j_in * C, w_out * O)


def prepare_params(params, h_in, w_in):
    """One-time conversion of PyTorch-layout params into the fused-kernel format."""
    c1, c_in, k1, _ = params["w1"].shape                   # (32, 3, 3, 3)
    c2, _, k2, _ = params["w2"].shape                      # (64, 32, 5, 5)
    n_hid = params["w3"].shape[0]                          # 32
    h1, w1s = h_in - (k1 - 1), w_in - (k1 - 1)             # conv1 output
    assert h1 % 2 == 0 and w1s % 2 == 0                    # MaxPool2d(2,2) exact
    hp1, wp1 = h1 // 2, w1s // 2                           # after pool1
    h2, w2s = hp1 - (k2 - 1), wp1 - (k2 - 1)               # conv2 output
    # Pool2 + AdaptiveMaxPool((1,1)) == global max only when pool2 drops nothing.
    assert h2 % 2 == 0 and w2s % 2 == 0
    assert w2s & (w2s - 1) == 0                            # power of 2 (halving max tree)

    wc = w_in * c_in                                       # input lanes (78)
    wcp = -(-wc // 128) * 128                              # zero-padded to 128 multiple
    he = h_in // 2                                         # rows per input-row parity

    dims = dict(c_in=c_in, c1=c1, c2=c2, k1=k1, k2=k2, h_in=h_in, w_in=w_in,
                he=he, wc=wc, wcp=wcp, hp1=hp1, wp1=wp1, h2=h2, w2=w2s, n_hid=n_hid)

    w1t = _conv1_toeplitz(params["w1"], w_in, wp1)                           # (3, 78, 768)
    w1t = jnp.pad(w1t, ((0, 0), (0, wcp - wc), (0, 0)))                      # K -> 128 lanes
    prepped = dict(
        w1t=w1t.astype(jnp.bfloat16),                                        # (3, 128, 768)
        b1t=jnp.tile(params["b1"], wp1).reshape(1, wp1 * c1).astype(jnp.float32),
        w2t=_conv2_toeplitz(params["w2"], wp1, w2s).astype(jnp.bfloat16),    # (5, 384, 512)
        b2=params["b2"].reshape(1, c2).astype(jnp.float32),
        w3=params["w3"].T.astype(jnp.float32),                               # (64, 32)
        b3=params["b3"].reshape(1, n_hid).astype(jnp.float32),
        w4=params["w4"].reshape(1, n_hid).astype(jnp.float32),               # (1, 32)
        b4=params["b4"].reshape(1, 1).astype(jnp.float32),
    )
    return prepped, dims


# ---------------------------------------------------------------------------
# The single fused Pallas kernel (TB batch elements per grid step)
# ---------------------------------------------------------------------------
def _make_fused_kernel(dims, tb):
    c1, c2 = dims["c1"], dims["c2"]
    k1, k2 = dims["k1"], dims["k2"]
    he, hp1, wp1 = dims["he"], dims["hp1"], dims["wp1"]
    h2, w2 = dims["h2"], dims["w2"]
    wpool = wp1 * c1                                        # 384

    def kernel(x_ref, w1t_ref, b1t_ref, w2t_ref, b2_ref,
               w3_ref, b3_ref, w4_ref, b4_ref, out_ref):
        # x_ref block: (1, 2*he*tb, wcp) bf16.  Row index = (parity*he + q)*tb + b,
        # i.e. input row 2q+parity of example b.  Every conv slice below is a
        # contiguous static row range -> no reshapes, no per-slice casts.

        # ---------- Conv1 (3x3) + MaxPool2d(2,2), fused; TB examples stacked in M ----
        row_phase = []
        for a in range(2):                                  # conv1-output row parity
            acc = None
            for kh in range(k1):
                t = a + kh                                  # conv1 input row = 2*i + t
                r0 = ((t % 2) * he + t // 2) * tb
                lhs = x_ref[0, r0:r0 + hp1 * tb, :]         # (hp1*tb, wcp) bf16
                term = jnp.dot(lhs, w1t_ref[kh],
                               preferred_element_type=jnp.float32)
                acc = term if acc is None else acc + term   # (hp1*tb, 2*wp1*c1)
            row_phase.append(jnp.maximum(acc[:, :wpool], acc[:, wpool:]))   # W-pool
        # H-pool + conv1 bias (per-channel bias commutes with the max); cast once.
        p1 = jnp.maximum(row_phase[0], row_phase[1]) + b1t_ref[...]
        p1b = p1.astype(jnp.bfloat16)                       # (hp1*tb, wp1*c1)

        # ---------- Conv2 (5x5): kw-Toeplitz dot per kh; rows stay (row, example) ----
        acc2 = None
        for kh in range(k2):
            lhs = p1b[kh * tb:(kh + h2) * tb, :]            # contiguous (h2*tb, 384)
            term = jnp.dot(lhs, w2t_ref[kh],
                           preferred_element_type=jnp.float32)
            acc2 = term if acc2 is None else acc2 + term    # (h2*tb, w2*c2)

        # ---------- MaxPool2d(2,2) + AdaptiveMaxPool2d((1,1)) == global spatial max ----
        # (Dropout2d(p=0.1) is identity in eval mode.)
        m = acc2
        width = w2 * c2
        while width > c2:                                   # lane-halving: max over W
            width //= 2
            m = jnp.maximum(m[:, :width], m[:, width:])     # -> (h2*tb, c2)
        feat = m[0:tb, :]
        for r in range(1, h2):                              # max over H rows, per example
            feat = jnp.maximum(feat, m[r * tb:(r + 1) * tb, :])
        feat = feat + b2_ref[...]                           # (tb, c2) f32

        # ---------- Linear(64,32) + ReLU + Linear(32,1) + Sigmoid ----------
        h = jnp.dot(feat, w3_ref[...], preferred_element_type=jnp.float32) + b3_ref[...]
        h = jnp.maximum(h, 0.0)                             # (tb, 32)
        z = jnp.sum(h * w4_ref[...], axis=1, keepdims=True) + b4_ref[...]   # (tb, 1)
        out_ref[...] = 1.0 / (1.0 + jnp.exp(-z))            # exact sigmoid

    return kernel


def _full_block_spec(arr):
    nd = arr.ndim
    return pl.BlockSpec(arr.shape, lambda g: (0,) * nd)     # VMEM-resident across grid steps


def net_forward(x_nchw, prepped, dims, tb_target=32):
    """tb_target: 32 saturates the 256-row MXU on v6e/v7x; use 16 on v5e."""
    B, c_in, h_in, w_in = x_nchw.shape
    assert (c_in, h_in, w_in) == (dims["c_in"], dims["h_in"], dims["w_in"])
    wc, wcp, he = dims["wc"], dims["wcp"], dims["he"]

    tb = B if B < tb_target else tb_target                  # batch tile (MXU M-stacking)
    ng = -(-B // tb)                                        # grid length; >=2 for B>=2*tb
    bp = ng * tb

    # Layout glue (wrapper-side, tiny): NCHW -> rows = (parity, half-row, example),
    # lanes = W*C zero-padded to a 128 multiple, pre-cast to bf16.
    x2d = jnp.transpose(x_nchw, (0, 2, 3, 1)).reshape(B, h_in, wc)
    if bp > B:                                              # pad batch to a tile multiple
        x2d = jnp.concatenate([x2d, jnp.zeros((bp - B, h_in, wc), x2d.dtype)], axis=0)
    x2d = jnp.pad(x2d, ((0, 0), (0, 0), (0, wcp - wc)))
    xpar = jnp.concatenate([x2d[:, 0::2, :], x2d[:, 1::2, :]], axis=1)   # (bp, 2*he, wcp)
    xb = (xpar.reshape(ng, tb, 2 * he, wcp)
               .transpose(0, 2, 1, 3)
               .reshape(ng, 2 * he * tb, wcp)
               .astype(jnp.bfloat16))

    weights = [prepped[k] for k in ("w1t", "b1t", "w2t", "b2", "w3", "b3", "w4", "b4")]

    out = pl.pallas_call(
        _make_fused_kernel(dims, tb),
        out_shape=jax.ShapeDtypeStruct((bp, 1), jnp.float32),
        grid=(ng,),
        in_specs=[pl.BlockSpec((1, 2 * he * tb, wcp), lambda g: (g, 0, 0))]
                 + [_full_block_spec(a) for a in weights],
        out_specs=pl.BlockSpec((tb, 1), lambda g: (g, 0)),
        compiler_params=pltpu.CompilerParams(
            dimension_semantics=("parallel",),   # megacore: batch-tile groups split across TCs
            vmem_limit_bytes=32 * 1024 * 1024,
        ),
    )(xb, *weights)
    return out[:B]


# ---------------------------------------------------------------------------
# Deterministic parameter init (PyTorch layouts) + plain-JAX reference
# ---------------------------------------------------------------------------
def init_params(key):
    ks = jax.random.split(key, 8)
    return {
        "w1": jax.random.normal(ks[0], (32, 3, 3, 3), jnp.float32) * 0.10,   # Conv2d (O,C,kh,kw)
        "b1": jax.random.normal(ks[1], (32,), jnp.float32) * 0.10,
        "w2": jax.random.normal(ks[2], (64, 32, 5, 5), jnp.float32) * 0.05,
        "b2": jax.random.normal(ks[3], (64,), jnp.float32) * 0.05,
        "w3": jax.random.normal(ks[4], (32, 64), jnp.float32) * 0.10,        # Linear (out,in)
        "b3": jax.random.normal(ks[5], (32,), jnp.float32) * 0.10,
        "w4": jax.random.normal(ks[6], (1, 32), jnp.float32) * 0.10,
        "b4": jax.random.normal(ks[7], (1,), jnp.float32) * 0.10,
    }


def reference_forward(x_nchw, params):
    """Plain-JAX/XLA reference of Net_ModuleList.forward (eval mode)."""
    x = jnp.transpose(x_nchw, (0, 2, 3, 1))
    dn = ("NHWC", "HWIO", "NHWC")
    y = lax.conv_general_dilated(x, jnp.transpose(params["w1"], (2, 3, 1, 0)),
                                 (1, 1), "VALID", dimension_numbers=dn) + params["b1"]
    y = lax.reduce_window(y, -jnp.inf, lax.max, (1, 2, 2, 1), (1, 2, 2, 1), "VALID")
    y = lax.conv_general_dilated(y, jnp.transpose(params["w2"], (2, 3, 1, 0)),
                                 (1, 1), "VALID", dimension_numbers=dn) + params["b2"]
    y = lax.reduce_window(y, -jnp.inf, lax.max, (1, 2, 2, 1), (1, 2, 2, 1), "VALID")
    feat = jnp.max(y, axis=(1, 2))                          # AdaptiveMaxPool2d((1,1)) + Flatten
    h = jax.nn.relu(feat @ params["w3"].T + params["b3"])
    z = h @ params["w4"].T + params["b4"]
    return jax.nn.sigmoid(z)


if __name__ == "__main__":
    key = jax.random.PRNGKey(0)
    pkey, xkey = jax.random.split(key)
    params = init_params(pkey)
    # NCHW input (PyTorch-style): 26x26 -> conv3: 24 -> pool: 12 -> conv5: 8 -> pool: 4.
    x = jax.random.normal(xkey, (2, 3, 26, 26), jnp.float32)

    prepped, dims = prepare_params(params, x.shape[2], x.shape[3])
    fwd = jax.jit(functools.partial(net_forward, dims=dims, tb_target=32))
    out = fwd(x, prepped)
    jax.block_until_ready(out)
    assert out.shape == (2, 1)

    ref = reference_forward(x, params)
    assert jnp.allclose(out, ref, atol=5e-2), (out, ref)    # bf16-MXU vs f32 reference
    print("KERNEL_OK")
</pallas_src>

<mosaic_0001>
module attributes {stable_mosaic.version = 11 : i64} {
  func.func @kernel(%arg0: i32, %arg1: memref<1x52x128xbf16, #tpu.memory_space<vmem>>, %arg2: memref<3x128x768xbf16, #tpu.memory_space<vmem>>, %arg3: memref<1x384xf32, #tpu.memory_space<vmem>>, %arg4: memref<5x384x512xbf16, #tpu.memory_space<vmem>>, %arg5: memref<1x64xf32, #tpu.memory_space<vmem>>, %arg6: memref<64x32xf32, #tpu.memory_space<vmem>>, %arg7: memref<1x32xf32, #tpu.memory_space<vmem>>, %arg8: memref<1x32xf32, #tpu.memory_space<vmem>>, %arg9: memref<1x1xf32, #tpu.memory_space<vmem>>, %arg10: memref<2x1xf32, #tpu.memory_space<vmem>>) attributes {dimension_semantics = [#tpu.dimension_semantics<parallel>], iteration_bounds = array<i64: 1>, scalar_prefetch = 0 : i64, scratch_operands = 0 : i64, tpu.core_type = #tpu.core_type<tc>, window_params = [{transform_indices = @transform_0, window_bounds = array<i64: 1, 52, 128>}, {pipeline_mode = #tpu.pipeline_mode<synchronous>, transform_indices = @transform_1, window_bounds = array<i64: 3, 128, 768>}, {pipeline_mode = #tpu.pipeline_mode<synchronous>, transform_indices = @transform_2, window_bounds = array<i64: 1, 384>}, {pipeline_mode = #tpu.pipeline_mode<synchronous>, transform_indices = @transform_3, window_bounds = array<i64: 5, 384, 512>}, {pipeline_mode = #tpu.pipeline_mode<synchronous>, transform_indices = @transform_4, window_bounds = array<i64: 1, 64>}, {pipeline_mode = #tpu.pipeline_mode<synchronous>, transform_indices = @transform_5, window_bounds = array<i64: 64, 32>}, {pipeline_mode = #tpu.pipeline_mode<synchronous>, transform_indices = @transform_6, window_bounds = array<i64: 1, 32>}, {pipeline_mode = #tpu.pipeline_mode<synchronous>, transform_indices = @transform_7, window_bounds = array<i64: 1, 32>}, {pipeline_mode = #tpu.pipeline_mode<synchronous>, transform_indices = @transform_8, window_bounds = array<i64: 1, 1>}, {transform_indices = @transform_9, window_bounds = array<i64: 2, 1>}]} {
    %c0 = arith.constant 0 : index
    %c0_0 = arith.constant 0 : index
    %c0_1 = arith.constant 0 : index
    %0 = vector.load %arg1[%c0, %c0_0, %c0_1] : memref<1x52x128xbf16, #tpu.memory_space<vmem>>, vector<1x24x128xbf16>
    %1 = vector.shape_cast %0 : vector<1x24x128xbf16> to vector<24x128xbf16>
    %c0_2 = arith.constant 0 : index
    %c0_3 = arith.constant 0 : index
    %c0_4 = arith.constant 0 : index
    %2 = vector.load %arg2[%c0_2, %c0_3, %c0_4] : memref<3x128x768xbf16, #tpu.memory_space<vmem>>, vector<1x128x768xbf16>
    %3 = vector.shape_cast %2 : vector<1x128x768xbf16> to vector<128x768xbf16>
    %cst = arith.constant dense<0.000000e+00> : vector<24x768xf32>
    %4 = tpu.matmul %1, %3, %cst {dimension_numbers = #tpu.dot_dimension_numbers<[1], [0], [0], [1], [0, 0, 1, 1], [], []>} : vector<24x128xbf16>, vector<128x768xbf16>, vector<24x768xf32> -> vector<24x768xf32>
    %c0_5 = arith.constant 0 : index
    %c26 = arith.constant 26 : index
    %c0_6 = arith.constant 0 : index
    %5 = vector.load %arg1[%c0_5, %c26, %c0_6] : memref<1x52x128xbf16, #tpu.memory_space<vmem>>, vector<1x24x128xbf16>
    %6 = vector.shape_cast %5 : vector<1x24x128xbf16> to vector<24x128xbf16>
    %c1 = arith.constant 1 : index
    %c0_7 = arith.constant 0 : index
    %c0_8 = arith.constant 0 : index
    %7 = vector.load %arg2[%c1, %c0_7, %c0_8] : memref<3x128x768xbf16, #tpu.memory_space<vmem>>, vector<1x128x768xbf16>
    %8 = vector.shape_cast %7 : vector<1x128x768xbf16> to vector<128x768xbf16>
    %cst_9 = arith.constant dense<0.000000e+00> : vector<24x768xf32>
    %9 = tpu.matmul %6, %8, %cst_9 {dimension_numbers = #tpu.dot_dimension_numbers<[1], [0], [0], [1], [0, 0, 1, 1], [], []>} : vector<24x128xbf16>, vector<128x768xbf16>, vector<24x768xf32> -> vector<24x768xf32>
    %10 = arith.addf %4, %9 : vector<24x768xf32>
    %c0_10 = arith.constant 0 : index
    %c2 = arith.constant 2 : index
    %c0_11 = arith.constant 0 : index
    %11 = vector.load %arg1[%c0_10, %c2, %c0_11] : memref<1x52x128xbf16, #tpu.memory_space<vmem>>, vector<1x24x128xbf16>
    %12 = vector.shape_cast %11 : vector<1x24x128xbf16> to vector<24x128xbf16>
    %c2_12 = arith.constant 2 : index
    %c0_13 = arith.constant 0 : index
    %c0_14 = arith.constant 0 : index
    %13 = vector.load %arg2[%c2_12, %c0_13, %c0_14] : memref<3x128x768xbf16, #tpu.memory_space<vmem>>, vector<1x128x768xbf16>
    %14 = vector.shape_cast %13 : vector<1x128x768xbf16> to vector<128x768xbf16>
    %cst_15 = arith.constant dense<0.000000e+00> : vector<24x768xf32>
    %15 = tpu.matmul %12, %14, %cst_15 {dimension_numbers = #tpu.dot_dimension_numbers<[1], [0], [0], [1], [0, 0, 1, 1], [], []>} : vector<24x128xbf16>, vector<128x768xbf16>, vector<24x768xf32> -> vector<24x768xf32>
    %16 = arith.addf %10, %15 : vector<24x768xf32>
    %17 = vector.extract_strided_slice %16 {offsets = [0, 0], sizes = [24, 384], strides = [1, 1]} : vector<24x768xf32> to vector<24x384xf32>
    %18 = vector.extract_strided_slice %16 {offsets = [0, 384], sizes = [24, 384], strides = [1, 1]} : vector<24x768xf32> to vector<24x384xf32>
    %19 = arith.maximumf %17, %18 : vector<24x384xf32>
    %c0_16 = arith.constant 0 : index
    %c26_17 = arith.constant 26 : index
    %c0_18 = arith.constant 0 : index
    %20 = vector.load %arg1[%c0_16, %c26_17, %c0_18] : memref<1x52x128xbf16, #tpu.memory_space<vmem>>, vector<1x24x128xbf16>
    %21 = vector.shape_cast %20 : vector<1x24x128xbf16> to vector<24x128xbf16>
    %c0_19 = arith.constant 0 : index
    %c0_20 = arith.constant 0 : index
    %c0_21 = arith.constant 0 : index
    %22 = vector.load %arg2[%c0_19, %c0_20, %c0_21] : memref<3x128x768xbf16, #tpu.memory_space<vmem>>, vector<1x128x768xbf16>
    %23 = vector.shape_cast %22 : vector<1x128x768xbf16> to vector<128x768xbf16>
    %cst_22 = arith.constant dense<0.000000e+00> : vector<24x768xf32>
    %24 = tpu.matmul %21, %23, %cst_22 {dimension_numbers = #tpu.dot_dimension_numbers<[1], [0], [0], [1], [0, 0, 1, 1], [], []>} : vector<24x128xbf16>, vector<128x768xbf16>, vector<24x768xf32> -> vector<24x768xf32>
    %c0_23 = arith.constant 0 : index
    %c2_24 = arith.constant 2 : index
    %c0_25 = arith.constant 0 : index
    %25 = vector.load %arg1[%c0_23, %c2_24, %c0_25] : memref<1x52x128xbf16, #tpu.memory_space<vmem>>, vector<1x24x128xbf16>
    %26 = vector.shape_cast %25 : vector<1x24x128xbf16> to vector<24x128xbf16>
    %c1_26 = arith.constant 1 : index
    %c0_27 = arith.constant 0 : index
    %c0_28 = arith.constant 0 : index
    %27 = vector.load %arg2[%c1_26, %c0_27, %c0_28] : memref<3x128x768xbf16, #tpu.memory_space<vmem>>, vector<1x128x768xbf16>
    %28 = vector.shape_cast %27 : vector<1x128x768xbf16> to vector<128x768xbf16>
    %cst_29 = arith.constant dense<0.000000e+00> : vector<24x768xf32>
    %29 = tpu.matmul %26, %28, %cst_29 {dimension_numbers = #tpu.dot_dimension_numbers<[1], [0], [0], [1], [0, 0, 1, 1], [], []>} : vector<24x128xbf16>, vector<128x768xbf16>, vector<24x768xf32> -> vector<24x768xf32>
    %30 = arith.addf %24, %29 : vector<24x768xf32>
    %c0_30 = arith.constant 0 : index
    %c28 = arith.constant 28 : index
    %c0_31 = arith.constant 0 : index
    %31 = vector.load %arg1[%c0_30, %c28, %c0_31] : memref<1x52x128xbf16, #tpu.memory_space<vmem>>, vector<1x24x128xbf16>
    %32 = vector.shape_cast %31 : vector<1x24x128xbf16> to vector<24x128xbf16>
    %c2_32 = arith.constant 2 : index
    %c0_33 = arith.constant 0 : index
    %c0_34 = arith.constant 0 : index
    %33 = vector.load %arg2[%c2_32, %c0_33, %c0_34] : memref<3x128x768xbf16, #tpu.memory_space<vmem>>, vector<1x128x768xbf16>
    %34 = vector.shape_cast %33 : vector<1x128x768xbf16> to vector<128x768xbf16>
    %cst_35 = arith.constant dense<0.000000e+00> : vector<24x768xf32>
    %35 = tpu.matmul %32, %34, %cst_35 {dimension_numbers = #tpu.dot_dimension_numbers<[1], [0], [0], [1], [0, 0, 1, 1], [], []>} : vector<24x128xbf16>, vector<128x768xbf16>, vector<24x768xf32> -> vector<24x768xf32>
    %36 = arith.addf %30, %35 : vector<24x768xf32>
    %37 = vector.extract_strided_slice %36 {offsets = [0, 0], sizes = [24, 384], strides = [1, 1]} : vector<24x768xf32> to vector<24x384xf32>
    %38 = vector.extract_strided_slice %36 {offsets = [0, 384], sizes = [24, 384], strides = [1, 1]} : vector<24x768xf32> to vector<24x384xf32>
    %39 = arith.maximumf %37, %38 : vector<24x384xf32>
    %40 = arith.maximumf %19, %39 : vector<24x384xf32>
    %c0_36 = arith.constant 0 : index
    %c0_37 = arith.constant 0 : index
    %41 = vector.load %arg3[%c0_36, %c0_37] : memref<1x384xf32, #tpu.memory_space<vmem>>, vector<1x384xf32>
    %42 = vector.broadcast %41 : vector<1x384xf32> to vector<24x384xf32>
    %43 = arith.addf %40, %42 : vector<24x384xf32>
    %44 = arith.truncf %43 : vector<24x384xf32> to vector<24x384xbf16>
    %45 = vector.extract_strided_slice %44 {offsets = [0, 0], sizes = [16, 384], strides = [1, 1]} : vector<24x384xbf16> to vector<16x384xbf16>
    %c0_38 = arith.constant 0 : index
    %c0_39 = arith.constant 0 : index
    %c0_40 = arith.constant 0 : index
    %46 = vector.load %arg4[%c0_38, %c0_39, %c0_40] : memref<5x384x512xbf16, #tpu.memory_space<vmem>>, vector<1x384x512xbf16>
    %47 = vector.shape_cast %46 : vector<1x384x512xbf16> to vector<384x512xbf16>
    %cst_41 = arith.constant dense<0.000000e+00> : vector<16x512xf32>
    %48 = tpu.matmul %45, %47, %cst_41 {dimension_numbers = #tpu.dot_dimension_numbers<[1], [0], [0], [1], [0, 0, 1, 1], [], []>} : vector<16x384xbf16>, vector<384x512xbf16>, vector<16x512xf32> -> vector<16x512xf32>
    %49 = vector.extract_strided_slice %44 {offsets = [2, 0], sizes = [16, 384], strides = [1, 1]} : vector<24x384xbf16> to vector<16x384xbf16>
    %c1_42 = arith.constant 1 : index
    %c0_43 = arith.constant 0 : index
    %c0_44 = arith.constant 0 : index
    %50 = vector.load %arg4[%c1_42, %c0_43, %c0_44] : memref<5x384x512xbf16, #tpu.memory_space<vmem>>, vector<1x384x512xbf16>
    %51 = vector.shape_cast %50 : vector<1x384x512xbf16> to vector<384x512xbf16>
    %cst_45 = arith.constant dense<0.000000e+00> : vector<16x512xf32>
    %52 = tpu.matmul %49, %51, %cst_45 {dimension_numbers = #tpu.dot_dimension_numbers<[1], [0], [0], [1], [0, 0, 1, 1], [], []>} : vector<16x384xbf16>, vector<384x512xbf16>, vector<16x512xf32> -> vector<16x512xf32>
    %53 = arith.addf %48, %52 : vector<16x512xf32>
    %54 = vector.extract_strided_slice %44 {offsets = [4, 0], sizes = [16, 384], strides = [1, 1]} : vector<24x384xbf16> to vector<16x384xbf16>
    %c2_46 = arith.constant 2 : index
    %c0_47 = arith.constant 0 : index
    %c0_48 = arith.constant 0 : index
    %55 = vector.load %arg4[%c2_46, %c0_47, %c0_48] : memref<5x384x512xbf16, #tpu.memory_space<vmem>>, vector<1x384x512xbf16>
    %56 = vector.shape_cast %55 : vector<1x384x512xbf16> to vector<384x512xbf16>
    %cst_49 = arith.constant dense<0.000000e+00> : vector<16x512xf32>
    %57 = tpu.matmul %54, %56, %cst_49 {dimension_numbers = #tpu.dot_dimension_numbers<[1], [0], [0], [1], [0, 0, 1, 1], [], []>} : vector<16x384xbf16>, vector<384x512xbf16>, vector<16x512xf32> -> vector<16x512xf32>
    %58 = arith.addf %53, %57 : vector<16x512xf32>
    %59 = vector.extract_strided_slice %44 {offsets = [6, 0], sizes = [16, 384], strides = [1, 1]} : vector<24x384xbf16> to vector<16x384xbf16>
    %c3 = arith.constant 3 : index
    %c0_50 = arith.constant 0 : index
    %c0_51 = arith.constant 0 : index
    %60 = vector.load %arg4[%c3, %c0_50, %c0_51] : memref<5x384x512xbf16, #tpu.memory_space<vmem>>, vector<1x384x512xbf16>
    %61 = vector.shape_cast %60 : vector<1x384x512xbf16> to vector<384x512xbf16>
    %cst_52 = arith.constant dense<0.000000e+00> : vector<16x512xf32>
    %62 = tpu.matmul %59, %61, %cst_52 {dimension_numbers = #tpu.dot_dimension_numbers<[1], [0], [0], [1], [0, 0, 1, 1], [], []>} : vector<16x384xbf16>, vector<384x512xbf16>, vector<16x512xf32> -> vector<16x512xf32>
    %63 = arith.addf %58, %62 : vector<16x512xf32>
    %64 = vector.extract_strided_slice %44 {offsets = [8, 0], sizes = [16, 384], strides = [1, 1]} : vector<24x384xbf16> to vector<16x384xbf16>
    %c4 = arith.constant 4 : index
    %c0_53 = arith.constant 0 : index
    %c0_54 = arith.constant 0 : index
    %65 = vector.load %arg4[%c4, %c0_53, %c0_54] : memref<5x384x512xbf16, #tpu.memory_space<vmem>>, vector<1x384x512xbf16>
    %66 = vector.shape_cast %65 : vector<1x384x512xbf16> to vector<384x512xbf16>
    %cst_55 = arith.constant dense<0.000000e+00> : vector<16x512xf32>
    %67 = tpu.matmul %64, %66, %cst_55 {dimension_numbers = #tpu.dot_dimension_numbers<[1], [0], [0], [1], [0, 0, 1, 1], [], []>} : vector<16x384xbf16>, vector<384x512xbf16>, vector<16x512xf32> -> vector<16x512xf32>
    %68 = arith.addf %63, %67 : vector<16x512xf32>
    %69 = vector.extract_strided_slice %68 {offsets = [0, 0], sizes = [16, 256], strides = [1, 1]} : vector<16x512xf32> to vector<16x256xf32>
    %70 = vector.extract_strided_slice %68 {offsets = [0, 256], sizes = [16, 256], strides = [1, 1]} : vector<16x512xf32> to vector<16x256xf32>
    %71 = arith.maximumf %69, %70 : vector<16x256xf32>
    %72 = vector.extract_strided_slice %71 {offsets = [0, 0], sizes = [16, 128], strides = [1, 1]} : vector<16x256xf32> to vector<16x128xf32>
    %73 = vector.extract_strided_slice %71 {offsets = [0, 128], sizes = [16, 128], strides = [1, 1]} : vector<16x256xf32> to vector<16x128xf32>
    %74 = arith.maximumf %72, %73 : vector<16x128xf32>
    %75 = vector.extract_strided_slice %74 {offsets = [0, 0], sizes = [16, 64], strides = [1, 1]} : vector<16x128xf32> to vector<16x64xf32>
    %76 = vector.extract_strided_slice %74 {offsets = [0, 64], sizes = [16, 64], strides = [1, 1]} : vector<16x128xf32> to vector<16x64xf32>
    %77 = arith.maximumf %75, %76 : vector<16x64xf32>
    %78 = vector.extract_strided_slice %77 {offsets = [0, 0], sizes = [2, 64], strides = [1, 1]} : vector<16x64xf32> to vector<2x64xf32>
    %79 = vector.extract_strided_slice %77 {offsets = [2, 0], sizes = [2, 64], strides = [1, 1]} : vector<16x64xf32> to vector<2x64xf32>
    %80 = arith.maximumf %78, %79 : vector<2x64xf32>
    %81 = vector.extract_strided_slice %77 {offsets = [4, 0], sizes = [2, 64], strides = [1, 1]} : vector<16x64xf32> to vector<2x64xf32>
    %82 = arith.maximumf %80, %81 : vector<2x64xf32>
    %83 = vector.extract_strided_slice %77 {offsets = [6, 0], sizes = [2, 64], strides = [1, 1]} : vector<16x64xf32> to vector<2x64xf32>
    %84 = arith.maximumf %82, %83 : vector<2x64xf32>
    %85 = vector.extract_strided_slice %77 {offsets = [8, 0], sizes = [2, 64], strides = [1, 1]} : vector<16x64xf32> to vector<2x64xf32>
    %86 = arith.maximumf %84, %85 : vector<2x64xf32>
    %87 = vector.extract_strided_slice %77 {offsets = [10, 0], sizes = [2, 64], strides = [1, 1]} : vector<16x64xf32> to vector<2x64xf32>
    %88 = arith.maximumf %86, %87 : vector<2x64xf32>
    %89 = vector.extract_strided_slice %77 {offsets = [12, 0], sizes = [2, 64], strides = [1, 1]} : vector<16x64xf32> to vector<2x64xf32>
    %90 = arith.maximumf %88, %89 : vector<2x64xf32>
    %91 = vector.extract_strided_slice %77 {offsets = [14, 0], sizes = [2, 64], strides = [1, 1]} : vector<16x64xf32> to vector<2x64xf32>
    %92 = arith.maximumf %90, %91 : vector<2x64xf32>
    %c0_56 = arith.constant 0 : index
    %c0_57 = arith.constant 0 : index
    %93 = vector.load %arg5[%c0_56, %c0_57] : memref<1x64xf32, #tpu.memory_space<vmem>>, vector<1x64xf32>
    %94 = vector.broadcast %93 : vector<1x64xf32> to vector<2x64xf32>
    %95 = arith.addf %92, %94 : vector<2x64xf32>
    %c0_58 = arith.constant 0 : index
    %c0_59 = arith.constant 0 : index
    %96 = vector.load %arg6[%c0_58, %c0_59] : memref<64x32xf32, #tpu.memory_space<vmem>>, vector<64x32xf32>
    %cst_60 = arith.constant dense<0.000000e+00> : vector<2x32xf32>
    %97 = tpu.matmul %95, %96, %cst_60 {dimension_numbers = #tpu.dot_dimension_numbers<[1], [0], [0], [1], [0, 0, 1, 1], [], []>} : vector<2x64xf32>, vector<64x32xf32>, vector<2x32xf32> -> vector<2x32xf32>
    %c0_61 = arith.constant 0 : index
    %c0_62 = arith.constant 0 : index
    %98 = vector.load %arg7[%c0_61, %c0_62] : memref<1x32xf32, #tpu.memory_space<vmem>>, vector<1x32xf32>
    %99 = vector.broadcast %98 : vector<1x32xf32> to vector<2x32xf32>
    %100 = arith.addf %97, %99 : vector<2x32xf32>
    %cst_63 = arith.constant 0.000000e+00 : f32
    %101 = vector.broadcast %cst_63 : f32 to vector<2x32xf32>
    %102 = arith.maximumf %100, %101 : vector<2x32xf32>
    %c0_64 = arith.constant 0 : index
    %c0_65 = arith.constant 0 : index
    %103 = vector.load %arg8[%c0_64, %c0_65] : memref<1x32xf32, #tpu.memory_space<vmem>>, vector<1x32xf32>
    %104 = vector.broadcast %103 : vector<1x32xf32> to vector<2x32xf32>
    %105 = arith.mulf %102, %104 : vector<2x32xf32>
    %cst_66 = arith.constant dense<0.000000e+00> : vector<2xf32>
    %106 = vector.multi_reduction <add>, %105, %cst_66 [1] : vector<2x32xf32> to vector<2xf32>
    %107 = vector.shape_cast %106 : vector<2xf32> to vector<2x1xf32>
    %c0_67 = arith.constant 0 : index
    %c0_68 = arith.constant 0 : index
    %108 = vector.load %arg9[%c0_67, %c0_68] : memref<1x1xf32, #tpu.memory_space<vmem>>, vector<1x1xf32>
    %109 = vector.broadcast %108 : vector<1x1xf32> to vector<2x1xf32>
    %110 = arith.addf %107, %109 : vector<2x1xf32>
    %cst_69 = arith.constant 0.000000e+00 : f32
    %111 = vector.broadcast %cst_69 : f32 to vector<2x1xf32>
    %112 = arith.subf %111, %110 : vector<2x1xf32>
    %113 = math.exp %112 : vector<2x1xf32>
    %cst_70 = arith.constant 1.000000e+00 : f32
    %114 = vector.broadcast %cst_70 : f32 to vector<2x1xf32>
    %115 = arith.addf %114, %113 : vector<2x1xf32>
    %cst_71 = arith.constant 1.000000e+00 : f32
    %116 = vector.broadcast %cst_71 : f32 to vector<2x1xf32>
    %117 = arith.divf %116, %115 : vector<2x1xf32>
    %c0_72 = arith.constant 0 : index
    %c0_73 = arith.constant 0 : index
    %118 = vector.load %arg10[%c0_72, %c0_73] : memref<2x1xf32, #tpu.memory_space<vmem>>, vector<2x1xf32>
    tpu.vector_store %arg10[%c0_72, %c0_73], %117 {strides = array<i32>} : memref<2x1xf32, #tpu.memory_space<vmem>>, vector<2x1xf32>,
    return
  }
  func.func @transform_0(%arg0: i32) -> (i32, i32, i32) {
    %c0_i32 = arith.constant 0 : i32
    %c0_i32_0 = arith.constant 0 : i32
    %c0_i32_1 = arith.constant 0 : i32
    return %arg0, %c0_i32, %c0_i32_0 : i32, i32, i32
  }
  func.func @transform_1(%arg0: i32) -> (i32, i32, i32) {
    %c0_i32 = arith.constant 0 : i32
    %c0_i32_0 = arith.constant 0 : i32
    %c0_i32_1 = arith.constant 0 : i32
    %c0_i32_2 = arith.constant 0 : i32
    return %c0_i32, %c0_i32_0, %c0_i32_1 : i32, i32, i32
  }
  func.func @transform_2(%arg0: i32) -> (i32, i32) {
    %c0_i32 = arith.constant 0 : i32
    %c0_i32_0 = arith.constant 0 : i32
    %c0_i32_1 = arith.constant 0 : i32
    return %c0_i32, %c0_i32_0 : i32, i32
  }
  func.func @transform_3(%arg0: i32) -> (i32, i32, i32) {
    %c0_i32 = arith.constant 0 : i32
    %c0_i32_0 = arith.constant 0 : i32
    %c0_i32_1 = arith.constant 0 : i32
    %c0_i32_2 = arith.constant 0 : i32
    return %c0_i32, %c0_i32_0, %c0_i32_1 : i32, i32, i32
  }
  func.func @transform_4(%arg0: i32) -> (i32, i32) {
    %c0_i32 = arith.constant 0 : i32
    %c0_i32_0 = arith.constant 0 : i32
    %c0_i32_1 = arith.constant 0 : i32
    return %c0_i32, %c0_i32_0 : i32, i32
  }
  func.func @transform_5(%arg0: i32) -> (i32, i32) {
    %c0_i32 = arith.constant 0 : i32
    %c0_i32_0 = arith.constant 0 : i32
    %c0_i32_1 = arith.constant 0 : i32
    return %c0_i32, %c0_i32_0 : i32, i32
  }
  func.func @transform_6(%arg0: i32) -> (i32, i32) {
    %c0_i32 = arith.constant 0 : i32
    %c0_i32_0 = arith.constant 0 : i32
    %c0_i32_1 = arith.constant 0 : i32
    return %c0_i32, %c0_i32_0 : i32, i32
  }
  func.func @transform_7(%arg0: i32) -> (i32, i32) {
    %c0_i32 = arith.constant 0 : i32
    %c0_i32_0 = arith.constant 0 : i32
    %c0_i32_1 = arith.constant 0 : i32
    return %c0_i32, %c0_i32_0 : i32, i32
  }
  func.func @transform_8(%arg0: i32) -> (i32, i32) {
    %c0_i32 = arith.constant 0 : i32
    %c0_i32_0 = arith.constant 0 : i32
    %c0_i32_1 = arith.constant 0 : i32
    return %c0_i32, %c0_i32_0 : i32, i32
  }
  func.func @transform_9(%arg0: i32) -> (i32, i32) {
    %c0_i32 = arith.constant 0 : i32
    %c0_i32_0 = arith.constant 0 : i32
    return %arg0, %c0_i32 : i32, i32
  }
}

</mosaic_0001>

<bundles_post_ra>
// kernel: net_forward.1
= control target key start
LH: loop header
LB: loop body
LE: loop exit
PB: predicated region body
PF: predicated region fallthrough
CT: control target
= control target key end

     0   :  { %s8836_s0 = inlined_call_operand.vmem [shape: bf16[1,52,128], index: 0, kind: input, shape index: {}]   ;;  %s8837_s1 = inlined_call_operand.hbm [shape: bf16[3,128,768], index: 1, kind: input, shape index: {}]   ;;  %s8838_s2 = inlined_call_operand.hbm [shape: f32[1,384], index: 2, kind: input, shape index: {}]   ;;  %s8839_s3 = inlined_call_operand.hbm [shape: bf16[5,384,512], index: 3, kind: input, shape index: {}]   ;;  %s8840_s4 = inlined_call_operand.hbm [shape: f32[1,64], index: 4, kind: input, shape index: {}]   ;;  %s8841_s5 = inlined_call_operand.vmem [shape: f32[64,32], index: 5, kind: input, shape index: {}]   ;;  %s8842_s6 = inlined_call_operand.hbm [shape: f32[1,32], index: 6, kind: input, shape index: {}]   ;;  %s8843_s7 = inlined_call_operand.hbm [shape: f32[1,32], index: 7, kind: input, shape index: {}]   ;;  %s8844_s8 = inlined_call_operand.<no memory space> [shape: f32[1,1], index: 8, kind: input, shape index: {}]   ;;  %s8845_s9 = inlined_call_operand.vmem [shape: f32[2,1], index: 9, kind: output, shape index: {}]  }
   0x1   :  { %v14_v0 = vstv %s8844_s8 }
   0x2   :  { %15 = vst [vmem:[#allocation2] sm:$0x1] %v14_v0 }
   0x3   :  { %16 = vsyncpa [#allocation4], 0 }
   0x4   :  { %17 = vsyncpa [#allocation6], 0 }
   0x5   :  { %18 = vsyncpa [#allocation9], 0 }
   0x6   :  { %19 = vsyncpa [#allocation12], 0  ;;  %s8106_s11 = smov [#allocation5]   ;;  %s8107_s13 = smov [#allocation8]  }
   0x7   :  { %s40_s12 = sshll.u32 %s8106_s11, 4  ;;  %s62_s14 = sshll.u32 %s8107_s13, 4  ;;  %s41_s12 = int_to_ptr.vmem [resolvable:$true] %s40_s12  ;;  %s63_s14 = int_to_ptr.vmem [resolvable:$true] %s62_s14 }
   0x8   :  { %s7966_s17 = scalar_lea.hbm %s8838_s2, 48 }
   0x9   :  { %p7967_p0 = scmp.ne.s32.totalorder %s8838_s2, %s7966_s17  ;;  %p7970_p1 = scmp.lt.u32.totalorder %s7966_s17, %s8838_s2 }
   0xb   :  { %p7972_p2 = pnand %p7970_p1, %p7967_p0 }
   0xd   :  { %7975 = shalt.err (!%p7972_p2)
}
   0xe   :  { %s7976_s21 = scalar_lea.vmem %s41_s12, 48  ;;  %s7980_s22 = scalar_lea.vmem %s41_s12, 64 }
   0xf   :  { %p7977_p3 = scmp.ne.s32.totalorder %s41_s12, %s7976_s21  ;;  %p7981_p4 = scmp.lt.s32.totalorder %s41_s12, %s41_s12 }
  0x10   :  { %p7982_p5 = scmp.lt.s32.totalorder %s7980_s22, %s7976_s21 }
  0x12   :  { %p7983_p6 = por %p7982_p5, %p7981_p4 }
  0x14   :  { %p7984_p7 = pnand %p7983_p6, %p7977_p3 }
  0x16   :  { %7987 = shalt.err (!%p7984_p7)
}
  0x17   :  { %43 = dma.hbm_to_vmem [thread:$0]  %s8838_s2, 48, %s41_s12, [#allocation6]  }
  0x18   :  { %s7988_s27 = scalar_lea.hbm %s8840_s4, 16 }
  0x19   :  { %p7989_p8 = scmp.ne.s32.totalorder %s8840_s4, %s7988_s27  ;;  %p7992_p9 = scmp.lt.u32.totalorder %s7988_s27, %s8840_s4 }
  0x1b   :  { %p7994_p10 = pnand %p7992_p9, %p7989_p8 }
  0x1d   :  { %7997 = shalt.err (!%p7994_p10)
}
  0x1e   :  { %s7998_s11 = scalar_lea.vmem %s63_s14, 16  ;;  %s8002_s13 = scalar_lea.vmem %s63_s14, 32 }
  0x1f   :  { %p7999_p11 = scmp.ne.s32.totalorder %s63_s14, %s7998_s11  ;;  %p8003_p12 = scmp.lt.s32.totalorder %s63_s14, %s63_s14 }
  0x20   :  { %p8004_p13 = scmp.lt.s32.totalorder %s8002_s13, %s7998_s11 }
  0x22   :  { %p8005_p0 = por %p8004_p13, %p8003_p12 }
  0x24   :  { %p8006_p1 = pnand %p8005_p0, %p7999_p11 }
  0x26   :  { %8009 = shalt.err (!%p8006_p1)
}
  0x27   :  { %65 = dma.hbm_to_vmem [thread:$0]  %s8840_s4, 16, %s63_s14, [#allocation9]  }
  0x28   :  { %s8108_s15 = smov [#allocation3]   ;;  %s8010_s19 = scalar_lea.hbm %s8837_s1, 18432 }
  0x29   :  { %s27_s16 = sshll.u32 %s8108_s15, 4  ;;  %p8011_p2 = scmp.ne.s32.totalorder %s8837_s1, %s8010_s19  ;;  %s28_s16 = int_to_ptr.vmem [resolvable:$true] %s27_s16 }
  0x2a   :  { %p8014_p3 = scmp.lt.u32.totalorder %s8010_s19, %s8837_s1 }
  0x2c   :  { %p8016_p4 = pnand %p8014_p3, %p8011_p2 }
  0x2e   :  { %8019 = shalt.err (!%p8016_p4)
}
  0x2f   :  { %s8020_s23 = scalar_lea.vmem %s28_s16, 18432  ;;  %p8025_p6 = scmp.lt.s32.totalorder %s28_s16, %s28_s16 }
  0x30   :  { %p8021_p5 = scmp.ne.s32.totalorder %s28_s16, %s8020_s23  ;;  %p8026_p7 = scmp.lt.s32.totalorder %s8020_s23, %s8020_s23 }
  0x32   :  { %p8027_p8 = por %p8026_p7, %p8025_p6 }
  0x34   :  { %p8028_p9 = pnand %p8027_p8, %p8021_p5 }
  0x36   :  { %8031 = shalt.err (!%p8028_p9)
}
  0x37   :  { %s8109_s4 = smov 384   ;;  %s8110_s14 = smov 24  }
  0x38   :  { %33 = dma.hbm_to_vmem [thread:$0]  %s8837_s1, 18432, %s28_s16, [#allocation4], %s8109_s4, %s8109_s4, %s8110_s14  }
  0x39   :  { %s8111_s26 = smov [#allocation7]   ;;  %s8032_s30 = scalar_lea.hbm %s8839_s3, 61440 }
  0x3a   :  { %s49_s27 = sshll.u32 %s8111_s26, 4  ;;  %p8033_p10 = scmp.ne.s32.totalorder %s8839_s3, %s8032_s30  ;;  %s50_s27 = int_to_ptr.vmem [resolvable:$true] %s49_s27 }
  0x3b   :  { %p8036_p11 = scmp.lt.u32.totalorder %s8032_s30, %s8839_s3 }
  0x3d   :  { %p8038_p12 = pnand %p8036_p11, %p8033_p10 }
  0x3f   :  { %8041 = shalt.err (!%p8038_p12)
}
  0x40   :  { %s8042_s12 = scalar_lea.vmem %s50_s27, 61440  ;;  %p8047_p0 = scmp.lt.s32.totalorder %s50_s27, %s50_s27 }
  0x41   :  { %p8043_p13 = scmp.ne.s32.totalorder %s50_s27, %s8042_s12  ;;  %p8048_p1 = scmp.lt.s32.totalorder %s8042_s12, %s8042_s12 }
  0x43   :  { %p8049_p2 = por %p8048_p1, %p8047_p0 }
  0x45   :  { %p8050_p3 = pnand %p8049_p2, %p8043_p13 }
  0x47   :  { %8053 = shalt.err (!%p8050_p3)
}
  0x48   :  { %s8112_s1 = smov 256   ;;  %s8113_s15 = smov 16  }
  0x49   :  { %55 = dma.hbm_to_vmem [thread:$0]  %s8839_s3, 61440, %s50_s27, [#allocation6], %s8112_s1, %s8112_s1, %s8113_s15  }
  0x4a   :  { %s8114_s18 = smov [#allocation10]   ;;  %s8115_s8 = smov [#allocation11]  }
  0x4b   :  { %s74_s19 = sshll.u32 %s8114_s18, 4  ;;  %s84_s20 = sshll.u32 %s8115_s8, 4  ;;  %s75_s19 = int_to_ptr.vmem [resolvable:$true] %s74_s19  ;;  %s85_s20 = int_to_ptr.vmem [resolvable:$true] %s84_s20 }
  0x4c   :  { %s8054_s23 = scalar_lea.hbm %s8842_s6, 16 }
  0x4d   :  { %p8055_p4 = scmp.ne.s32.totalorder %s8842_s6, %s8054_s23  ;;  %p8058_p5 = scmp.lt.u32.totalorder %s8054_s23, %s8842_s6 }
  0x4f   :  { %p8060_p6 = pnand %p8058_p5, %p8055_p4 }
  0x51   :  { %8063 = shalt.err (!%p8060_p6)
}
  0x52   :  { %s8064_s3 = scalar_lea.vmem %s75_s19, 16  ;;  %s8068_s26 = scalar_lea.vmem %s75_s19, 32 }
  0x53   :  { %p8065_p7 = scmp.ne.s32.totalorder %s75_s19, %s8064_s3  ;;  %p8069_p8 = scmp.lt.s32.totalorder %s75_s19, %s75_s19 }
  0x54   :  { %p8070_p9 = scmp.lt.s32.totalorder %s8068_s26, %s8064_s3 }
  0x56   :  { %p8071_p10 = por %p8070_p9, %p8069_p8 }
  0x58   :  { %p8072_p11 = pnand %p8071_p10, %p8065_p7 }
  0x5a   :  { %8075 = shalt.err (!%p8072_p11)
}
  0x5b   :  { %77 = dma.hbm_to_vmem [thread:$0]  %s8842_s6, 16, %s75_s19, [#allocation9]  }
  0x5c   :  { %s8076_s10 = scalar_lea.hbm %s8843_s7, 16 }
  0x5d   :  { %p8077_p12 = scmp.ne.s32.totalorder %s8843_s7, %s8076_s10  ;;  %p8080_p13 = scmp.lt.u32.totalorder %s8076_s10, %s8843_s7 }
  0x5f   :  { %p8082_p0 = pnand %p8080_p13, %p8077_p12 }
  0x61   :  { %8085 = shalt.err (!%p8082_p0)
}
  0x62   :  { %s8086_s1 = scalar_lea.vmem %s85_s20, 16  ;;  %s8090_s15 = scalar_lea.vmem %s85_s20, 32 }
  0x63   :  { %p8087_p1 = scmp.ne.s32.totalorder %s85_s20, %s8086_s1  ;;  %p8091_p2 = scmp.lt.s32.totalorder %s85_s20, %s85_s20 }
  0x64   :  { %p8092_p3 = scmp.lt.s32.totalorder %s8090_s15, %s8086_s1 }
  0x66   :  { %p8093_p4 = por %p8092_p3, %p8091_p2 }
  0x68   :  { %p8094_p5 = pnand %p8093_p4, %p8087_p1 }
  0x6a   :  { %8097 = shalt.err (!%p8094_p5)
}
  0x6b   :  { %87 = dma.hbm_to_vmem [thread:$0]  %s8843_s7, 16, %s85_s20, [#allocation12]  }
  0x6c   :  { %8098 = dma.done.wait [#allocation4], 18432  }
  0x6d   :  { %8099 = vsyncadd [#allocation4], 4294948864 }
  0x6e   :  { %8100 = dma.done.wait [#allocation6], 61488  }
  0x6f   :  { %8101 = vsyncadd [#allocation6], 4294905808 }
  0x70   :  { %8102 = dma.done.wait [#allocation9], 32  }
  0x71   :  { %8103 = vsyncadd [#allocation9], 4294967264 }
  0x72   :  { %8104 = dma.done.wait [#allocation12], 16  }
  0x73   :  { %8105 = vsyncadd [#allocation12], 4294967280  ;;  %v8116_v1 = vmov 0   ;;  %v8248_v2 = vld [vmem:[#allocation3 + $0x184] ss:$24 sps:$4 sm:$0xff]   ;;  %vm223_vm0 = vcmask 1046528  }
  0x74   :  { %501 = vmatprep.mubr.bf16.mxu0 %v8116_v1  ;;  %552 = vmatprep.mubr.bf16.mxu1 %v8116_v1  ;;  %v6911_v3 = vld [vmem:[#allocation3 + $0x18c] ss:$24 sps:$4 sm:$0xff]   ;;  %v8251_v4 = vld [vmem:[#allocation3 + $0x180] ss:$24 sps:$4 sm:$0xff]   ;;  %v6917_v7 = vld [vmem:[#allocation3 + $0x1bc] ss:$24 sps:$4 sm:$0xff]  }
  0x75   :  { %469 = vmatprep.subr.bf16.mxu0 %v8248_v2  ;;  %v6914_v5 = vld [vmem:[#allocation3 + $0x188] ss:$24 sps:$4 sm:$0xff]   ;;  %520 = vmatprep.subr.bf16.mxu1 %v6911_v3  ;;  %v8253_v6 = vld [vmem:[#allocation3 + $0x1b4] ss:$24 sps:$4 sm:$0xff]   ;;  %v6920_v9 = vld [vmem:[#allocation3 + $0x1b8] ss:$24 sps:$4 sm:$0xff]  }
  0x76   :  { %470 = vmatpush1.bf16.msra.mxu0 %v8251_v4  ;;  %521 = vmatpush1.bf16.msra.mxu1 %v6914_v5  ;;  %v8256_v8 = vld [vmem:[#allocation3 + $0x1b0] ss:$24 sps:$4 sm:$0xff]   ;;  %v8259_v10 = vld [vmem:[#allocation3 + $0x1e4] ss:$24 sps:$4 sm:$0xff]   ;;  %v8261_v12 = vld [vmem:[#allocation3 + $0x1e0] ss:$24 sps:$4 sm:$0xff]  }
  0x77   :  { %471 = vmatprep.subr.bf16.mxu0 %v8253_v6  ;;  %522 = vmatprep.subr.bf16.mxu1 %v6917_v7  ;;  %v6923_v11 = vld [vmem:[#allocation3 + $0x1ec] ss:$24 sps:$4 sm:$0xff]   ;;  %v6926_v13 = vld [vmem:[#allocation3 + $0x1e8] ss:$24 sps:$4 sm:$0xff]   ;;  %v6929_v15 = vld [vmem:[#allocation3 + $0x21c] ss:$24 sps:$4 sm:$0xff]  }
  0x78   :  { %v8264_v14 = vld [vmem:[#allocation3 + $0x214] ss:$24 sps:$4 sm:$0xff]   ;;  %v8267_v16 = vld [vmem:[#allocation3 + $0x210] ss:$24 sps:$4 sm:$0xff]   ;;  %v8270_v18 = vld [vmem:[#allocation3 + $0x244] ss:$24 sps:$4 sm:$0xff]  }
  0x79   :  { %v6932_v17 = vld [vmem:[#allocation3 + $0x218] ss:$24 sps:$4 sm:$0xff]   ;;  %v6935_v19 = vld [vmem:[#allocation3 + $0x24c] ss:$24 sps:$4 sm:$0xff]   ;;  %v6938_v21 = vld [vmem:[#allocation3 + $0x248] ss:$24 sps:$4 sm:$0xff]  }
  0x7a   :  { %472 = vmatpush1.bf16.msra.mxu0 %v8256_v8  ;;  %523 = vmatpush1.bf16.msra.mxu1 %v6920_v9  ;;  %v8273_v20 = vld [vmem:[#allocation3 + $0x240] ss:$24 sps:$4 sm:$0xff]   ;;  %v8276_v22 = vld [vmem:[#allocation3 + $0x274] ss:$24 sps:$4 sm:$0xff]   ;;  %v8279_v24 = vld [vmem:[#allocation3 + $0x270] ss:$24 sps:$4 sm:$0xff]  }
  0x7b   :  { %473 = vmatprep.subr.bf16.mxu0 %v8259_v10  ;;  %524 = vmatprep.subr.bf16.mxu1 %v6923_v11  ;;  %v6941_v23 = vld [vmem:[#allocation3 + $0x27c] ss:$24 sps:$4 sm:$0xff]   ;;  %v6944_v25 = vld [vmem:[#allocation3 + $0x278] ss:$24 sps:$4 sm:$0xff]   ;;  %v6947_v27 = vld [vmem:[#allocation3 + $0x2ac] ss:$24 sps:$4 sm:$0xff]  }
  0x7c   :  { %v8282_v26 = vld [vmem:[#allocation3 + $0x2a4] ss:$24 sps:$4 sm:$0xff]   ;;  %v8285_v28 = vld [vmem:[#allocation3 + $0x2a0] ss:$24 sps:$4 sm:$0xff]   ;;  %v8287_v30 = vld [vmem:[#allocation3 + $0x2d4] ss:$24 sps:$4 sm:$0xff]  }
  0x7d   :  { %v6950_v29 = vld [vmem:[#allocation3 + $0x2a8] ss:$24 sps:$4 sm:$0xff]   ;;  %v6953_v31 = vld [vmem:[#allocation3 + $0x2dc] ss:$24 sps:$4 sm:$0xff]   ;;  %v160_v32 = vld [vmem:[%s8836_s0 + $0xc] sm:$0xe] }
  0x7e   :  { %474 = vmatpush1.bf16.msra.mxu0 %v8261_v12  ;;  %525 = vmatpush1.bf16.msra.mxu1 %v6926_v13  ;;  %v161_v33 = vld [vmem:[%s8836_s0 + $0x10] sm:$0xf]  ;;  %v162_v34 = vld [vmem:[%s8836_s0 + $0x14] sm:$0xf]  ;;  %v163_v35 = vld [vmem:[%s8836_s0 + $0x18] sm:$0x1] }
  0x7f   :  { %475 = vmatprep.subr.bf16.mxu0 %v8264_v14  ;;  %526 = vmatprep.subr.bf16.mxu1 %v6929_v15  ;;  %v6049_v36 = vcombine.low %v160_v32, %v161_v33  ;;  %v6050_v37 = vcombine.low %v162_v34, %v163_v35  ;;  %v8303_v38 = vld [vmem:[#allocation3 + $0x2d0] ss:$24 sps:$4 sm:$0xff]   ;;  %v6959_v40 = vld [vmem:[#allocation3 + $0x194] ss:$24 sps:$4 sm:$0xff]   ;;  %v6967_v47 = vld [vmem:[#allocation3 + $0x1c4] ss:$24 sps:$4 sm:$0xff]  }
  0x80   :  { %v6956_v39 = vld [vmem:[#allocation3 + $0x2d8] ss:$24 sps:$4 sm:$0xff]   ;;  %v6962_v43 = vld [vmem:[#allocation3 + $0xc] ss:$24 sps:$4 sm:$0xff]   ;;  %v6960_v45 = vld [vmem:[#allocation3 + $0x8] ss:$24 sps:$4 sm:$0xff]  }
  0x81   :  { %v224_v41 = vrot.slane %v6049_v36, 1  ;;  %v8306_v42 = vrot.slane %v6050_v37, 1  ;;  %v6957_v44 = vld [vmem:[#allocation3 + $0x190] ss:$24 sps:$4 sm:$0xff]   ;;  %v6970_v48 = vld [vmem:[#allocation3 + $0x3c] ss:$24 sps:$4 sm:$0xff]  }
  0x82   :  { %476 = vmatpush1.bf16.msra.mxu0 %v8267_v16  ;;  %527 = vmatpush1.bf16.msra.mxu1 %v6932_v17  ;;  %v6965_v49 = vld [vmem:[#allocation3 + $0x1c0] ss:$24 sps:$4 sm:$0xff]   ;;  %v6973_v51 = vld [vmem:[#allocation3 + $0x1f4] ss:$24 sps:$4 sm:$0xff]   ;;  %v6971_v53 = vld [vmem:[#allocation3 + $0x1f0] ss:$24 sps:$4 sm:$0xff]  }
  0x83   :  { %477 = vmatprep.subr.bf16.mxu0 %v8270_v18  ;;  %528 = vmatprep.subr.bf16.mxu1 %v6935_v19  ;;  %v8312_v46 = vsel %vm223_vm0, %v224_v41, %v8306_v42  ;;  %v6968_v50 = vld [vmem:[#allocation3 + $0x38] ss:$24 sps:$4 sm:$0xff]   ;;  %v6976_v52 = vld [vmem:[#allocation3 + $0x6c] ss:$24 sps:$4 sm:$0xff]   ;;  %v6974_v54 = vld [vmem:[#allocation3 + $0x68] ss:$24 sps:$4 sm:$0xff]  }
  0x84   :  { %v6979_v55 = vld [vmem:[#allocation3 + $0x224] ss:$24 sps:$4 sm:$0xff]   ;;  %v6977_v57 = vld [vmem:[#allocation3 + $0x220] ss:$24 sps:$4 sm:$0xff]   ;;  %v6985_v59 = vld [vmem:[#allocation3 + $0x254] ss:$24 sps:$4 sm:$0xff]  }
  0x85   :  { %v6982_v56 = vld [vmem:[#allocation3 + $0x9c] ss:$24 sps:$4 sm:$0xff]   ;;  %v6980_v58 = vld [vmem:[#allocation3 + $0x98] ss:$24 sps:$4 sm:$0xff]   ;;  %v6988_v60 = vld [vmem:[#allocation3 + $0xcc] ss:$24 sps:$4 sm:$0xff]  }
  0x86   :  { %478 = vmatpush1.bf16.msra.mxu0 %v8273_v20  ;;  %529 = vmatpush1.bf16.msra.mxu1 %v6938_v21  ;;  %v6983_v61 = vld [vmem:[#allocation3 + $0x250] ss:$24 sps:$4 sm:$0xff]   ;;  %v6991_v63 = vld [vmem:[#allocation3 + $0x284] ss:$24 sps:$4 sm:$0xff]   ;;  %v6989_v3 = vld [vmem:[#allocation3 + $0x280] ss:$24 sps:$4 sm:$0xff]  }
  0x87   :  { %479 = vmatprep.subr.bf16.mxu0 %v8276_v22  ;;  %530 = vmatprep.subr.bf16.mxu1 %v6941_v23  ;;  %v6986_v62 = vld [vmem:[#allocation3 + $0xc8] ss:$24 sps:$4 sm:$0xff]   ;;  %v6994_v0 = vld [vmem:[#allocation3 + $0xfc] ss:$24 sps:$4 sm:$0xff]   ;;  %v6992_v5 = vld [vmem:[#allocation3 + $0xf8] ss:$24 sps:$4 sm:$0xff]  }
  0x88   :  { %v6997_v7 = vld [vmem:[#allocation3 + $0x2b4] ss:$24 sps:$4 sm:$0xff]   ;;  %v6995_v11 = vld [vmem:[#allocation3 + $0x2b0] ss:$24 sps:$4 sm:$0xff]   ;;  %v7003_v15 = vld [vmem:[#allocation3 + $0x2e4] ss:$24 sps:$4 sm:$0xff]  }
  0x89   :  { %v7000_v9 = vld [vmem:[#allocation3 + $0x12c] ss:$24 sps:$4 sm:$0xff]   ;;  %v6998_v13 = vld [vmem:[#allocation3 + $0x128] ss:$24 sps:$4 sm:$0xff]   ;;  %v7006_v17 = vld [vmem:[#allocation3 + $0x15c] ss:$24 sps:$4 sm:$0xff]  }
  0x8a   :  { %480 = vmatpush1.bf16.msra.mxu0 %v8279_v24  ;;  %531 = vmatpush1.bf16.msra.mxu1 %v6944_v25  ;;  %v7001_v19 = vld [vmem:[#allocation3 + $0x2e0] ss:$24 sps:$4 sm:$0xff]   ;;  %v7009_v23 = vld [vmem:[#allocation3 + $0x4] ss:$24 sps:$4 sm:$0xff]   ;;  %v7016_v32 = vld [vmem:[#allocation3 + $0x34] ss:$24 sps:$4 sm:$0xff]  }
  0x8b   :  { %481 = vmatprep.subr.bf16.mxu0 %v8282_v26  ;;  %532 = vmatprep.subr.bf16.mxu1 %v6947_v27  ;;  %v7004_v21 = vld [vmem:[#allocation3 + $0x158] ss:$24 sps:$4 sm:$0xff]   ;;  %v7012_v25 = vld [vmem:[#allocation3 + $0x30c] ss:$24 sps:$4 sm:$0xff]   ;;  %v7019_v33 = vld [vmem:[#allocation3 + $0x33c] ss:$24 sps:$4 sm:$0xff]  }
  0x8c   :  { %v7007_v27 = vld [vmem:[#allocation3] ss:$24 sps:$4 sm:$0xff]   ;;  %v7014_v34 = vld [vmem:[#allocation3 + $0x30] ss:$24 sps:$4 sm:$0xff]   ;;  %v7022_v36 = vld [vmem:[#allocation3 + $0x64] ss:$24 sps:$4 sm:$0xff]  }
  0x8d   :  { %v7017_v35 = vld [vmem:[#allocation3 + $0x338] ss:$24 sps:$4 sm:$0xff]   ;;  %v7025_v37 = vld [vmem:[#allocation3 + $0x36c] ss:$24 sps:$4 sm:$0xff]   ;;  %v7023_v41 = vld [vmem:[#allocation3 + $0x368] ss:$24 sps:$4 sm:$0xff]  }
  0x8e   :  { %482 = vmatpush1.bf16.msra.mxu0 %v8285_v28  ;;  %533 = vmatpush1.bf16.msra.mxu1 %v6950_v29  ;;  %v8325_v29 = vld [vmem:[%s8836_s0] sm:$0xff]   ;;  %vm1827_vm1 = vcmask 1045504   ;;  %vm4435_vm2 = vcmask 1044480   ;;  %vm5205_vm3 = vcmask 1043456   ;;  %s8118_s22 = smov 64   ;;  %vm8119_vm4 = vmmov 0  }
  0x8f   :  { %483 = vmatprep.subr.bf16.mxu0 %v8287_v30  ;;  %534 = vmatprep.subr.bf16.mxu1 %v6953_v31  ;;  %v7010_v31 = vld [vmem:[#allocation3 + $0x308] ss:$24 sps:$4 sm:$0xff]   ;;  %vm5938_vm5 = vcmask 523264   ;;  %vm6021_vm6 = vcmask 254976   ;;  %vm6039_vm7 = vcmask 1024  }
  0x92   :  { %484 = vmatpush1.bf16.msra.mxu0 %v8303_v38  ;;  %535 = vmatpush1.bf16.msra.mxu1 %v6956_v39  ;;  %v7020_v39 = vld [vmem:[#allocation3 + $0x60] ss:$24 sps:$4 sm:$0xff]  }
  0x93   :  { %571 = vmatprep.subr.bf16.mxu0 %v6959_v40  ;;  %923 = vmatprep.subr.bf16.mxu1 %v6962_v43  ;;  %v8334_v40 = vld [vmem:[%s8836_s0 + $0x8] ss:$0 sps:$4 sm:$0xff]   ;;  %v7028_v43 = vld [vmem:[#allocation3 + $0x94] ss:$24 sps:$4 sm:$0xff]  }
  0x95   :  { %502 = vmatmul.mubr.bf16.vlgmr.msra.gmra.mrb[0].mxu0 %v8312_v46  ;;  %553 = vmatmul.mubr.bf16.vlgmr.msra.gmra.mrb[0].mxu1 %v8312_v46 }
  0x96   :  { %572 = vmatpush1.bf16.msra.mxu0 %v6957_v44  ;;  %924 = vmatpush1.bf16.msra.mxu1 %v6960_v45  ;;  %v7031_v44 = vld [vmem:[#allocation3 + $0x39c] ss:$24 sps:$4 sm:$0xff]   ;;  %v7026_v45 = vld [vmem:[#allocation3 + $0x90] ss:$24 sps:$4 sm:$0xff]  }
  0x97   :  { %573 = vmatprep.subr.bf16.mxu0 %v6967_v47  ;;  %925 = vmatprep.subr.bf16.mxu1 %v6970_v48  ;;  %v7029_v47 = vld [vmem:[#allocation3 + $0x398] ss:$24 sps:$4 sm:$0xff]   ;;  %v7034_v48 = vld [vmem:[#allocation3 + $0xc4] ss:$24 sps:$4 sm:$0xff]  }
  0x98   :  { %511 = vmatprep.mubr.bf16.mxu0 %v8116_v1  ;;  %562 = vmatprep.mubr.bf16.mxu1 %v8116_v1 }
  0x9a   :  { %574 = vmatpush1.bf16.msra.mxu0 %v6965_v49  ;;  %926 = vmatpush1.bf16.msra.mxu1 %v6968_v50  ;;  %v7037_v49 = vld [vmem:[#allocation3 + $0x3cc] ss:$24 sps:$4 sm:$0xff]   ;;  %v7032_v50 = vld [vmem:[#allocation3 + $0xc0] ss:$24 sps:$4 sm:$0xff]  }
  0x9b   :  { %575 = vmatprep.subr.bf16.mxu0 %v6973_v51  ;;  %927 = vmatprep.subr.bf16.mxu1 %v6976_v52  ;;  %v7035_v51 = vld [vmem:[#allocation3 + $0x3c8] ss:$24 sps:$4 sm:$0xff]   ;;  %v7040_v52 = vld [vmem:[#allocation3 + $0xf4] ss:$24 sps:$4 sm:$0xff]  }
  0x9d   :  { %512 = vmatmul.mubr.bf16.gmra.mrb[4].mxu0 %v8306_v42  ;;  %563 = vmatmul.mubr.bf16.gmra.mrb[4].mxu1 %v8306_v42 }
  0x9e   :  { %576 = vmatpush1.bf16.msra.mxu0 %v6971_v53  ;;  %928 = vmatpush1.bf16.msra.mxu1 %v6974_v54  ;;  %v7043_v53 = vld [vmem:[#allocation3 + $0x3fc] ss:$24 sps:$4 sm:$0xff]   ;;  %v7038_v54 = vld [vmem:[#allocation3 + $0xf0] ss:$24 sps:$4 sm:$0xff]  }
  0x9f   :  { %577 = vmatprep.subr.bf16.mxu0 %v6979_v55  ;;  %929 = vmatprep.subr.bf16.mxu1 %v6982_v56  ;;  %v7041_v55 = vld [vmem:[#allocation3 + $0x3f8] ss:$24 sps:$4 sm:$0xff]   ;;  %v7046_v56 = vld [vmem:[#allocation3 + $0x124] ss:$24 sps:$4 sm:$0xff]  }
  0xa0   :  { %603 = vmatprep.mubr.bf16.mxu0 %v8116_v1  ;;  %955 = vmatprep.mubr.bf16.mxu1 %v8116_v1 }
  0xa2   :  { %578 = vmatpush1.bf16.msra.mxu0 %v6977_v57  ;;  %930 = vmatpush1.bf16.msra.mxu1 %v6980_v58  ;;  %v7050_v57 = vld [vmem:[#allocation3 + $0x42c] ss:$24 sps:$4 sm:$0xff]   ;;  %v7044_v58 = vld [vmem:[#allocation3 + $0x120] ss:$24 sps:$4 sm:$0xff]  }
  0xa3   :  { %579 = vmatprep.subr.bf16.mxu0 %v6985_v59  ;;  %931 = vmatprep.subr.bf16.mxu1 %v6988_v60  ;;  %v7048_v59 = vld [vmem:[#allocation3 + $0x428] ss:$24 sps:$4 sm:$0xff]   ;;  %v7053_v60 = vld [vmem:[#allocation3 + $0x154] ss:$24 sps:$4 sm:$0xff]  }
  0xa6   :  { %580 = vmatpush1.bf16.msra.mxu0 %v6983_v61  ;;  %932 = vmatpush1.bf16.msra.mxu1 %v6986_v62  ;;  %v7060_v61 = vld [vmem:[%s8836_s0] sm:$0xfe]   ;;  %v7061_v62 = vld [vmem:[%s8836_s0 + $0x8] sm:$0x1f]  }
  0xa7   :  { %581 = vmatprep.subr.bf16.mxu0 %v6991_v63  ;;  %933 = vmatprep.subr.bf16.mxu1 %v6994_v0  ;;  %v7056_v63 = vld [vmem:[#allocation3 + $0x45c] ss:$24 sps:$4 sm:$0xff]   ;;  %v7051_v0 = vld [vmem:[#allocation3 + $0x150] ss:$24 sps:$4 sm:$0xff]  }
  0xaa   :  { %582 = vmatpush1.bf16.msra.mxu0 %v6989_v3  ;;  %934 = vmatpush1.bf16.msra.mxu1 %v6992_v5  ;;  %v7054_v3 = vld [vmem:[#allocation3 + $0x458] ss:$24 sps:$4 sm:$0xff]   ;;  %v1088_v5 = vrot.slane %v7060_v61, 1  ;;  %v8410_v61 = vld [vmem:[#allocation3 + $0x374] ss:$24 sps:$4 sm:$0xff]  }
  0xab   :  { %583 = vmatprep.subr.bf16.mxu0 %v6997_v7  ;;  %935 = vmatprep.subr.bf16.mxu1 %v7000_v9  ;;  %v8346_v7 = vrot.slane %v7061_v62, 1  ;;  %v7059_v9 = vld [vmem:[#allocation3 + $0x14] ss:$24 sps:$4 sm:$0xff]   ;;  %v7874_v62 = vld [vmem:[#allocation3 + $0x190] ss:$24 sps:$4 sm:$0xff]  }
  0xae   :  { %584 = vmatpush1.bf16.msra.mxu0 %v6995_v11  ;;  %936 = vmatpush1.bf16.msra.mxu1 %v6998_v13  ;;  %v7057_v11 = vld [vmem:[#allocation3 + $0x10] ss:$24 sps:$4 sm:$0xff]   ;;  %v8350_v13 = vsel %vm223_vm0, %v1088_v5, %v8346_v7  ;;  %v7876_v5 = vld [vmem:[#allocation3 + $0x1c0] ss:$24 sps:$4 sm:$0xff]  }
  0xaf   :  { %585 = vmatprep.subr.bf16.mxu0 %v7003_v15  ;;  %937 = vmatprep.subr.bf16.mxu1 %v7006_v17  ;;  %v7064_v15 = vld [vmem:[#allocation3 + $0x44] ss:$24 sps:$4 sm:$0xff]   ;;  %v7062_v17 = vld [vmem:[#allocation3 + $0x40] ss:$24 sps:$4 sm:$0xff]  }
  0xb2   :  { %586 = vmatpush1.bf16.msra.mxu0 %v7001_v19  ;;  %938 = vmatpush1.bf16.msra.mxu1 %v7004_v21  ;;  %v7067_v19 = vld [vmem:[#allocation3 + $0x74] ss:$24 sps:$4 sm:$0xff]   ;;  %v7065_v21 = vld [vmem:[#allocation3 + $0x70] ss:$24 sps:$4 sm:$0xff]  }
  0xb3   :  { %872 = vmatprep.subr.bf16.mxu0 %v7009_v23  ;;  %1384 = vmatprep.subr.bf16.mxu1 %v7012_v25  ;;  %v7070_v23 = vld [vmem:[#allocation3 + $0xa4] ss:$24 sps:$4 sm:$0xff]   ;;  %v7079_v25 = vld [vmem:[#allocation3 + $0x134] ss:$24 sps:$4 sm:$0xff]  }
  0xb5   :  { %604 = vmatmul.mubr.bf16.vlgmr.msra.gmra.mrb[8].mxu0 %v8312_v46  ;;  %956 = vmatmul.mubr.bf16.vlgmr.msra.gmra.mrb[0].mxu1 %v8325_v29 }
  0xb6   :  { %873 = vmatpush1.bf16.msra.mxu0 %v7007_v27  ;;  %1385 = vmatpush1.bf16.msra.mxu1 %v7010_v31  ;;  %v7085_v27 = vld [vmem:[#allocation3 + $0x304] ss:$24 sps:$4 sm:$0xff]   ;;  %v7858_v31 = vld [vmem:[#allocation3 + $0x188] ss:$24 sps:$4 sm:$0xff]  }
  0xb7   :  { %874 = vmatprep.subr.bf16.mxu0 %v7016_v32  ;;  %1386 = vmatprep.subr.bf16.mxu1 %v7019_v33  ;;  %v7860_v32 = vld [vmem:[#allocation3 + $0x1b8] ss:$24 sps:$4 sm:$0xff]  }
  0xb8   :  { %965 = vmatprep.mubr.bf16.mxu1 %v8116_v1  ;;  %613 = vmatprep.mubr.bf16.mxu0 %v8116_v1  ;;  %v7092_v33 = vld [vmem:[#allocation3 + $0x390] ss:$24 sps:$4 sm:$0xff]  }
  0xba   :  { %875 = vmatpush1.bf16.msra.mxu0 %v7014_v34  ;;  %1387 = vmatpush1.bf16.msra.mxu1 %v7017_v35  ;;  %v7097_v34 = vld [vmem:[#allocation3 + $0x3c4] ss:$24 sps:$4 sm:$0xff]   ;;  %v7862_v35 = vld [vmem:[#allocation3 + $0x1e8] ss:$24 sps:$4 sm:$0xff]  }
  0xbb   :  { %876 = vmatprep.subr.bf16.mxu0 %v7022_v36  ;;  %1388 = vmatprep.subr.bf16.mxu1 %v7025_v37  ;;  %v7863_v36 = vld [vmem:[#allocation3 + $0x21c] ss:$24 sps:$4 sm:$0xff]   ;;  %v7095_v37 = vld [vmem:[#allocation3 + $0x3c0] ss:$24 sps:$4 sm:$0xff]  }
  0xbd   :  { %966 = vmatmul.mubr.bf16.gmra.mrb[4].mxu1 %v8334_v40  ;;  %614 = vmatmul.mubr.bf16.gmra.mrb[12].mxu0 %v8306_v42 }
  0xbe   :  { %877 = vmatpush1.bf16.msra.mxu0 %v7020_v39  ;;  %1389 = vmatpush1.bf16.msra.mxu1 %v7023_v41  ;;  %v7100_v39 = vld [vmem:[#allocation3 + $0x3f4] ss:$24 sps:$4 sm:$0xff]   ;;  %v7864_v41 = vld [vmem:[#allocation3 + $0x218] ss:$24 sps:$4 sm:$0xff]  }
  0xbf   :  { %878 = vmatprep.subr.bf16.mxu0 %v7028_v43  ;;  %1390 = vmatprep.subr.bf16.mxu1 %v7031_v44  ;;  %v7865_v43 = vld [vmem:[#allocation3 + $0x24c] ss:$24 sps:$4 sm:$0xff]  }
  0xc0   :  { %1416 = vmatprep.mubr.bf16.mxu1 %v8116_v1  ;;  %904 = vmatprep.mubr.bf16.mxu0 %v8116_v1  ;;  %v8386_v44 = vld [vmem:[#allocation3 + $0x424] ss:$24 sps:$4 sm:$0xff]  }
  0xc2   :  { %879 = vmatpush1.bf16.msra.mxu0 %v7026_v45  ;;  %1391 = vmatpush1.bf16.msra.mxu1 %v7029_v47  ;;  %v7866_v45 = vld [vmem:[#allocation3 + $0x248] ss:$24 sps:$4 sm:$0xff]   ;;  %v7867_v47 = vld [vmem:[#allocation3 + $0x27c] ss:$24 sps:$4 sm:$0xff]  }
  0xc3   :  { %880 = vmatprep.subr.bf16.mxu0 %v7034_v48  ;;  %1392 = vmatprep.subr.bf16.mxu1 %v7037_v49  ;;  %v8388_v48 = vld [vmem:[#allocation3 + $0x420] ss:$24 sps:$4 sm:$0xff]   ;;  %v8390_v49 = vld [vmem:[#allocation3 + $0x454] ss:$24 sps:$4 sm:$0xff]  }
  0xc6   :  { %881 = vmatpush1.bf16.msra.mxu0 %v7032_v50  ;;  %1393 = vmatpush1.bf16.msra.mxu1 %v7035_v51  ;;  %v7868_v50 = vld [vmem:[#allocation3 + $0x278] ss:$24 sps:$4 sm:$0xff]   ;;  %v7869_v51 = vld [vmem:[#allocation3 + $0x2ac] ss:$24 sps:$4 sm:$0xff]  }
  0xc7   :  { %882 = vmatprep.subr.bf16.mxu0 %v7040_v52  ;;  %1394 = vmatprep.subr.bf16.mxu1 %v7043_v53  ;;  %v8394_v52 = vld [vmem:[#allocation3 + $0x450] ss:$24 sps:$4 sm:$0xff]   ;;  %v8396_v53 = vld [vmem:[#allocation3 + $0x314] ss:$24 sps:$4 sm:$0xff]  }
  0xca   :  { %883 = vmatpush1.bf16.msra.mxu0 %v7038_v54  ;;  %1395 = vmatpush1.bf16.msra.mxu1 %v7041_v55  ;;  %v7870_v54 = vld [vmem:[#allocation3 + $0x2a8] ss:$24 sps:$4 sm:$0xff]   ;;  %v7871_v55 = vld [vmem:[#allocation3 + $0x2dc] ss:$24 sps:$4 sm:$0xff]  }
  0xcb   :  { %884 = vmatprep.subr.bf16.mxu0 %v7046_v56  ;;  %1396 = vmatprep.subr.bf16.mxu1 %v7050_v57  ;;  %v8400_v56 = vld [vmem:[#allocation3 + $0x310] ss:$24 sps:$4 sm:$0xff]   ;;  %v8402_v57 = vld [vmem:[#allocation3 + $0x344] ss:$24 sps:$4 sm:$0xff]  }
  0xce   :  { %885 = vmatpush1.bf16.msra.mxu0 %v7044_v58  ;;  %1397 = vmatpush1.bf16.msra.mxu1 %v7048_v59  ;;  %v7872_v58 = vld [vmem:[#allocation3 + $0x2d8] ss:$24 sps:$4 sm:$0xff]   ;;  %v7873_v59 = vld [vmem:[#allocation3 + $0x194] ss:$24 sps:$4 sm:$0xff]  }
  0xcf   :  { %886 = vmatprep.subr.bf16.mxu0 %v7053_v60  ;;  %1398 = vmatprep.subr.bf16.mxu1 %v7056_v63  ;;  %v8406_v60 = vld [vmem:[#allocation3 + $0x340] ss:$24 sps:$4 sm:$0xff]   ;;  %v7875_v63 = vld [vmem:[#allocation3 + $0x1c4] ss:$24 sps:$4 sm:$0xff]  }
  0xd2   :  { %887 = vmatpush1.bf16.msra.mxu0 %v7051_v0  ;;  %1399 = vmatpush1.bf16.msra.mxu1 %v7054_v3  ;;  %v8415_v0 = vld [vmem:[#allocation3 + $0x370] ss:$24 sps:$4 sm:$0xff]   ;;  %v8418_v3 = vld [vmem:[#allocation3 + $0x3a4] ss:$24 sps:$4 sm:$0xff]  }
  0xd3   :  { %974 = vmatprep.subr.bf16.mxu0 %v7059_v9  ;;  %1513 = vmatprep.subr.bf16.mxu1 %v8248_v2  ;;  %v7068_v2 = vld [vmem:[#allocation3 + $0xa0] ss:$24 sps:$4 sm:$0xff]   ;;  %v7877_v9 = vld [vmem:[#allocation3 + $0x1f4] ss:$24 sps:$4 sm:$0xff]  }
  0xd5   :  { %1417 = vmatmul.mubr.bf16.vlgmr.msra.gmra.mrb[0].mxu1 %v8350_v13  ;;  %905 = vmatmul.mubr.bf16.vlgmr.msra.gmra.mrb[0].mxu0 %v8325_v29 }
  0xd6   :  { %975 = vmatpush1.bf16.msra.mxu0 %v7057_v11  ;;  %1514 = vmatpush1.bf16.msra.mxu1 %v8251_v4  ;;  %v7073_v4 = vld [vmem:[#allocation3 + $0xd4] ss:$24 sps:$4 sm:$0xff]   ;;  %v8422_v11 = vld [vmem:[#allocation3 + $0x3a0] ss:$24 sps:$4 sm:$0xff]  }
  0xd7   :  { %976 = vmatprep.subr.bf16.mxu0 %v7064_v15  ;;  %1515 = vmatprep.subr.bf16.mxu1 %v8253_v6  ;;  %v7071_v6 = vld [vmem:[#allocation3 + $0xd0] ss:$24 sps:$4 sm:$0xff]   ;;  %v8425_v15 = vld [vmem:[#allocation3 + $0x3d4] ss:$24 sps:$4 sm:$0xff]  }
  0xd8   :  { %1426 = vmatprep.mubr.bf16.mxu1 %v8116_v1  ;;  %914 = vmatprep.mubr.bf16.mxu0 %v8116_v1 }
  0xda   :  { %977 = vmatpush1.bf16.msra.mxu0 %v7062_v17  ;;  %1516 = vmatpush1.bf16.msra.mxu1 %v8256_v8  ;;  %v7076_v8 = vld [vmem:[#allocation3 + $0x104] ss:$24 sps:$4 sm:$0xff]   ;;  %v7878_v17 = vld [vmem:[#allocation3 + $0x1f0] ss:$24 sps:$4 sm:$0xff]  }
  0xdb   :  { %978 = vmatprep.subr.bf16.mxu0 %v7067_v19  ;;  %1517 = vmatprep.subr.bf16.mxu1 %v8259_v10  ;;  %v7074_v10 = vld [vmem:[#allocation3 + $0x100] ss:$24 sps:$4 sm:$0xff]   ;;  %v7879_v19 = vld [vmem:[#allocation3 + $0x224] ss:$24 sps:$4 sm:$0xff]  }
  0xdd   :  { %1427 = vmatmul.mubr.bf16.gmra.mrb[4].mxu1 %v8346_v7  ;;  %915 = vmatmul.mubr.bf16.gmra.mrb[4].mxu0 %v8334_v40 }
  0xde   :  { %979 = vmatpush1.bf16.msra.mxu0 %v7065_v21  ;;  %1518 = vmatpush1.bf16.msra.mxu1 %v8261_v12  ;;  %v7077_v12 = vld [vmem:[#allocation3 + $0x130] ss:$24 sps:$4 sm:$0xff]  }
  0xdf   :  { %980 = vmatprep.subr.bf16.mxu0 %v7070_v23  ;;  %1519 = vmatprep.subr.bf16.mxu1 %v8264_v14  ;;  %v7082_v14 = vld [vmem:[#allocation3 + $0x164] ss:$24 sps:$4 sm:$0xff]   ;;  %v8430_v21 = vld [vmem:[#allocation3 + $0x3d0] ss:$24 sps:$4 sm:$0xff]  }
  0xe0   :  { %1006 = vmatprep.mubr.bf16.mxu0 %v8116_v1  ;;  %1545 = vmatprep.mubr.bf16.mxu1 %v8116_v1  ;;  %v8434_v23 = vld [vmem:[#allocation3 + $0x404] ss:$24 sps:$4 sm:$0xff]  }
  0xe2   :  { %981 = vmatpush1.bf16.msra.mxu0 %v7068_v2  ;;  %1520 = vmatpush1.bf16.msra.mxu1 %v8267_v16  ;;  %v7080_v16 = vld [vmem:[#allocation3 + $0x160] ss:$24 sps:$4 sm:$0xff]  }
  0xe3   :  { %982 = vmatprep.subr.bf16.mxu0 %v7073_v4  ;;  %1521 = vmatprep.subr.bf16.mxu1 %v8270_v18  ;;  %v7083_v18 = vld [vmem:[#allocation3 + $0x300] ss:$24 sps:$4 sm:$0xff]   ;;  %v7881_v4 = vld [vmem:[#allocation3 + $0x254] ss:$24 sps:$4 sm:$0xff]  }
  0xe4   :  { %v7880_v2 = vld [vmem:[#allocation3 + $0x220] ss:$24 sps:$4 sm:$0xff]  }
  0xe6   :  { %983 = vmatpush1.bf16.msra.mxu0 %v7071_v6  ;;  %1522 = vmatpush1.bf16.msra.mxu1 %v8273_v20  ;;  %v7088_v20 = vld [vmem:[#allocation3 + $0x334] ss:$24 sps:$4 sm:$0xff]   ;;  %v8438_v6 = vld [vmem:[#allocation3 + $0x400] ss:$24 sps:$4 sm:$0xff]  }
  0xe7   :  { %984 = vmatprep.subr.bf16.mxu0 %v7076_v8  ;;  %1523 = vmatprep.subr.bf16.mxu1 %v8276_v22  ;;  %v7857_v22 = vld [vmem:[#allocation3 + $0x18c] ss:$24 sps:$4 sm:$0xff]  }
  0xe8   :  { %v8440_v8 = vld [vmem:[#allocation3 + $0x434] ss:$24 sps:$4 sm:$0xff]  }
  0xea   :  { %985 = vmatpush1.bf16.msra.mxu0 %v7074_v10  ;;  %1524 = vmatpush1.bf16.msra.mxu1 %v8279_v24  ;;  %v7086_v24 = vld [vmem:[#allocation3 + $0x330] ss:$24 sps:$4 sm:$0xff]  }
  0xeb   :  { %986 = vmatprep.subr.bf16.mxu0 %v7079_v25  ;;  %1525 = vmatprep.subr.bf16.mxu1 %v8282_v26  ;;  %v7091_v26 = vld [vmem:[#allocation3 + $0x364] ss:$24 sps:$4 sm:$0xff]   ;;  %v7882_v10 = vld [vmem:[#allocation3 + $0x250] ss:$24 sps:$4 sm:$0xff]  }
  0xec   :  { %v7883_v25 = vld [vmem:[#allocation3 + $0x284] ss:$24 sps:$4 sm:$0xff]  }
  0xee   :  { %987 = vmatpush1.bf16.msra.mxu0 %v7077_v12  ;;  %1526 = vmatpush1.bf16.msra.mxu1 %v8285_v28  ;;  %v7859_v28 = vld [vmem:[#allocation3 + $0x1bc] ss:$24 sps:$4 sm:$0xff]   ;;  %v8444_v12 = vld [vmem:[#allocation3 + $0x430] ss:$24 sps:$4 sm:$0xff]  }
  0xef   :  { %988 = vmatprep.subr.bf16.mxu0 %v7082_v14  ;;  %1527 = vmatprep.subr.bf16.mxu1 %v8287_v30  ;;  %v7089_v30 = vld [vmem:[#allocation3 + $0x360] ss:$24 sps:$4 sm:$0xff]   ;;  %v8446_v14 = vld [vmem:[#allocation3 + $0x464] ss:$24 sps:$4 sm:$0xff]  }
  0xf2   :  { %989 = vmatpush1.bf16.msra.mxu0 %v7080_v16  ;;  %1528 = vmatpush1.bf16.msra.mxu1 %v8303_v38  ;;  %v7094_v38 = vld [vmem:[#allocation3 + $0x394] ss:$24 sps:$4 sm:$0xff]   ;;  %v7884_v16 = vld [vmem:[#allocation3 + $0x280] ss:$24 sps:$4 sm:$0xff]  }
  0xf3   :  { %1333 = vmatprep.subr.bf16.mxu0 %v7085_v27  ;;  %1564 = vmatprep.subr.bf16.mxu1 %v7857_v22  ;;  %v7885_v27 = vld [vmem:[#allocation3 + $0x2b4] ss:$24 sps:$4 sm:$0xff]   ;;  %v7887_v22 = vld [vmem:[#allocation3 + $0x2e4] ss:$24 sps:$4 sm:$0xff]  }
  0xf5   :  { %1007 = vmatmul.mubr.bf16.vlgmr.msra.gmra.mrb[8].mxu0 %v8325_v29  ;;  %1546 = vmatmul.mubr.bf16.vlgmr.msra.gmra.mrb[8].mxu1 %v8350_v13  ;;  %v7861_v29 = vld [vmem:[#allocation3 + $0x1ec] ss:$24 sps:$4 sm:$0xff]  }
  0xf6   :  { %1334 = vmatpush1.bf16.msra.mxu0 %v7083_v18  ;;  %1565 = vmatpush1.bf16.msra.mxu1 %v7858_v31  ;;  %v8450_v18 = vld [vmem:[#allocation3 + $0x460] ss:$24 sps:$4 sm:$0xff]  }
  0xf7   :  { %1335 = vmatprep.subr.bf16.mxu0 %v7088_v20  ;;  %1566 = vmatprep.subr.bf16.mxu1 %v7859_v28  ;;  %v7886_v20 = vld [vmem:[#allocation3 + $0x2b0] ss:$24 sps:$4 sm:$0xff]   ;;  %v7890_v31 = vld [vmem:[#allocation3] ss:$24 sps:$4 sm:$0xff]   ;;  %v7891_v28 = vld [vmem:[#allocation3 + $0x34] ss:$24 sps:$4 sm:$0xff]  }
  0xf8   :  { %1016 = vmatprep.mubr.bf16.mxu0 %v8116_v1  ;;  %1555 = vmatprep.mubr.bf16.mxu1 %v8116_v1 }
  0xfa   :  { %1336 = vmatpush1.bf16.msra.mxu0 %v7086_v24  ;;  %1567 = vmatpush1.bf16.msra.mxu1 %v7860_v32  ;;  %v7888_v24 = vld [vmem:[#allocation3 + $0x2e0] ss:$24 sps:$4 sm:$0xff]  }
  0xfb   :  { %1337 = vmatprep.subr.bf16.mxu0 %v7091_v26  ;;  %1568 = vmatprep.subr.bf16.mxu1 %v7861_v29  ;;  %v7889_v26 = vld [vmem:[#allocation3 + $0x4] ss:$24 sps:$4 sm:$0xff]   ;;  %v7894_v32 = vld [vmem:[#allocation3 + $0x60] ss:$24 sps:$4 sm:$0xff]   ;;  %v7896_v29 = vld [vmem:[#allocation3 + $0x90] ss:$24 sps:$4 sm:$0xff]  }
  0xfd   :  { %1017 = vmatmul.mubr.bf16.gmra.mrb[12].mxu0 %v8334_v40  ;;  %1556 = vmatmul.mubr.bf16.gmra.mrb[12].mxu1 %v8346_v7  ;;  %v8384_v40 = vld [vmem:[#allocation3 + $0x3f0] ss:$24 sps:$4 sm:$0xff]  }
  0xfe   :  { %1338 = vmatpush1.bf16.msra.mxu0 %v7089_v30  ;;  %1569 = vmatpush1.bf16.msra.mxu1 %v7862_v35  ;;  %v7892_v30 = vld [vmem:[#allocation3 + $0x30] ss:$24 sps:$4 sm:$0xff]   ;;  %v7899_v35 = vld [vmem:[#allocation3 + $0xf4] ss:$24 sps:$4 sm:$0xff]  }
  0xff   :  { %1339 = vmatprep.subr.bf16.mxu0 %v7094_v38  ;;  %1570 = vmatprep.subr.bf16.mxu1 %v7863_v36  ;;  %v7893_v38 = vld [vmem:[#allocation3 + $0x64] ss:$24 sps:$4 sm:$0xff]   ;;  %v7900_v36 = vld [vmem:[#allocation3 + $0xf0] ss:$24 sps:$4 sm:$0xff]  }
 0x100   :  { %1365 = vmatprep.mubr.bf16.mxu0 %v8116_v1  ;;  %1596 = vmatprep.mubr.bf16.mxu1 %v8116_v1 }
 0x102   :  { %1340 = vmatpush1.bf16.msra.mxu0 %v7092_v33  ;;  %1571 = vmatpush1.bf16.msra.mxu1 %v7864_v41  ;;  %v7897_v33 = vld [vmem:[#allocation3 + $0xc4] ss:$24 sps:$4 sm:$0xff]   ;;  %v7904_v41 = vld [vmem:[#allocation3 + $0x150] ss:$24 sps:$4 sm:$0xff]  }
 0x103   :  { %1341 = vmatprep.subr.bf16.mxu0 %v7097_v34  ;;  %1572 = vmatprep.subr.bf16.mxu1 %v7865_v43  ;;  %v7898_v34 = vld [vmem:[#allocation3 + $0xc0] ss:$24 sps:$4 sm:$0xff]   ;;  %v7905_v43 = vld [vmem:[#allocation3 + $0xc] ss:$24 sps:$4 sm:$0xff]  }
 0x106   :  { %1342 = vmatpush1.bf16.msra.mxu0 %v7095_v37  ;;  %1573 = vmatpush1.bf16.msra.mxu1 %v7866_v45  ;;  %v7901_v37 = vld [vmem:[#allocation3 + $0x124] ss:$24 sps:$4 sm:$0xff]   ;;  %v7906_v45 = vld [vmem:[#allocation3 + $0x8] ss:$24 sps:$4 sm:$0xff]  }
 0x107   :  { %1343 = vmatprep.subr.bf16.mxu0 %v7100_v39  ;;  %1574 = vmatprep.subr.bf16.mxu1 %v7867_v47  ;;  %v7903_v39 = vld [vmem:[#allocation3 + $0x154] ss:$24 sps:$4 sm:$0xff]  }
 0x108   :  { %v7907_v47 = vld [vmem:[#allocation3 + $0x3c] ss:$24 sps:$4 sm:$0xff]  }
 0x10a   :  { %1344 = vmatpush1.bf16.msra.mxu0 %v8384_v40  ;;  %1575 = vmatpush1.bf16.msra.mxu1 %v7868_v50  ;;  %v7908_v50 = vld [vmem:[#allocation3 + $0x38] ss:$24 sps:$4 sm:$0xff]  }
 0x10b   :  { %1345 = vmatprep.subr.bf16.mxu0 %v8386_v44  ;;  %1576 = vmatprep.subr.bf16.mxu1 %v7869_v51  ;;  %v7909_v51 = vld [vmem:[#allocation3 + $0x6c] ss:$24 sps:$4 sm:$0xff]  }
 0x10e   :  { %1346 = vmatpush1.bf16.msra.mxu0 %v8388_v48  ;;  %1577 = vmatpush1.bf16.msra.mxu1 %v7870_v54  ;;  %v7910_v54 = vld [vmem:[#allocation3 + $0x68] ss:$24 sps:$4 sm:$0xff]  }
 0x10f   :  { %1347 = vmatprep.subr.bf16.mxu0 %v8390_v49  ;;  %1578 = vmatprep.subr.bf16.mxu1 %v7871_v55  ;;  %v7911_v55 = vld [vmem:[#allocation3 + $0x9c] ss:$24 sps:$4 sm:$0xff]  }
 0x112   :  { %1348 = vmatpush1.bf16.msra.mxu0 %v8394_v52  ;;  %1579 = vmatpush1.bf16.msra.mxu1 %v7872_v58  ;;  %v7912_v58 = vld [vmem:[#allocation3 + $0x98] ss:$24 sps:$4 sm:$0xff]  }
 0x113   :  { %1435 = vmatprep.subr.bf16.mxu0 %v8396_v53  ;;  %1615 = vmatprep.subr.bf16.mxu1 %v7873_v59  ;;  %v7913_v59 = vld [vmem:[#allocation3 + $0xcc] ss:$24 sps:$4 sm:$0xff]  }
 0x115   :  { %1366 = vmatmul.mubr.bf16.vlgmr.msra.gmra.mrb[0].mxu0 %v8350_v13  ;;  %1597 = vmatmul.mubr.bf16.vlgmr.msra.gmra.mrb[16].mxu1 %v8350_v13 }
 0x116   :  { %1436 = vmatpush1.bf16.msra.mxu0 %v8400_v56  ;;  %1616 = vmatpush1.bf16.msra.mxu1 %v7874_v62  ;;  %v7914_v62 = vld [vmem:[#allocation3 + $0xc8] ss:$24 sps:$4 sm:$0xff]  }
 0x117   :  { %1437 = vmatprep.subr.bf16.mxu0 %v8402_v57  ;;  %1617 = vmatprep.subr.bf16.mxu1 %v7875_v63  ;;  %v7915_v63 = vld [vmem:[#allocation3 + $0xfc] ss:$24 sps:$4 sm:$0xff]  }
 0x118   :  { %1375 = vmatprep.mubr.bf16.mxu0 %v8116_v1  ;;  %1606 = vmatprep.mubr.bf16.mxu1 %v8116_v1 }
 0x11a   :  { %1438 = vmatpush1.bf16.msra.mxu0 %v8406_v60  ;;  %1618 = vmatpush1.bf16.msra.mxu1 %v7876_v5  ;;  %v7916_v5 = vld [vmem:[#allocation3 + $0xf8] ss:$24 sps:$4 sm:$0xff]  }
 0x11b   :  { %1439 = vmatprep.subr.bf16.mxu0 %v8410_v61  ;;  %1619 = vmatprep.subr.bf16.mxu1 %v7877_v9  ;;  %v7917_v9 = vld [vmem:[#allocation3 + $0x12c] ss:$24 sps:$4 sm:$0xff]  }
 0x11d   :  { %1376 = vmatmul.mubr.bf16.gmra.mrb[4].mxu0 %v8346_v7  ;;  %1607 = vmatmul.mubr.bf16.gmra.mrb[20].mxu1 %v8346_v7 }
 0x11e   :  { %1440 = vmatpush1.bf16.msra.mxu0 %v8415_v0  ;;  %1620 = vmatpush1.bf16.msra.mxu1 %v7878_v17  ;;  %v7918_v17 = vld [vmem:[#allocation3 + $0x128] ss:$24 sps:$4 sm:$0xff]  }
 0x11f   :  { %1441 = vmatprep.subr.bf16.mxu0 %v8418_v3  ;;  %1621 = vmatprep.subr.bf16.mxu1 %v7879_v19  ;;  %v7919_v19 = vld [vmem:[#allocation3 + $0x15c] ss:$24 sps:$4 sm:$0xff]  }
 0x120   :  { %1467 = vmatprep.mubr.bf16.mxu0 %v8116_v1  ;;  %1647 = vmatprep.mubr.bf16.mxu1 %v8116_v1 }
 0x122   :  { %1442 = vmatpush1.bf16.msra.mxu0 %v8422_v11  ;;  %1622 = vmatpush1.bf16.msra.mxu1 %v7880_v2  ;;  %v7920_v2 = vld [vmem:[#allocation3 + $0x158] ss:$24 sps:$4 sm:$0xff]  }
 0x123   :  { %1443 = vmatprep.subr.bf16.mxu0 %v8425_v15  ;;  %1623 = vmatprep.subr.bf16.mxu1 %v7881_v4  ;;  %v7921_v4 = vld [vmem:[#allocation3 + $0x14] ss:$24 sps:$4 sm:$0xff]  }
 0x126   :  { %1444 = vmatpush1.bf16.msra.mxu0 %v8430_v21  ;;  %1624 = vmatpush1.bf16.msra.mxu1 %v7882_v10  ;;  %v7922_v10 = vld [vmem:[#allocation3 + $0x10] ss:$24 sps:$4 sm:$0xff]  }
 0x127   :  { %1445 = vmatprep.subr.bf16.mxu0 %v8434_v23  ;;  %1625 = vmatprep.subr.bf16.mxu1 %v7883_v25  ;;  %v7923_v25 = vld [vmem:[#allocation3 + $0x44] ss:$24 sps:$4 sm:$0xff]  }
 0x12a   :  { %1446 = vmatpush1.bf16.msra.mxu0 %v8438_v6  ;;  %1626 = vmatpush1.bf16.msra.mxu1 %v7884_v16  ;;  %v7924_v16 = vld [vmem:[#allocation3 + $0x40] ss:$24 sps:$4 sm:$0xff]  }
 0x12b   :  { %1447 = vmatprep.subr.bf16.mxu0 %v8440_v8  ;;  %1627 = vmatprep.subr.bf16.mxu1 %v7885_v27  ;;  %v7925_v27 = vld [vmem:[#allocation3 + $0x74] ss:$24 sps:$4 sm:$0xff]  }
 0x12e   :  { %1448 = vmatpush1.bf16.msra.mxu0 %v8444_v12  ;;  %1628 = vmatpush1.bf16.msra.mxu1 %v7886_v20  ;;  %v7926_v20 = vld [vmem:[#allocation3 + $0x70] ss:$24 sps:$4 sm:$0xff]  }
 0x12f   :  { %1449 = vmatprep.subr.bf16.mxu0 %v8446_v14  ;;  %1629 = vmatprep.subr.bf16.mxu1 %v7887_v22  ;;  %v7927_v22 = vld [vmem:[#allocation3 + $0xa4] ss:$24 sps:$4 sm:$0xff]  }
 0x132   :  { %1450 = vmatpush1.bf16.msra.mxu0 %v8450_v18  ;;  %1630 = vmatpush1.bf16.msra.mxu1 %v7888_v24  ;;  %v7928_v24 = vld [vmem:[#allocation3 + $0xa0] ss:$24 sps:$4 sm:$0xff]  }
 0x133   :  { %1666 = vmatprep.subr.bf16.mxu1 %v7889_v26  ;;  %v7929_v26 = vld [vmem:[#allocation3 + $0xd4] ss:$24 sps:$4 sm:$0xff]  }
 0x135   :  { %1468 = vmatmul.mubr.bf16.vlgmr.msra.gmra.mrb[8].mxu0 %v8350_v13  ;;  %1648 = vmatmul.mubr.bf16.vlgmr.msra.gmra.mrb[24].mxu1 %v8350_v13  ;;  %v7895_v13 = vld [vmem:[#allocation3 + $0x94] ss:$24 sps:$4 sm:$0xff]  }
 0x136   :  { %1667 = vmatpush1.bf16.msra.mxu1 %v7890_v31  ;;  %1477 = vmatprep.mubr.bf16.mxu0 %v8116_v1  ;;  %v7930_v31 = vld [vmem:[#allocation3 + $0xd0] ss:$24 sps:$4 sm:$0xff]  }
 0x137   :  { %1668 = vmatprep.subr.bf16.mxu1 %v7891_v28  ;;  %1657 = vmatprep.mubr.bf16.mxu1 %v8116_v1  ;;  %v7931_v28 = vld [vmem:[#allocation3 + $0x104] ss:$24 sps:$4 sm:$0xff]  }
 0x13a   :  { %1669 = vmatpush1.bf16.msra.mxu1 %v7892_v30  ;;  %v7932_v30 = vld [vmem:[#allocation3 + $0x100] ss:$24 sps:$4 sm:$0xff]  }
 0x13b   :  { %1670 = vmatprep.subr.bf16.mxu1 %v7893_v38  ;;  %v7933_v38 = vld [vmem:[#allocation3 + $0x134] ss:$24 sps:$4 sm:$0xff]  }
 0x13d   :  { %1478 = vmatmul.mubr.bf16.gmra.mrb[12].mxu0 %v8346_v7  ;;  %1658 = vmatmul.mubr.bf16.gmra.mrb[28].mxu1 %v8346_v7  ;;  %v7902_v7 = vld [vmem:[#allocation3 + $0x120] ss:$24 sps:$4 sm:$0xff]  }
 0x13e   :  { %1671 = vmatpush1.bf16.msra.mxu1 %v7894_v32  ;;  %1698 = vmatprep.mubr.bf16.mxu1 %v8116_v1  ;;  %v7934_v32 = vld [vmem:[#allocation3 + $0x130] ss:$24 sps:$4 sm:$0xff]  }
 0x13f   :  { %1672 = vmatprep.subr.bf16.mxu1 %v7895_v13  ;;  %2820 = vmatprep.mubr.bf16.mxu0 %v8116_v1  ;;  %v7935_v13 = vld [vmem:[#allocation3 + $0x164] ss:$24 sps:$4 sm:$0xff]  }
 0x142   :  { %1673 = vmatpush1.bf16.msra.mxu1 %v7896_v29  ;;  %v7936_v29 = vld [vmem:[#allocation3 + $0x160] ss:$24 sps:$4 sm:$0xff]  }
 0x143   :  { %1674 = vmatprep.subr.bf16.mxu1 %v7897_v33  ;;  %v7937_v33 = vld [vmem:[#allocation3 + $0x304] ss:$24 sps:$4 sm:$0xff]  }
 0x146   :  { %1675 = vmatpush1.bf16.msra.mxu1 %v7898_v34  ;;  %v7938_v34 = vld [vmem:[#allocation3 + $0x300] ss:$24 sps:$4 sm:$0xff]  }
 0x147   :  { %1676 = vmatprep.subr.bf16.mxu1 %v7899_v35  ;;  %v7939_v35 = vld [vmem:[#allocation3 + $0x334] ss:$24 sps:$4 sm:$0xff]  }
 0x14a   :  { %1677 = vmatpush1.bf16.msra.mxu1 %v7900_v36  ;;  %v7940_v36 = vld [vmem:[#allocation3 + $0x330] ss:$24 sps:$4 sm:$0xff]  }
 0x14b   :  { %1678 = vmatprep.subr.bf16.mxu1 %v7901_v37  ;;  %v7941_v37 = vld [vmem:[#allocation3 + $0x364] ss:$24 sps:$4 sm:$0xff]  }
 0x14e   :  { %1679 = vmatpush1.bf16.msra.mxu1 %v7902_v7  ;;  %v7942_v7 = vld [vmem:[#allocation3 + $0x360] ss:$24 sps:$4 sm:$0xff]  }
 0x14f   :  { %1680 = vmatprep.subr.bf16.mxu1 %v7903_v39  ;;  %v7943_v39 = vld [vmem:[#allocation3 + $0x394] ss:$24 sps:$4 sm:$0xff]  }
 0x152   :  { %1681 = vmatpush1.bf16.msra.mxu1 %v7904_v41  ;;  %v7944_v41 = vld [vmem:[#allocation3 + $0x390] ss:$24 sps:$4 sm:$0xff]  }
 0x153   :  { %1717 = vmatprep.subr.bf16.mxu1 %v7905_v43  ;;  %v7946_v43 = vld [vmem:[#allocation3 + $0x3c0] ss:$24 sps:$4 sm:$0xff]  }
 0x155   :  { %1699 = vmatmul.mubr.bf16.vlgmr.msra.gmra.mrb[8].mxu1 %v8312_v46 }
 0x156   :  { %1718 = vmatpush1.bf16.msra.mxu1 %v7906_v45  ;;  %1708 = vmatprep.mubr.bf16.mxu1 %v8116_v1  ;;  %v7947_v45 = vld [vmem:[#allocation3 + $0x3f4] ss:$24 sps:$4 sm:$0xff]  }
 0x157   :  { %1719 = vmatprep.subr.bf16.mxu1 %v7907_v47  ;;  %v1819_v47 = vld [vmem:[%s8836_s0 + $0xc] sm:$0xc] }
 0x15a   :  { %1720 = vmatpush1.bf16.msra.mxu1 %v7908_v50 }
 0x15b   :  { %1721 = vmatprep.subr.bf16.mxu1 %v7909_v51 }
 0x15d   :  { %1709 = vmatmul.mubr.bf16.gmra.mrb[12].mxu1 %v8306_v42 }
 0x15e   :  { %1722 = vmatpush1.bf16.msra.mxu1 %v7910_v54  ;;  %1749 = vmatprep.mubr.bf16.mxu1 %v8116_v1 }
 0x15f   :  { %1723 = vmatprep.subr.bf16.mxu1 %v7911_v55  ;;  %v7948_v55 = vld [vmem:[%s8836_s0 + $0x10] sm:$0xf] }
 0x162   :  { %1724 = vmatpush1.bf16.msra.mxu1 %v7912_v58  ;;  %v6199_v58 = vcombine.low %v1819_v47, %v7948_v55  ;;  %v7139_v47 = vld [vmem:[#allocation7 + $0x340] ss:$16 sps:$4 sm:$0xff]  }
 0x163   :  { %1725 = vmatprep.subr.bf16.mxu1 %v7913_v59  ;;  %v7949_v59 = vld [vmem:[%s8836_s0 + $0x14] sm:$0xf] }
 0x164   :  { %v7142_v55 = vld [vmem:[#allocation7 + $0x360] ss:$16 sps:$4 sm:$0xff]  }
 0x166   :  { %1726 = vmatpush1.bf16.msra.mxu1 %v7914_v62 }
 0x167   :  { %1727 = vmatprep.subr.bf16.mxu1 %v7915_v63 }
 0x16a   :  { %1728 = vmatpush1.bf16.msra.mxu1 %v7916_v5  ;;  %v1828_v5 = vrot.slane %v6199_v58, 2  ;;  %v7147_v58 = vld [vmem:[#allocation7 + $0x384] ss:$16 sps:$4 sm:$0xff]  }
 0x16b   :  { %1729 = vmatprep.subr.bf16.mxu1 %v7917_v9 }
 0x16e   :  { %1730 = vmatpush1.bf16.msra.mxu1 %v7918_v17 }
 0x16f   :  { %1731 = vmatprep.subr.bf16.mxu1 %v7919_v19 }
 0x172   :  { %1732 = vmatpush1.bf16.msra.mxu1 %v7920_v2 }
 0x173   :  { %1768 = vmatprep.subr.bf16.mxu1 %v7921_v4  ;;  %v7950_v4 = vld [vmem:[#allocation3 + $0x30c] ss:$24 sps:$4 sm:$0xff]  }
 0x175   :  { %1750 = vmatmul.mubr.bf16.vlgmr.msra.gmra.mrb[16].mxu1 %v8312_v46 }
 0x176   :  { %1769 = vmatpush1.bf16.msra.mxu1 %v7922_v10  ;;  %1759 = vmatprep.mubr.bf16.mxu1 %v8116_v1  ;;  %v7953_v10 = vld [vmem:[#allocation3 + $0x338] ss:$24 sps:$4 sm:$0xff]  }
 0x177   :  { %1770 = vmatprep.subr.bf16.mxu1 %v7923_v25  ;;  %v7954_v25 = vld [vmem:[#allocation3 + $0x36c] ss:$24 sps:$4 sm:$0xff]  }
 0x17a   :  { %1771 = vmatpush1.bf16.msra.mxu1 %v7924_v16  ;;  %v7956_v16 = vld [vmem:[#allocation3 + $0x39c] ss:$24 sps:$4 sm:$0xff]  }
 0x17b   :  { %1772 = vmatprep.subr.bf16.mxu1 %v7925_v27  ;;  %v7957_v27 = vld [vmem:[#allocation3 + $0x398] ss:$24 sps:$4 sm:$0xff]  }
 0x17d   :  { %1760 = vmatmul.mubr.bf16.gmra.mrb[20].mxu1 %v8306_v42 }
 0x17e   :  { %1773 = vmatpush1.bf16.msra.mxu1 %v7926_v20  ;;  %1800 = vmatprep.mubr.bf16.mxu1 %v8116_v1  ;;  %v7958_v20 = vld [vmem:[#allocation3 + $0x3cc] ss:$24 sps:$4 sm:$0xff]  }
 0x17f   :  { %1774 = vmatprep.subr.bf16.mxu1 %v7927_v22  ;;  %v7959_v22 = vld [vmem:[#allocation3 + $0x3c8] ss:$24 sps:$4 sm:$0xff]  }
 0x182   :  { %1775 = vmatpush1.bf16.msra.mxu1 %v7928_v24  ;;  %v7960_v24 = vld [vmem:[#allocation3 + $0x3fc] ss:$24 sps:$4 sm:$0xff]  }
 0x183   :  { %1776 = vmatprep.subr.bf16.mxu1 %v7929_v26  ;;  %v7961_v26 = vld [vmem:[#allocation3 + $0x3f8] ss:$24 sps:$4 sm:$0xff]  }
 0x186   :  { %1777 = vmatpush1.bf16.msra.mxu1 %v7930_v31  ;;  %v7962_v31 = vld [vmem:[#allocation3 + $0x42c] ss:$24 sps:$4 sm:$0xff]  }
 0x187   :  { %1778 = vmatprep.subr.bf16.mxu1 %v7931_v28  ;;  %v7963_v28 = vld [vmem:[#allocation3 + $0x428] ss:$24 sps:$4 sm:$0xff]  }
 0x18a   :  { %1779 = vmatpush1.bf16.msra.mxu1 %v7932_v30  ;;  %v7964_v30 = vld [vmem:[#allocation3 + $0x45c] ss:$24 sps:$4 sm:$0xff]  }
 0x18b   :  { %1780 = vmatprep.subr.bf16.mxu1 %v7933_v38  ;;  %v7965_v38 = vld [vmem:[#allocation3 + $0x458] ss:$24 sps:$4 sm:$0xff]  }
 0x18e   :  { %1781 = vmatpush1.bf16.msra.mxu1 %v7934_v32 }
 0x18f   :  { %1782 = vmatprep.subr.bf16.mxu1 %v7935_v13 }
 0x192   :  { %1783 = vmatpush1.bf16.msra.mxu1 %v7936_v29 }
 0x193   :  { %1833 = vmatprep.subr.bf16.mxu1 %v7937_v33 }
 0x195   :  { %1801 = vmatmul.mubr.bf16.vlgmr.msra.gmra.mrb[24].mxu1 %v8312_v46  ;;  %v7945_v46 = vld [vmem:[#allocation3 + $0x3c4] ss:$24 sps:$4 sm:$0xff]  }
 0x196   :  { %1834 = vmatpush1.bf16.msra.mxu1 %v7938_v34  ;;  %1810 = vmatprep.mubr.bf16.mxu1 %v8116_v1 }
 0x197   :  { %1835 = vmatprep.subr.bf16.mxu1 %v7939_v35 }
 0x19a   :  { %1836 = vmatpush1.bf16.msra.mxu1 %v7940_v36 }
 0x19b   :  { %1837 = vmatprep.subr.bf16.mxu1 %v7941_v37 }
 0x19d   :  { %1811 = vmatmul.mubr.bf16.gmra.mrb[28].mxu1 %v8306_v42  ;;  %v1820_v42 = vld [vmem:[%s8836_s0 + $0x18] sm:$0x3] }
 0x19e   :  { %1838 = vmatpush1.bf16.msra.mxu1 %v7942_v7  ;;  %1865 = vmatprep.mubr.bf16.mxu1 %v8116_v1  ;;  %v6200_v62 = vcombine.low %v7949_v59, %v1820_v42  ;;  %v7144_v42 = vld [vmem:[#allocation7 + $0x364] ss:$16 sps:$4 sm:$0xff]   ;;  %v7145_v59 = vld [vmem:[#allocation7 + $0x380] ss:$16 sps:$4 sm:$0xff]  }
 0x19f   :  { %1839 = vmatprep.subr.bf16.mxu1 %v7943_v39  ;;  %v7133_v39 = vld [vmem:[#allocation7 + $0x300] ss:$16 sps:$4 sm:$0xff]  }
 0x1a0   :  { %v8498_v9 = vrot.slane %v6200_v62, 2  ;;  %v7150_v62 = vld [vmem:[#allocation7 + $0x3a4] ss:$16 sps:$4 sm:$0xff]  }
 0x1a2   :  { %1840 = vmatpush1.bf16.msra.mxu1 %v7944_v41  ;;  %v8508_v2 = vsel %vm1827_vm1, %v1828_v5, %v8498_v9  ;;  %v7135_v41 = vld [vmem:[#allocation7 + $0x304] ss:$16 sps:$4 sm:$0xff]   ;;  %v7148_v5 = vld [vmem:[#allocation7 + $0x3a0] ss:$16 sps:$4 sm:$0xff]  }
 0x1a3   :  { %1841 = vmatprep.subr.bf16.mxu1 %v7945_v46  ;;  %v7138_v46 = vld [vmem:[#allocation7 + $0x324] ss:$16 sps:$4 sm:$0xff]  }
 0x1a6   :  { %1842 = vmatpush1.bf16.msra.mxu1 %v7946_v43  ;;  %v7136_v43 = vld [vmem:[#allocation7 + $0x320] ss:$16 sps:$4 sm:$0xff]  }
 0x1a7   :  { %1843 = vmatprep.subr.bf16.mxu1 %v7947_v45  ;;  %v7141_v45 = vld [vmem:[#allocation7 + $0x344] ss:$16 sps:$4 sm:$0xff]  }
 0x1a8   :  { %v8481_v50 = vpop.f32.mrb[0].mxu1 }
 0x1a9   :  { %v8483_v51 = vpop.f32.mrb[1].mxu1 }
 0x1aa   :  { %v8485_v54 = vpop.f32.mrb[2].mxu1  ;;  %1844 = vmatpush1.bf16.msra.mxu1 %v8384_v40 }
 0x1ab   :  { %v8494_v63 = vpop.f32.mrb[3].mxu1  ;;  %1845 = vmatprep.subr.bf16.mxu1 %v8386_v44 }
 0x1ae   :  { %1846 = vmatpush1.bf16.msra.mxu1 %v8388_v48  ;;  %v7951_v48 = vld [vmem:[#allocation3 + $0x308] ss:$24 sps:$4 sm:$0xff]  }
 0x1af   :  { %1847 = vmatprep.subr.bf16.mxu1 %v8390_v49  ;;  %v7952_v49 = vld [vmem:[#allocation3 + $0x33c] ss:$24 sps:$4 sm:$0xff]  }
 0x1b0   :  { %v8501_v40 = vpop.f32.mrb[4].mxu1 }
 0x1b1   :  { %v8503_v17 = vpop.f32.mrb[5].mxu1 }
 0x1b2   :  { %v1432_v19 = vpop.f32.mrb[6].mxu1  ;;  %1848 = vmatpush1.bf16.msra.mxu1 %v8394_v52  ;;  %v7955_v52 = vld [vmem:[#allocation3 + $0x368] ss:$24 sps:$4 sm:$0xff]  }
 0x1b3   :  { %v1433_v44 = vpop.f32.mrb[7].mxu1  ;;  %1884 = vmatprep.subr.bf16.mxu1 %v7950_v4  ;;  %v7151_v19 = vld [vmem:[#allocation7 + $0x3c0] ss:$16 sps:$4 sm:$0xff]   ;;  %v7159_v4 = vld [vmem:[#allocation7 + $0x404] ss:$16 sps:$4 sm:$0xff]  }
 0x1b4   :  { %v7154_v44 = vld [vmem:[#allocation7 + $0x3e0] ss:$16 sps:$4 sm:$0xff]  }
 0x1b5   :  { %1866 = vmatmul.mubr.bf16.vlgmr.msra.gmra.mrb[8].mxu1 %v8508_v2 }
 0x1b6   :  { %1885 = vmatpush1.bf16.msra.mxu1 %v7951_v48  ;;  %1875 = vmatprep.mubr.bf16.mxu1 %v8116_v1  ;;  %v7160_v48 = vld [vmem:[#allocation7 + $0x500] ss:$16 sps:$4 sm:$0xff]  }
 0x1b7   :  { %1886 = vmatprep.subr.bf16.mxu1 %v7952_v49  ;;  %v7157_v49 = vld [vmem:[#allocation7 + $0x400] ss:$16 sps:$4 sm:$0xff]  }
 0x1ba   :  { %1887 = vmatpush1.bf16.msra.mxu1 %v7953_v10  ;;  %v7162_v10 = vld [vmem:[#allocation7 + $0x504] ss:$16 sps:$4 sm:$0xff]  }
 0x1bb   :  { %1888 = vmatprep.subr.bf16.mxu1 %v7954_v25  ;;  %v7165_v25 = vld [vmem:[#allocation7 + $0x424] ss:$16 sps:$4 sm:$0xff]   ;;  %2788 = vmatprep.subr.bf16.mxu0 %v7162_v10 }
 0x1bc   :  { %2789 = vmatpush1.bf16.msra.mxu0 %v7160_v48 }
 0x1bd   :  { %1876 = vmatmul.mubr.bf16.gmra.mrb[12].mxu1 %v8498_v9 }
 0x1be   :  { %1889 = vmatpush1.bf16.msra.mxu1 %v7955_v52  ;;  %1916 = vmatprep.mubr.bf16.mxu1 %v8116_v1  ;;  %v7168_v52 = vld [vmem:[#allocation7 + $0x524] ss:$16 sps:$4 sm:$0xff]  }
 0x1bf   :  { %1890 = vmatprep.subr.bf16.mxu1 %v7956_v16  ;;  %v7166_v16 = vld [vmem:[#allocation7 + $0x520] ss:$16 sps:$4 sm:$0xff]   ;;  %2790 = vmatprep.subr.bf16.mxu0 %v7168_v52 }
 0x1c0   :  { %2791 = vmatpush1.bf16.msra.mxu0 %v7166_v16  ;;  %v2024_v16 = vlaneseq }
 0x1c2   :  { %1891 = vmatpush1.bf16.msra.mxu1 %v7957_v27  ;;  %v7163_v27 = vld [vmem:[#allocation7 + $0x420] ss:$16 sps:$4 sm:$0xff]  }
 0x1c3   :  { %1892 = vmatprep.subr.bf16.mxu1 %v7958_v20  ;;  %v7174_v20 = vld [vmem:[#allocation7 + $0x544] ss:$16 sps:$4 sm:$0xff]  }
 0x1c4   :  { %2792 = vmatprep.subr.bf16.mxu0 %v7174_v20 }
 0x1c6   :  { %1893 = vmatpush1.bf16.msra.mxu1 %v7959_v22  ;;  %v7171_v22 = vld [vmem:[#allocation7 + $0x444] ss:$16 sps:$4 sm:$0xff]  }
 0x1c7   :  { %1894 = vmatprep.subr.bf16.mxu1 %v7960_v24  ;;  %v7172_v24 = vld [vmem:[#allocation7 + $0x540] ss:$16 sps:$4 sm:$0xff]  }
 0x1c8   :  { %2793 = vmatpush1.bf16.msra.mxu0 %v7172_v24 }
 0x1ca   :  { %1895 = vmatpush1.bf16.msra.mxu1 %v7961_v26  ;;  %v7169_v26 = vld [vmem:[#allocation7 + $0x440] ss:$16 sps:$4 sm:$0xff]  }
 0x1cb   :  { %1896 = vmatprep.subr.bf16.mxu1 %v7962_v31  ;;  %v7177_v31 = vld [vmem:[#allocation7 + $0x464] ss:$16 sps:$4 sm:$0xff]  }
 0x1ce   :  { %1897 = vmatpush1.bf16.msra.mxu1 %v7963_v28  ;;  %v7180_v28 = vld [vmem:[#allocation7 + $0x564] ss:$16 sps:$4 sm:$0xff]  }
 0x1cf   :  { %1898 = vmatprep.subr.bf16.mxu1 %v7964_v30  ;;  %v7175_v30 = vld [vmem:[#allocation7 + $0x460] ss:$16 sps:$4 sm:$0xff]   ;;  %2794 = vmatprep.subr.bf16.mxu0 %v7180_v28 }
 0x1d2   :  { %1899 = vmatpush1.bf16.msra.mxu1 %v7965_v38  ;;  %v7178_v38 = vld [vmem:[#allocation7 + $0x560] ss:$16 sps:$4 sm:$0xff]  }
 0x1d3   :  { %1935 = vmatprep.subr.bf16.mxu1 %v8396_v53  ;;  %2795 = vmatpush1.bf16.msra.mxu0 %v7178_v38 }
 0x1d5   :  { %1917 = vmatmul.mubr.bf16.vlgmr.msra.gmra.mrb[16].mxu1 %v8508_v2 }
 0x1d6   :  { %1936 = vmatpush1.bf16.msra.mxu1 %v8400_v56  ;;  %1926 = vmatprep.mubr.bf16.mxu1 %v8116_v1 }
 0x1d7   :  { %1937 = vmatprep.subr.bf16.mxu1 %v8402_v57 }
 0x1da   :  { %1938 = vmatpush1.bf16.msra.mxu1 %v8406_v60 }
 0x1db   :  { %1939 = vmatprep.subr.bf16.mxu1 %v8410_v61 }
 0x1dd   :  { %1927 = vmatmul.mubr.bf16.gmra.mrb[20].mxu1 %v8498_v9 }
 0x1de   :  { %1940 = vmatpush1.bf16.msra.mxu1 %v8415_v0  ;;  %1967 = vmatprep.mubr.bf16.mxu1 %v8116_v1 }
 0x1df   :  { %1941 = vmatprep.subr.bf16.mxu1 %v8418_v3 }
 0x1e2   :  { %1942 = vmatpush1.bf16.msra.mxu1 %v8422_v11 }
 0x1e3   :  { %1943 = vmatprep.subr.bf16.mxu1 %v8425_v15 }
 0x1e6   :  { %1944 = vmatpush1.bf16.msra.mxu1 %v8430_v21 }
 0x1e7   :  { %1945 = vmatprep.subr.bf16.mxu1 %v8434_v23 }
 0x1e8   :  { %v8529_v53 = vpop.f32.mrb[0].mxu0 }
 0x1e9   :  { %v1504_v56 = vmax.f32 %v8529_v53, %v8483_v51  ;;  %v8533_v57 = vpop.f32.mrb[1].mxu0 }
 0x1ea   :  { %v8535_v60 = vpop.f32.mrb[2].mxu0  ;;  %1946 = vmatpush1.bf16.msra.mxu1 %v8438_v6 }
 0x1eb   :  { %v1507_v61 = vmax.f32 %v8535_v60, %v8494_v63  ;;  %1947 = vmatprep.subr.bf16.mxu1 %v8440_v8  ;;  %v8541_v0 = vpop.f32.mrb[3].mxu0 }
 0x1ee   :  { %1948 = vmatpush1.bf16.msra.mxu1 %v8444_v12 }
 0x1ef   :  { %1949 = vmatprep.subr.bf16.mxu1 %v8446_v14 }
 0x1f0   :  { %v8545_v3 = vpop.f32.mrb[4].mxu0 }
 0x1f1   :  { %v1510_v11 = vmax.f32 %v8545_v3, %v8503_v17  ;;  %v8549_v15 = vpop.f32.mrb[5].mxu0 }
 0x1f2   :  { %1950 = vmatpush1.bf16.msra.mxu1 %v8450_v18  ;;  %v1381_v21 = vpop.f32.mrb[6].mxu0 }
 0x1f3   :  { %v1382_v23 = vpop.f32.mrb[7].mxu0  ;;  %2745 = vmatprep.subr.bf16.mxu1 %v7135_v41  ;;  %v7183_v21 = vld [vmem:[#allocation7 + $0x484] ss:$16 sps:$4 sm:$0xff]  }
 0x1f4   :  { %v7186_v23 = vld [vmem:[#allocation7 + $0x584] ss:$16 sps:$4 sm:$0xff]  }
 0x1f5   :  { %1968 = vmatmul.mubr.bf16.vlgmr.msra.gmra.mrb[24].mxu1 %v8508_v2  ;;  %v7156_v2 = vld [vmem:[#allocation7 + $0x3e4] ss:$16 sps:$4 sm:$0xff]   ;;  %2796 = vmatprep.subr.bf16.mxu0 %v7186_v23 }
 0x1f6   :  { %1977 = vmatprep.mubr.bf16.mxu1 %v8116_v1  ;;  %2746 = vmatpush1.bf16.msra.mxu1 %v7133_v39  ;;  %v7189_v39 = vld [vmem:[#allocation7 + $0x4a4] ss:$16 sps:$4 sm:$0xff]  }
 0x1f7   :  { %2747 = vmatprep.subr.bf16.mxu1 %v7138_v46  ;;  %v7192_v41 = vld [vmem:[#allocation7 + $0x5a4] ss:$16 sps:$4 sm:$0xff]   ;;  %v7187_v46 = vld [vmem:[#allocation7 + $0x4a0] ss:$16 sps:$4 sm:$0xff]  }
 0x1fa   :  { %2748 = vmatpush1.bf16.msra.mxu1 %v7136_v43  ;;  %v7190_v43 = vld [vmem:[#allocation7 + $0x5a0] ss:$16 sps:$4 sm:$0xff]  }
 0x1fb   :  { %2749 = vmatprep.subr.bf16.mxu1 %v7141_v45  ;;  %v7195_v45 = vld [vmem:[#allocation7 + $0x4c4] ss:$16 sps:$4 sm:$0xff]  }
 0x1fd   :  { %1978 = vmatmul.mubr.bf16.gmra.mrb[28].mxu1 %v8498_v9  ;;  %v7153_v9 = vld [vmem:[#allocation7 + $0x3c4] ss:$16 sps:$4 sm:$0xff]  }
 0x1fe   :  { %2750 = vmatpush1.bf16.msra.mxu1 %v7139_v47  ;;  %v7198_v47 = vld [vmem:[#allocation7 + $0x5c4] ss:$16 sps:$4 sm:$0xff]  }
 0x1ff   :  { %2751 = vmatprep.subr.bf16.mxu1 %v7144_v42  ;;  %v7193_v42 = vld [vmem:[#allocation7 + $0x4c0] ss:$16 sps:$4 sm:$0xff]  }
 0x202   :  { %2752 = vmatpush1.bf16.msra.mxu1 %v7142_v55  ;;  %v7196_v55 = vld [vmem:[#allocation7 + $0x5c0] ss:$16 sps:$4 sm:$0xff]  }
 0x203   :  { %2753 = vmatprep.subr.bf16.mxu1 %v7147_v58  ;;  %v7201_v58 = vld [vmem:[#allocation7 + $0x4e4] ss:$16 sps:$4 sm:$0xff]  }
 0x206   :  { %2754 = vmatpush1.bf16.msra.mxu1 %v7145_v59  ;;  %v7204_v59 = vld [vmem:[#allocation7 + $0x5e4] ss:$16 sps:$4 sm:$0xff]  }
 0x207   :  { %2755 = vmatprep.subr.bf16.mxu1 %v7150_v62  ;;  %v7199_v62 = vld [vmem:[#allocation7 + $0x4e0] ss:$16 sps:$4 sm:$0xff]  }
 0x208   :  { %v8555_v6 = vpop.f32.mrb[8].mxu0 }
 0x209   :  { %v1505_v8 = vmax.f32 %v8533_v57, %v8555_v6  ;;  %v8559_v12 = vpop.f32.mrb[9].mxu0 }
 0x20a   :  { %v1506_v14 = vmax.f32 %v8481_v50, %v8559_v12  ;;  %v8563_v32 = vpop.f32.mrb[10].mxu0  ;;  %2756 = vmatpush1.bf16.msra.mxu1 %v7148_v5  ;;  %v7202_v5 = vld [vmem:[#allocation7 + $0x5e0] ss:$16 sps:$4 sm:$0xff]  }
 0x20b   :  { %v1508_v18 = vmax.f32 %v8541_v0, %v8563_v32  ;;  %v8567_v13 = vpop.f32.mrb[11].mxu0  ;;  %2757 = vmatprep.subr.bf16.mxu1 %v7153_v9  ;;  %v7207_v9 = vld [vmem:[#allocation7 + $0x30c] ss:$16 sps:$4 sm:$0xff]  }
 0x20c   :  { %v1509_v29 = vmax.f32 %v8485_v54, %v8567_v13 }
 0x20e   :  { %2758 = vmatpush1.bf16.msra.mxu1 %v7151_v19  ;;  %v7210_v19 = vld [vmem:[#allocation7 + $0x50c] ss:$16 sps:$4 sm:$0xff]  }
 0x20f   :  { %2759 = vmatprep.subr.bf16.mxu1 %v7156_v2 }
 0x210   :  { %v8571_v33 = vpop.f32.mrb[12].mxu0 }
 0x211   :  { %v1511_v34 = vmax.f32 %v8549_v15, %v8571_v33  ;;  %v8575_v35 = vpop.f32.mrb[13].mxu0 }
 0x212   :  { %v1512_v36 = vmax.f32 %v8501_v40, %v8575_v35  ;;  %v1483_v37 = vpop.f32.mrb[14].mxu0  ;;  %2760 = vmatpush1.bf16.msra.mxu1 %v7154_v44  ;;  %v7208_v35 = vld [vmem:[#allocation7 + $0x508] ss:$16 sps:$4 sm:$0xff]  }
 0x213   :  { %v1484_v7 = vpop.f32.mrb[15].mxu0  ;;  %2761 = vmatprep.subr.bf16.mxu1 %v7159_v4  ;;  %v7181_v37 = vld [vmem:[#allocation7 + $0x480] ss:$16 sps:$4 sm:$0xff]  }
 0x214   :  { %v7184_v7 = vld [vmem:[#allocation7 + $0x580] ss:$16 sps:$4 sm:$0xff]  }
 0x215   :  { %2797 = vmatpush1.bf16.msra.mxu0 %v7184_v7 }
 0x216   :  { %2762 = vmatpush1.bf16.msra.mxu1 %v7157_v49  ;;  %2798 = vmatprep.subr.bf16.mxu0 %v7192_v41 }
 0x217   :  { %2763 = vmatprep.subr.bf16.mxu1 %v7165_v25 }
 0x219   :  { %2799 = vmatpush1.bf16.msra.mxu0 %v7190_v43 }
 0x21a   :  { %2764 = vmatpush1.bf16.msra.mxu1 %v7163_v27  ;;  %2800 = vmatprep.subr.bf16.mxu0 %v7198_v47  ;;  %v2025_v27 = vshrl.u32 %v2024_v16, 7 }
 0x21b   :  { %2765 = vmatprep.subr.bf16.mxu1 %v7171_v22 }
 0x21c   :  { %v2026_v22 = vsub.s32 0, %v2025_v27  ;;  %v2030_v53 = vsub.s32 1, %v2025_v27 }
 0x21d   :  { %2801 = vmatpush1.bf16.msra.mxu0 %v7196_v55  ;;  %v2034_v55 = vsub.s32 2, %v2025_v27 }
 0x21e   :  { %2766 = vmatpush1.bf16.msra.mxu1 %v7169_v26  ;;  %2802 = vmatprep.subr.bf16.mxu0 %v7204_v59  ;;  %v2022_v26 = vld [vmem:[#allocation5] sm:$0x7] }
 0x21f   :  { %2767 = vmatprep.subr.bf16.mxu1 %v7177_v31  ;;  %v2035_v17 = vrot.slane %v2022_v26, %v2034_v55  ;;  %v7226_v55 = vld [vmem:[#allocation7 + $0x568] ss:$16 sps:$4 sm:$0xff]  }
 0x221   :  { %2803 = vmatpush1.bf16.msra.mxu0 %v7202_v5 }
 0x222   :  { %2768 = vmatpush1.bf16.msra.mxu1 %v7175_v30  ;;  %2874 = vmatprep.subr.bf16.mxu0 %v7210_v19 }
 0x223   :  { %2769 = vmatprep.subr.bf16.mxu1 %v7183_v21  ;;  %v2027_v21 = vrot.slane %v2022_v26, %v2026_v22 }
 0x226   :  { %2770 = vmatpush1.bf16.msra.mxu1 %v7181_v37 }
 0x227   :  { %2771 = vmatprep.subr.bf16.mxu1 %v7189_v39 }
 0x22a   :  { %2772 = vmatpush1.bf16.msra.mxu1 %v7187_v46 }
 0x22b   :  { %2773 = vmatprep.subr.bf16.mxu1 %v7195_v45 }
 0x22e   :  { %2774 = vmatpush1.bf16.msra.mxu1 %v7193_v42 }
 0x22f   :  { %2775 = vmatprep.subr.bf16.mxu1 %v7201_v58 }
 0x232   :  { %2776 = vmatpush1.bf16.msra.mxu1 %v7199_v62  ;;  %v2031_v62 = vrot.slane %v2022_v26, %v2030_v53  ;;  %v7228_v53 = vld [vmem:[#allocation7 + $0x56c] ss:$16 sps:$4 sm:$0xff]  }
 0x233   :  { %2831 = vmatprep.subr.bf16.mxu1 %v7207_v9 }
 0x288   :  { %v1867_v2 = vpop.f32.mrb[8].mxu1 }
 0x289   :  { %v1869_v44 = vpop.f32.mrb[9].mxu1 }
 0x28a   :  { %v1871_v4 = vpop.f32.mrb[10].mxu1 }
 0x28b   :  { %v1873_v48 = vpop.f32.mrb[11].mxu1 }
 0x290   :  { %v1877_v49 = vpop.f32.mrb[12].mxu1 }
 0x291   :  { %v1879_v10 = vpop.f32.mrb[13].mxu1 }
 0x292   :  { %v1881_v25 = vpop.f32.mrb[14].mxu1 }
 0x293   :  { %v1882_v52 = vpop.f32.mrb[15].mxu1 }
 0x2a8   :  { %v1918_v20 = vpop.f32.mrb[16].mxu1 }
 0x2a9   :  { %v1920_v24 = vpop.f32.mrb[17].mxu1 }
 0x2aa   :  { %v2004_v31 = vmax.f32 %v1867_v2, %v1920_v24  ;;  %v1922_v28 = vpop.f32.mrb[18].mxu1 }
 0x2ab   :  { %v1924_v30 = vpop.f32.mrb[19].mxu1 }
 0x2ac   :  { %v2013_v38 = vmax.f32 %v1504_v56, %v2004_v31  ;;  %v2007_v23 = vmax.f32 %v1871_v4, %v1924_v30  ;;  %v7213_v30 = vld [vmem:[#allocation7 + $0x32c] ss:$16 sps:$4 sm:$0xff]  }
 0x2ae   :  { %v2016_v37 = vmax.f32 %v1507_v61, %v2007_v23  ;;  %v2039_v7 = vadd.f32 %v2027_v21, %v2013_v38  ;;  %v7216_v23 = vld [vmem:[#allocation7 + $0x52c] ss:$16 sps:$4 sm:$0xff]  }
 0x2b0   :  { %v2042_v39 = vadd.f32 %v2027_v21, %v2016_v37  ;;  %v1928_v41 = vpop.f32.mrb[20].mxu1 }
 0x2b1   :  { %v1930_v46 = vpop.f32.mrb[21].mxu1 }
 0x2b2   :  { %v8585_v43 = vpack.c.bf16 %v2042_v39, %v2039_v7  ;;  %v2010_v45 = vmax.f32 %v1877_v49, %v1930_v46  ;;  %v1932_v47 = vpop.f32.mrb[22].mxu1  ;;  %v7211_v39 = vld [vmem:[#allocation7 + $0x328] ss:$16 sps:$4 sm:$0xff]   ;;  %v7219_v46 = vld [vmem:[#allocation7 + $0x34c] ss:$16 sps:$4 sm:$0xff]  }
 0x2b3   :  { %v1933_v42 = vpop.f32.mrb[23].mxu1  ;;  %v7217_v47 = vld [vmem:[#allocation7 + $0x348] ss:$16 sps:$4 sm:$0xff]  }
 0x2b4   :  { %v2019_v51 = vmax.f32 %v1510_v11, %v2010_v45  ;;  %v2253_v27 = vrot.slane %v8585_v43, 1  ;;  %v7222_v45 = vld [vmem:[#allocation7 + $0x54c] ss:$16 sps:$4 sm:$0xff]   ;;  %v7220_v42 = vld [vmem:[#allocation7 + $0x548] ss:$16 sps:$4 sm:$0xff]  }
 0x2b6   :  { %v2045_v6 = vadd.f32 %v2027_v21, %v2019_v51  ;;  %v7225_v51 = vld [vmem:[#allocation7 + $0x36c] ss:$16 sps:$4 sm:$0xff]  }
 0x2b8   :  { %v8609_v32 = vpack.c.bf16 %v2045_v6, %v2045_v6  ;;  %v7250_v6 = vld [vmem:[#allocation7 + $0x5e8] ss:$16 sps:$4 sm:$0xff]  }
 0x2c8   :  { %v1969_v56 = vpop.f32.mrb[24].mxu1 }
 0x2c9   :  { %v2005_v58 = vmax.f32 %v1869_v44, %v1969_v56  ;;  %v1971_v59 = vpop.f32.mrb[25].mxu1  ;;  %v7223_v56 = vld [vmem:[#allocation7 + $0x368] ss:$16 sps:$4 sm:$0xff]  }
 0x2ca   :  { %v2006_v63 = vmax.f32 %v1918_v20, %v1971_v59  ;;  %v1973_v60 = vpop.f32.mrb[26].mxu1  ;;  %v2254_v20 = vrot.slane %v8609_v32, 1  ;;  %v7234_v59 = vld [vmem:[#allocation7 + $0x58c] ss:$16 sps:$4 sm:$0xff]  }
 0x2cb   :  { %v2014_v61 = vmax.f32 %v1505_v8, %v2005_v58  ;;  %v2008_v5 = vmax.f32 %v1873_v48, %v1973_v60  ;;  %v1975_v9 = vpop.f32.mrb[27].mxu1  ;;  %v7231_v58 = vld [vmem:[#allocation7 + $0x38c] ss:$16 sps:$4 sm:$0xff]   ;;  %v7232_v60 = vld [vmem:[#allocation7 + $0x588] ss:$16 sps:$4 sm:$0xff]  }
 0x2cc   :  { %v2015_v19 = vmax.f32 %v1506_v14, %v2006_v63  ;;  %v2009_v3 = vmax.f32 %v1922_v28, %v1975_v9  ;;  %v8630_v38 = vsel %vm223_vm0, %v2253_v27, %v2254_v20  ;;  %v7229_v63 = vld [vmem:[#allocation7 + $0x388] ss:$16 sps:$4 sm:$0xff]   ;;  %v7273_v27 = vld [vmem:[#allocation7 + $0x46c] ss:$16 sps:$4 sm:$0xff]   ;;  %v7276_v20 = vld [vmem:[#allocation7 + $0x264] ss:$16 sps:$4 sm:$0xff]  }
 0x2cd   :  { %v2017_v11 = vmax.f32 %v1508_v18, %v2008_v5  ;;  %v2040_v44 = vadd.f32 %v2031_v62, %v2014_v61  ;;  %v7237_v61 = vld [vmem:[#allocation7 + $0x3ac] ss:$16 sps:$4 sm:$0xff]   ;;  %v7235_v5 = vld [vmem:[#allocation7 + $0x3a8] ss:$16 sps:$4 sm:$0xff]  }
 0x2ce   :  { %v2018_v2 = vmax.f32 %v1509_v29, %v2009_v3  ;;  %v2041_v8 = vadd.f32 %v2035_v17, %v2015_v19  ;;  %v7238_v9 = vld [vmem:[#allocation7 + $0x5a8] ss:$16 sps:$4 sm:$0xff]   ;;  %v7243_v19 = vld [vmem:[#allocation7 + $0x3cc] ss:$16 sps:$4 sm:$0xff]  }
 0x2cf   :  { %v2043_v57 = vadd.f32 %v2031_v62, %v2017_v11  ;;  %v7241_v3 = vld [vmem:[#allocation7 + $0x3c8] ss:$16 sps:$4 sm:$0xff]  }
 0x2d0   :  { %v2044_v4 = vadd.f32 %v2035_v17, %v2018_v2  ;;  %v1979_v48 = vpop.f32.mrb[28].mxu1  ;;  %v7244_v11 = vld [vmem:[#allocation7 + $0x5c8] ss:$16 sps:$4 sm:$0xff]   ;;  %v7249_v2 = vld [vmem:[#allocation7 + $0x3ec] ss:$16 sps:$4 sm:$0xff]  }
 0x2d1   :  { %v8602_v49 = vpack.c.bf16 %v2043_v57, %v2040_v44  ;;  %v2011_v50 = vmax.f32 %v1879_v10, %v1979_v48  ;;  %v1981_v12 = vpop.f32.mrb[29].mxu1  ;;  %v7252_v44 = vld [vmem:[#allocation7 + $0x5ec] ss:$16 sps:$4 sm:$0xff]   ;;  %v7247_v57 = vld [vmem:[#allocation7 + $0x3e8] ss:$16 sps:$4 sm:$0xff]  }
 0x2d2   :  { %v8604_v14 = vpack.c.bf16 %v2044_v4, %v2041_v8  ;;  %v2012_v25 = vmax.f32 %v1928_v41, %v1981_v12  ;;  %v1983_v52 = vpop.f32.mrb[30].mxu1  ;;  %v7214_v41 = vld [vmem:[#allocation7 + $0x528] ss:$16 sps:$4 sm:$0xff]   ;;  %v7255_v8 = vld [vmem:[#allocation7 + $0x40c] ss:$16 sps:$4 sm:$0xff]  }
 0x2d3   :  { %v2020_v0 = vmax.f32 %v1511_v34, %v2011_v50  ;;  %v1984_v54 = vpop.f32.mrb[31].mxu1  ;;  %v2256_v15 = vrot.slane %v8602_v49, 1  ;;  %v7205_v34 = vld [vmem:[#allocation7 + $0x308] ss:$16 sps:$4 sm:$0xff]   ;;  %v7258_v4 = vld [vmem:[#allocation7 + $0x204] ss:$16 sps:$4 sm:$0xff]  }
 0x2d4   :  { %v2021_v18 = vmax.f32 %v1512_v36, %v2012_v25  ;;  %v2259_v22 = vrot.slane %v8604_v14, 1  ;;  %v4442_v40 = vrot.slane %v8604_v14, 3  ;;  %v5212_v26 = vrot.slane %v8604_v14, 4  ;;  %v7253_v48 = vld [vmem:[#allocation7 + $0x408] ss:$16 sps:$4 sm:$0xff]  }
 0x2d5   :  { %v2046_v13 = vadd.f32 %v2031_v62, %v2020_v0  ;;  %v7240_v62 = vld [vmem:[#allocation7 + $0x5ac] ss:$16 sps:$4 sm:$0xff]   ;;  %v7256_v50 = vld [vmem:[#allocation7 + $0x200] ss:$16 sps:$4 sm:$0xff]   ;;  %v7264_v25 = vld [vmem:[#allocation7 + $0x224] ss:$16 sps:$4 sm:$0xff]  }
 0x2d6   :  { %v2047_v29 = vadd.f32 %v2035_v17, %v2021_v18  ;;  %v7246_v17 = vld [vmem:[#allocation7 + $0x5cc] ss:$16 sps:$4 sm:$0xff]   ;;  %v7259_v52 = vld [vmem:[#allocation7 + $0x428] ss:$16 sps:$4 sm:$0xff]   ;;  %v7262_v0 = vld [vmem:[#allocation7 + $0x220] ss:$16 sps:$4 sm:$0xff]  }
 0x2d7   :  { %v8614_v16 = vpack.c.bf16 %v2046_v13, %v2046_v13  ;;  %v7261_v12 = vld [vmem:[#allocation7 + $0x42c] ss:$16 sps:$4 sm:$0xff]   ;;  %v7270_v18 = vld [vmem:[#allocation7 + $0x244] ss:$16 sps:$4 sm:$0xff]   ;;  %v7265_v13 = vld [vmem:[#allocation7 + $0x448] ss:$16 sps:$4 sm:$0xff]  }
 0x2d8   :  { %v8616_v10 = vpack.c.bf16 %v2047_v29, %v2047_v29  ;;  %v7267_v54 = vld [vmem:[#allocation7 + $0x44c] ss:$16 sps:$4 sm:$0xff]   ;;  %v7268_v29 = vld [vmem:[#allocation7 + $0x240] ss:$16 sps:$4 sm:$0xff]  }
 0x2d9   :  { %v2257_v33 = vrot.slane %v8614_v16, 1 }
 0x2da   :  { %v2260_v36 = vrot.slane %v8616_v10, 1  ;;  %v4443_v24 = vrot.slane %v8616_v10, 3  ;;  %v5213_v31 = vrot.slane %v8616_v10, 4 }
 0x2db   :  { %v2258_v28 = vsel %vm223_vm0, %v2256_v15, %v2257_v33  ;;  %v7271_v15 = vld [vmem:[#allocation7 + $0x468] ss:$16 sps:$4 sm:$0xff]   ;;  %v7274_v33 = vld [vmem:[#allocation7 + $0x260] ss:$16 sps:$4 sm:$0xff]  }
 0x2dc   :  { %2777 = vmatprep.mubr.bf16.mxu1 %v2258_v28  ;;  %v8633_v21 = vsel %vm223_vm0, %v2259_v22, %v2260_v36  ;;  %v8636_v37 = vsel %vm4435_vm2, %v4442_v40, %v4443_v24  ;;  %v8639_v7 = vsel %vm5205_vm3, %v5212_v26, %v5213_v31  ;;  %v7282_v22 = vld [vmem:[#allocation7 + $0x284] ss:$16 sps:$4 sm:$0xff]   ;;  %v7277_v40 = vld [vmem:[#allocation7 + $0x488] ss:$16 sps:$4 sm:$0xff]   ;;  %v7285_v36 = vld [vmem:[#allocation7 + $0x4ac] ss:$16 sps:$4 sm:$0xff]  }
 0x2dd   :  { %2778 = vmatmul.mubr.bf16.vlgmr.msra.gmra.mrb[32].mxu1 %v8630_v38  ;;  %2821 = vmatmul.mubr.bf16.vlgmr.msra.gmra.mrb[16].mxu0 %v8633_v21  ;;  %v7288_v24 = vld [vmem:[#allocation7 + $0x2a4] ss:$16 sps:$4 sm:$0xff]   ;;  %v7283_v26 = vld [vmem:[#allocation7 + $0x4a8] ss:$16 sps:$4 sm:$0xff]   ;;  %v7286_v31 = vld [vmem:[#allocation7 + $0x2a0] ss:$16 sps:$4 sm:$0xff]  }
 0x2de   :  { %2832 = vmatpush1.bf16.msra.mxu1 %v7205_v34  ;;  %2875 = vmatpush1.bf16.msra.mxu0 %v7208_v35  ;;  %v7279_v34 = vld [vmem:[#allocation7 + $0x48c] ss:$16 sps:$4 sm:$0xff]   ;;  %v7280_v35 = vld [vmem:[#allocation7 + $0x280] ss:$16 sps:$4 sm:$0xff]  }
 0x2df   :  { %2863 = vmatprep.mubr.bf16.mxu1 %v2258_v28  ;;  %2833 = vmatprep.subr.bf16.mxu1 %v7213_v30  ;;  %v7291_v28 = vld [vmem:[#allocation7 + $0x4cc] ss:$16 sps:$4 sm:$0xff]   ;;  %v7294_v30 = vld [vmem:[#allocation7 + $0x2c4] ss:$16 sps:$4 sm:$0xff]  }
 0x2e0   :  { %2876 = vmatprep.subr.bf16.mxu0 %v7216_v23  ;;  %2906 = vmatprep.mubr.bf16.mxu0 %v8116_v1  ;;  %v7292_v23 = vld [vmem:[#allocation7 + $0x2c0] ss:$16 sps:$4 sm:$0xff]  }
 0x2e2   :  { %2834 = vmatpush1.bf16.msra.mxu1 %v7211_v39  ;;  %2877 = vmatpush1.bf16.msra.mxu0 %v7214_v41  ;;  %v7297_v39 = vld [vmem:[#allocation7 + $0x4ec] ss:$16 sps:$4 sm:$0xff]   ;;  %v7300_v41 = vld [vmem:[#allocation7 + $0x2e4] ss:$16 sps:$4 sm:$0xff]  }
 0x2e3   :  { %2835 = vmatprep.subr.bf16.mxu1 %v7219_v46  ;;  %2878 = vmatprep.subr.bf16.mxu0 %v7222_v45  ;;  %v7295_v46 = vld [vmem:[#allocation7 + $0x4e8] ss:$16 sps:$4 sm:$0xff]   ;;  %v7298_v45 = vld [vmem:[#allocation7 + $0x2e0] ss:$16 sps:$4 sm:$0xff]  }
 0x2e6   :  { %2836 = vmatpush1.bf16.msra.mxu1 %v7217_v47  ;;  %2879 = vmatpush1.bf16.msra.mxu0 %v7220_v42  ;;  %v7303_v47 = vld [vmem:[#allocation7 + $0x4] ss:$16 sps:$4 sm:$0xff]   ;;  %v7306_v42 = vld [vmem:[#allocation7 + $0x20c] ss:$16 sps:$4 sm:$0xff]  }
 0x2e7   :  { %2837 = vmatprep.subr.bf16.mxu1 %v7225_v51  ;;  %2880 = vmatprep.subr.bf16.mxu0 %v7228_v53  ;;  %v7301_v51 = vld [vmem:[#allocation7] ss:$16 sps:$4 sm:$0xff]   ;;  %v7304_v53 = vld [vmem:[#allocation7 + $0x208] ss:$16 sps:$4 sm:$0xff]  }
 0x2ea   :  { %2838 = vmatpush1.bf16.msra.mxu1 %v7223_v56  ;;  %2881 = vmatpush1.bf16.msra.mxu0 %v7226_v55  ;;  %v7309_v56 = vld [vmem:[#allocation7 + $0x24] ss:$16 sps:$4 sm:$0xff]   ;;  %v7312_v55 = vld [vmem:[#allocation7 + $0x22c] ss:$16 sps:$4 sm:$0xff]  }
 0x2eb   :  { %2839 = vmatprep.subr.bf16.mxu1 %v7231_v58  ;;  %2882 = vmatprep.subr.bf16.mxu0 %v7234_v59  ;;  %v7307_v58 = vld [vmem:[#allocation7 + $0x20] ss:$16 sps:$4 sm:$0xff]   ;;  %v7310_v59 = vld [vmem:[#allocation7 + $0x228] ss:$16 sps:$4 sm:$0xff]  }
 0x2ee   :  { %2840 = vmatpush1.bf16.msra.mxu1 %v7229_v63  ;;  %2883 = vmatpush1.bf16.msra.mxu0 %v7232_v60  ;;  %v7315_v63 = vld [vmem:[#allocation7 + $0x44] ss:$16 sps:$4 sm:$0xff]   ;;  %v7318_v60 = vld [vmem:[#allocation7 + $0x24c] ss:$16 sps:$4 sm:$0xff]  }
 0x2ef   :  { %2841 = vmatprep.subr.bf16.mxu1 %v7237_v61  ;;  %2884 = vmatprep.subr.bf16.mxu0 %v7240_v62  ;;  %v7313_v61 = vld [vmem:[#allocation7 + $0x40] ss:$16 sps:$4 sm:$0xff]   ;;  %v7316_v62 = vld [vmem:[#allocation7 + $0x248] ss:$16 sps:$4 sm:$0xff]  }
 0x2f2   :  { %2842 = vmatpush1.bf16.msra.mxu1 %v7235_v5  ;;  %2885 = vmatpush1.bf16.msra.mxu0 %v7238_v9  ;;  %v7324_v5 = vld [vmem:[#allocation7 + $0x26c] ss:$16 sps:$4 sm:$0xff]   ;;  %v7319_v9 = vld [vmem:[#allocation7 + $0x60] ss:$16 sps:$4 sm:$0xff]  }
 0x2f3   :  { %2843 = vmatprep.subr.bf16.mxu1 %v7243_v19  ;;  %2886 = vmatprep.subr.bf16.mxu0 %v7246_v17  ;;  %v7322_v19 = vld [vmem:[#allocation7 + $0x268] ss:$16 sps:$4 sm:$0xff]   ;;  %v7327_v17 = vld [vmem:[#allocation7 + $0x84] ss:$16 sps:$4 sm:$0xff]  }
 0x2f6   :  { %2844 = vmatpush1.bf16.msra.mxu1 %v7241_v3  ;;  %2887 = vmatpush1.bf16.msra.mxu0 %v7244_v11  ;;  %v7330_v3 = vld [vmem:[#allocation7 + $0x28c] ss:$16 sps:$4 sm:$0xff]   ;;  %v7325_v11 = vld [vmem:[#allocation7 + $0x80] ss:$16 sps:$4 sm:$0xff]  }
 0x2f7   :  { %2845 = vmatprep.subr.bf16.mxu1 %v7249_v2  ;;  %2888 = vmatprep.subr.bf16.mxu0 %v7252_v44  ;;  %v7328_v2 = vld [vmem:[#allocation7 + $0x288] ss:$16 sps:$4 sm:$0xff]   ;;  %v7333_v44 = vld [vmem:[#allocation7 + $0xa4] ss:$16 sps:$4 sm:$0xff]  }
 0x2fa   :  { %2846 = vmatpush1.bf16.msra.mxu1 %v7247_v57  ;;  %2889 = vmatpush1.bf16.msra.mxu0 %v7250_v6  ;;  %v7336_v57 = vld [vmem:[#allocation7 + $0x2ac] ss:$16 sps:$4 sm:$0xff]   ;;  %v7331_v6 = vld [vmem:[#allocation7 + $0xa0] ss:$16 sps:$4 sm:$0xff]  }
 0x2fb   :  { %2847 = vmatprep.subr.bf16.mxu1 %v7255_v8  ;;  %3440 = vmatprep.subr.bf16.mxu0 %v7258_v4  ;;  %v7334_v8 = vld [vmem:[#allocation7 + $0x2a8] ss:$16 sps:$4 sm:$0xff]   ;;  %v7339_v4 = vld [vmem:[#allocation7 + $0xc4] ss:$16 sps:$4 sm:$0xff]  }
 0x2fd   :  { %2907 = vmatmul.mubr.bf16.vlgmr.msra.gmra.mrb[20].mxu0 %v8633_v21  ;;  %v7289_v21 = vld [vmem:[#allocation7 + $0x4c8] ss:$16 sps:$4 sm:$0xff]  }
 0x2fe   :  { %2848 = vmatpush1.bf16.msra.mxu1 %v7253_v48  ;;  %3441 = vmatpush1.bf16.msra.mxu0 %v7256_v50  ;;  %v7342_v48 = vld [vmem:[#allocation7 + $0x2cc] ss:$16 sps:$4 sm:$0xff]   ;;  %v7337_v50 = vld [vmem:[#allocation7 + $0xc0] ss:$16 sps:$4 sm:$0xff]  }
 0x2ff   :  { %2849 = vmatprep.subr.bf16.mxu1 %v7261_v12  ;;  %3442 = vmatprep.subr.bf16.mxu0 %v7264_v25  ;;  %v7340_v12 = vld [vmem:[#allocation7 + $0x2c8] ss:$16 sps:$4 sm:$0xff]   ;;  %v7345_v25 = vld [vmem:[#allocation7 + $0xe4] ss:$16 sps:$4 sm:$0xff]  }
 0x300   :  { %3472 = vmatprep.mubr.bf16.mxu0 %v8116_v1 }
 0x302   :  { %2850 = vmatpush1.bf16.msra.mxu1 %v7259_v52  ;;  %3443 = vmatpush1.bf16.msra.mxu0 %v7262_v0  ;;  %v7348_v52 = vld [vmem:[#allocation7 + $0x2ec] ss:$16 sps:$4 sm:$0xff]   ;;  %v7343_v0 = vld [vmem:[#allocation7 + $0xe0] ss:$16 sps:$4 sm:$0xff]  }
 0x303   :  { %2851 = vmatprep.subr.bf16.mxu1 %v7267_v54  ;;  %3444 = vmatprep.subr.bf16.mxu0 %v7270_v18  ;;  %v7346_v54 = vld [vmem:[#allocation7 + $0x2e8] ss:$16 sps:$4 sm:$0xff]   ;;  %v7351_v18 = vld [vmem:[#allocation7 + $0x104] ss:$16 sps:$4 sm:$0xff]  }
 0x306   :  { %2852 = vmatpush1.bf16.msra.mxu1 %v7265_v13  ;;  %3445 = vmatpush1.bf16.msra.mxu0 %v7268_v29  ;;  %v7354_v13 = vld [vmem:[#allocation7 + $0x804] ss:$16 sps:$4 sm:$0xff]   ;;  %v7349_v29 = vld [vmem:[#allocation7 + $0x100] ss:$16 sps:$4 sm:$0xff]  }
 0x307   :  { %2853 = vmatprep.subr.bf16.mxu1 %v7273_v27  ;;  %3446 = vmatprep.subr.bf16.mxu0 %v7276_v20  ;;  %v7352_v27 = vld [vmem:[#allocation7 + $0x800] ss:$16 sps:$4 sm:$0xff]   ;;  %v7357_v20 = vld [vmem:[#allocation7 + $0x124] ss:$16 sps:$4 sm:$0xff]  }
 0x30a   :  { %2854 = vmatpush1.bf16.msra.mxu1 %v7271_v15  ;;  %3447 = vmatpush1.bf16.msra.mxu0 %v7274_v33  ;;  %v7360_v15 = vld [vmem:[#allocation7 + $0x824] ss:$16 sps:$4 sm:$0xff]   ;;  %v7355_v33 = vld [vmem:[#allocation7 + $0x120] ss:$16 sps:$4 sm:$0xff]  }
 0x30b   :  { %2855 = vmatprep.subr.bf16.mxu1 %v7279_v34  ;;  %3448 = vmatprep.subr.bf16.mxu0 %v7282_v22  ;;  %v7358_v34 = vld [vmem:[#allocation7 + $0x820] ss:$16 sps:$4 sm:$0xff]   ;;  %v7363_v22 = vld [vmem:[#allocation7 + $0x144] ss:$16 sps:$4 sm:$0xff]  }
 0x30e   :  { %2856 = vmatpush1.bf16.msra.mxu1 %v7277_v40  ;;  %3449 = vmatpush1.bf16.msra.mxu0 %v7280_v35  ;;  %v7366_v40 = vld [vmem:[#allocation7 + $0x844] ss:$16 sps:$4 sm:$0xff]   ;;  %v7361_v35 = vld [vmem:[#allocation7 + $0x140] ss:$16 sps:$4 sm:$0xff]  }
 0x30f   :  { %2857 = vmatprep.subr.bf16.mxu1 %v7285_v36  ;;  %3450 = vmatprep.subr.bf16.mxu0 %v7288_v24  ;;  %v7364_v36 = vld [vmem:[#allocation7 + $0x840] ss:$16 sps:$4 sm:$0xff]   ;;  %v7369_v24 = vld [vmem:[#allocation7 + $0x164] ss:$16 sps:$4 sm:$0xff]  }
 0x312   :  { %2858 = vmatpush1.bf16.msra.mxu1 %v7283_v26  ;;  %3451 = vmatpush1.bf16.msra.mxu0 %v7286_v31  ;;  %v7372_v26 = vld [vmem:[#allocation7 + $0x864] ss:$16 sps:$4 sm:$0xff]   ;;  %v7367_v31 = vld [vmem:[#allocation7 + $0x160] ss:$16 sps:$4 sm:$0xff]  }
 0x313   :  { %2859 = vmatprep.subr.bf16.mxu1 %v7291_v28  ;;  %3452 = vmatprep.subr.bf16.mxu0 %v7294_v30  ;;  %v7370_v28 = vld [vmem:[#allocation7 + $0x860] ss:$16 sps:$4 sm:$0xff]   ;;  %v7375_v30 = vld [vmem:[#allocation7 + $0x184] ss:$16 sps:$4 sm:$0xff]  }
 0x316   :  { %2860 = vmatpush1.bf16.msra.mxu1 %v7289_v21  ;;  %3453 = vmatpush1.bf16.msra.mxu0 %v7292_v23  ;;  %v7378_v21 = vld [vmem:[#allocation7 + $0x884] ss:$16 sps:$4 sm:$0xff]   ;;  %v7373_v23 = vld [vmem:[#allocation7 + $0x180] ss:$16 sps:$4 sm:$0xff]  }
 0x317   :  { %2861 = vmatprep.subr.bf16.mxu1 %v7297_v39  ;;  %3454 = vmatprep.subr.bf16.mxu0 %v7300_v41  ;;  %v7376_v39 = vld [vmem:[#allocation7 + $0x880] ss:$16 sps:$4 sm:$0xff]   ;;  %v7381_v41 = vld [vmem:[#allocation7 + $0x1a4] ss:$16 sps:$4 sm:$0xff]  }
 0x31a   :  { %2862 = vmatpush1.bf16.msra.mxu1 %v7295_v46  ;;  %3455 = vmatpush1.bf16.msra.mxu0 %v7298_v45  ;;  %v7384_v46 = vld [vmem:[#allocation7 + $0x8a4] ss:$16 sps:$4 sm:$0xff]   ;;  %v7379_v45 = vld [vmem:[#allocation7 + $0x1a0] ss:$16 sps:$4 sm:$0xff]  }
 0x31b   :  { %3397 = vmatprep.subr.bf16.mxu1 %v7303_v47  ;;  %3526 = vmatprep.subr.bf16.mxu0 %v7306_v42  ;;  %v7382_v47 = vld [vmem:[#allocation7 + $0x8a0] ss:$16 sps:$4 sm:$0xff]   ;;  %v7387_v42 = vld [vmem:[#allocation7 + $0x1c4] ss:$16 sps:$4 sm:$0xff]  }
 0x31d   :  { %2864 = vmatmul.mubr.bf16.vlgmr.msra.gmra.mrb[36].mxu1 %v8630_v38  ;;  %3473 = vmatmul.mubr.bf16.vlgmr.msra.gmra.mrb[24].mxu0 %v8604_v14  ;;  %v7321_v38 = vld [vmem:[#allocation7 + $0x64] ss:$16 sps:$4 sm:$0xff]  }
 0x31e   :  { %3398 = vmatpush1.bf16.msra.mxu1 %v7301_v51  ;;  %3429 = vmatprep.mubr.bf16.mxu1 %v8602_v49  ;;  %v7390_v51 = vld [vmem:[#allocation7 + $0x8c4] ss:$16 sps:$4 sm:$0xff]  }
 0x31f   :  { %3527 = vmatpush1.bf16.msra.mxu0 %v7304_v53  ;;  %3399 = vmatprep.subr.bf16.mxu1 %v7309_v56  ;;  %v7385_v53 = vld [vmem:[#allocation7 + $0x1c0] ss:$16 sps:$4 sm:$0xff]  }
 0x320   :  { %3528 = vmatprep.subr.bf16.mxu0 %v7312_v55  ;;  %3558 = vmatprep.mubr.bf16.mxu0 %v8116_v1  ;;  %v7388_v56 = vld [vmem:[#allocation7 + $0x8c0] ss:$16 sps:$4 sm:$0xff]   ;;  %v7393_v55 = vld [vmem:[#allocation7 + $0x1e4] ss:$16 sps:$4 sm:$0xff]  }
 0x322   :  { %3400 = vmatpush1.bf16.msra.mxu1 %v7307_v58  ;;  %v7396_v58 = vld [vmem:[#allocation7 + $0x8e4] ss:$16 sps:$4 sm:$0xff]  }
 0x323   :  { %3529 = vmatpush1.bf16.msra.mxu0 %v7310_v59  ;;  %3401 = vmatprep.subr.bf16.mxu1 %v7315_v63  ;;  %v7391_v59 = vld [vmem:[#allocation7 + $0x1e0] ss:$16 sps:$4 sm:$0xff]  }
 0x324   :  { %3530 = vmatprep.subr.bf16.mxu0 %v7318_v60  ;;  %v7394_v63 = vld [vmem:[#allocation7 + $0x8e0] ss:$16 sps:$4 sm:$0xff]   ;;  %v7399_v60 = vld [vmem:[#allocation7 + $0xc] ss:$16 sps:$4 sm:$0xff]  }
 0x326   :  { %3402 = vmatpush1.bf16.msra.mxu1 %v7313_v61  ;;  %v7402_v61 = vld [vmem:[#allocation7 + $0x80c] ss:$16 sps:$4 sm:$0xff]  }
 0x327   :  { %3531 = vmatpush1.bf16.msra.mxu0 %v7316_v62  ;;  %3403 = vmatprep.subr.bf16.mxu1 %v7321_v38  ;;  %v3673_v62 = vrot.slane %v8616_v10, 2  ;;  %v7397_v38 = vld [vmem:[#allocation7 + $0x8] ss:$16 sps:$4 sm:$0xff]  }
 0x328   :  { %3532 = vmatprep.subr.bf16.mxu0 %v7324_v5  ;;  %v3672_v5 = vrot.slane %v8604_v14, 2  ;;  %v7406_v10 = vld [vmem:[#allocation7 + $0x828] ss:$16 sps:$4 sm:$0xff]  }
 0x32a   :  { %3404 = vmatpush1.bf16.msra.mxu1 %v7319_v9  ;;  %v7400_v9 = vld [vmem:[#allocation7 + $0x808] ss:$16 sps:$4 sm:$0xff]  }
 0x32b   :  { %3533 = vmatpush1.bf16.msra.mxu0 %v7322_v19  ;;  %3405 = vmatprep.subr.bf16.mxu1 %v7327_v17  ;;  %v7405_v19 = vld [vmem:[#allocation7 + $0x2c] ss:$16 sps:$4 sm:$0xff]  }
 0x32c   :  { %3534 = vmatprep.subr.bf16.mxu0 %v7330_v3  ;;  %v7408_v17 = vld [vmem:[#allocation7 + $0x82c] ss:$16 sps:$4 sm:$0xff]   ;;  %v8656_v3 = vsel %vm1827_vm1, %v3672_v5, %v3673_v62  ;;  %v7480_v62 = vld [vmem:[#allocation7 + $0x9a4] ss:$16 sps:$4 sm:$0xff]   ;;  %v7478_v5 = vld [vmem:[#allocation7 + $0x9a0] ss:$16 sps:$4 sm:$0xff]  }
 0x32e   :  { %3406 = vmatpush1.bf16.msra.mxu1 %v7325_v11  ;;  %v7403_v11 = vld [vmem:[#allocation7 + $0x28] ss:$16 sps:$4 sm:$0xff]  }
 0x32f   :  { %3535 = vmatpush1.bf16.msra.mxu0 %v7328_v2  ;;  %3407 = vmatprep.subr.bf16.mxu1 %v7333_v44  ;;  %v7411_v2 = vld [vmem:[#allocation7 + $0x4c] ss:$16 sps:$4 sm:$0xff]   ;;  %v7409_v44 = vld [vmem:[#allocation7 + $0x48] ss:$16 sps:$4 sm:$0xff]  }
 0x330   :  { %3536 = vmatprep.subr.bf16.mxu0 %v7336_v57  ;;  %v7412_v57 = vld [vmem:[#allocation7 + $0x848] ss:$16 sps:$4 sm:$0xff]  }
 0x332   :  { %3408 = vmatpush1.bf16.msra.mxu1 %v7331_v6  ;;  %v7417_v6 = vld [vmem:[#allocation7 + $0x6c] ss:$16 sps:$4 sm:$0xff]  }
 0x333   :  { %3537 = vmatpush1.bf16.msra.mxu0 %v7334_v8  ;;  %3409 = vmatprep.subr.bf16.mxu1 %v7339_v4  ;;  %v7420_v8 = vld [vmem:[#allocation7 + $0x86c] ss:$16 sps:$4 sm:$0xff]   ;;  %v7415_v4 = vld [vmem:[#allocation7 + $0x68] ss:$16 sps:$4 sm:$0xff]  }
 0x334   :  { %3538 = vmatprep.subr.bf16.mxu0 %v7342_v48  ;;  %v7418_v48 = vld [vmem:[#allocation7 + $0x868] ss:$16 sps:$4 sm:$0xff]  }
 0x336   :  { %3410 = vmatpush1.bf16.msra.mxu1 %v7337_v50  ;;  %v7423_v50 = vld [vmem:[#allocation7 + $0x8c] ss:$16 sps:$4 sm:$0xff]  }
 0x337   :  { %3539 = vmatpush1.bf16.msra.mxu0 %v7340_v12  ;;  %3411 = vmatprep.subr.bf16.mxu1 %v7345_v25  ;;  %v7426_v12 = vld [vmem:[#allocation7 + $0x88c] ss:$16 sps:$4 sm:$0xff]   ;;  %v7421_v25 = vld [vmem:[#allocation7 + $0x88] ss:$16 sps:$4 sm:$0xff]  }
 0x338   :  { %3540 = vmatprep.subr.bf16.mxu0 %v7348_v52  ;;  %v7424_v52 = vld [vmem:[#allocation7 + $0x888] ss:$16 sps:$4 sm:$0xff]  }
 0x33a   :  { %3412 = vmatpush1.bf16.msra.mxu1 %v7343_v0  ;;  %v7429_v0 = vld [vmem:[#allocation7 + $0xac] ss:$16 sps:$4 sm:$0xff]  }
 0x33b   :  { %3541 = vmatpush1.bf16.msra.mxu0 %v7346_v54  ;;  %3413 = vmatprep.subr.bf16.mxu1 %v7351_v18  ;;  %v7432_v54 = vld [vmem:[#allocation7 + $0x8ac] ss:$16 sps:$4 sm:$0xff]   ;;  %v7427_v18 = vld [vmem:[#allocation7 + $0xa8] ss:$16 sps:$4 sm:$0xff]  }
 0x33c   :  { %4201 = vmatprep.subr.bf16.mxu0 %v7354_v13  ;;  %v7430_v13 = vld [vmem:[#allocation7 + $0x8a8] ss:$16 sps:$4 sm:$0xff]  }
 0x33e   :  { %3559 = vmatmul.mubr.bf16.vlgmr.msra.gmra.mrb[28].mxu0 %v8604_v14  ;;  %3414 = vmatpush1.bf16.msra.mxu1 %v7349_v29  ;;  %v7414_v14 = vld [vmem:[#allocation7 + $0x84c] ss:$16 sps:$4 sm:$0xff]  }
 0x33f   :  { %4202 = vmatpush1.bf16.msra.mxu0 %v7352_v27  ;;  %3415 = vmatprep.subr.bf16.mxu1 %v7357_v20  ;;  %v7435_v29 = vld [vmem:[#allocation7 + $0xcc] ss:$16 sps:$4 sm:$0xff]   ;;  %v7433_v20 = vld [vmem:[#allocation7 + $0xc8] ss:$16 sps:$4 sm:$0xff]  }
 0x340   :  { %4203 = vmatprep.subr.bf16.mxu0 %v7360_v15  ;;  %4233 = vmatprep.mubr.bf16.mxu0 %v8116_v1  ;;  %v7438_v27 = vld [vmem:[#allocation7 + $0x8cc] ss:$16 sps:$4 sm:$0xff]   ;;  %v7436_v15 = vld [vmem:[#allocation7 + $0x8c8] ss:$16 sps:$4 sm:$0xff]  }
 0x342   :  { %3416 = vmatpush1.bf16.msra.mxu1 %v7355_v33  ;;  %v7441_v33 = vld [vmem:[#allocation7 + $0xec] ss:$16 sps:$4 sm:$0xff]  }
 0x343   :  { %4204 = vmatpush1.bf16.msra.mxu0 %v7358_v34  ;;  %3417 = vmatprep.subr.bf16.mxu1 %v7363_v22  ;;  %v7444_v34 = vld [vmem:[#allocation7 + $0x8ec] ss:$16 sps:$4 sm:$0xff]   ;;  %v7439_v22 = vld [vmem:[#allocation7 + $0xe8] ss:$16 sps:$4 sm:$0xff]  }
 0x344   :  { %4205 = vmatprep.subr.bf16.mxu0 %v7366_v40  ;;  %v7442_v40 = vld [vmem:[#allocation7 + $0x8e8] ss:$16 sps:$4 sm:$0xff]  }
 0x346   :  { %3418 = vmatpush1.bf16.msra.mxu1 %v7361_v35  ;;  %v7447_v35 = vld [vmem:[#allocation7 + $0x10c] ss:$16 sps:$4 sm:$0xff]  }
 0x347   :  { %4206 = vmatpush1.bf16.msra.mxu0 %v7364_v36  ;;  %3419 = vmatprep.subr.bf16.mxu1 %v7369_v24  ;;  %v7450_v36 = vld [vmem:[#allocation7 + $0x904] ss:$16 sps:$4 sm:$0xff]   ;;  %v7445_v24 = vld [vmem:[#allocation7 + $0x108] ss:$16 sps:$4 sm:$0xff]  }
 0x348   :  { %4207 = vmatprep.subr.bf16.mxu0 %v7372_v26  ;;  %v4440_v26 = vrot.slane %v8614_v16, 3 }
 0x34a   :  { %3420 = vmatpush1.bf16.msra.mxu1 %v7367_v31  ;;  %v7448_v31 = vld [vmem:[#allocation7 + $0x900] ss:$16 sps:$4 sm:$0xff]  }
 0x34b   :  { %4208 = vmatpush1.bf16.msra.mxu0 %v7370_v28  ;;  %3421 = vmatprep.subr.bf16.mxu1 %v7375_v30  ;;  %v4439_v28 = vrot.slane %v8602_v49, 3  ;;  %v7453_v30 = vld [vmem:[#allocation7 + $0x12c] ss:$16 sps:$4 sm:$0xff]  }
 0x34c   :  { %4209 = vmatprep.subr.bf16.mxu0 %v7378_v21  ;;  %v7456_v21 = vld [vmem:[#allocation7 + $0x924] ss:$16 sps:$4 sm:$0xff]  }
 0x34e   :  { %3422 = vmatpush1.bf16.msra.mxu1 %v7373_v23  ;;  %v8665_v23 = vsel %vm4435_vm2, %v4439_v28, %v4440_v26  ;;  %v7523_v26 = vld [vmem:[#allocation7 + $0x6a0] ss:$16 sps:$4 sm:$0xff]   ;;  %v7531_v28 = vld [vmem:[#allocation7 + $0x6c4] ss:$16 sps:$4 sm:$0xff]  }
 0x34f   :  { %4210 = vmatpush1.bf16.msra.mxu0 %v7376_v39  ;;  %3423 = vmatprep.subr.bf16.mxu1 %v7381_v41  ;;  %v7451_v39 = vld [vmem:[#allocation7 + $0x128] ss:$16 sps:$4 sm:$0xff]   ;;  %v7454_v41 = vld [vmem:[#allocation7 + $0x920] ss:$16 sps:$4 sm:$0xff]  }
 0x350   :  { %4211 = vmatprep.subr.bf16.mxu0 %v7384_v46  ;;  %v7459_v46 = vld [vmem:[#allocation7 + $0x14c] ss:$16 sps:$4 sm:$0xff]  }
 0x352   :  { %3424 = vmatpush1.bf16.msra.mxu1 %v7379_v45  ;;  %v7462_v45 = vld [vmem:[#allocation7 + $0x944] ss:$16 sps:$4 sm:$0xff]  }
 0x353   :  { %4212 = vmatpush1.bf16.msra.mxu0 %v7382_v47  ;;  %3425 = vmatprep.subr.bf16.mxu1 %v7387_v42  ;;  %v7457_v47 = vld [vmem:[#allocation7 + $0x148] ss:$16 sps:$4 sm:$0xff]   ;;  %v7460_v42 = vld [vmem:[#allocation7 + $0x940] ss:$16 sps:$4 sm:$0xff]  }
 0x354   :  { %4213 = vmatprep.subr.bf16.mxu0 %v7390_v51  ;;  %v7465_v51 = vld [vmem:[#allocation7 + $0x16c] ss:$16 sps:$4 sm:$0xff]  }
 0x356   :  { %3426 = vmatpush1.bf16.msra.mxu1 %v7385_v53  ;;  %v7468_v53 = vld [vmem:[#allocation7 + $0x964] ss:$16 sps:$4 sm:$0xff]  }
 0x357   :  { %4214 = vmatpush1.bf16.msra.mxu0 %v7388_v56  ;;  %3427 = vmatprep.subr.bf16.mxu1 %v7393_v55  ;;  %v7463_v56 = vld [vmem:[#allocation7 + $0x168] ss:$16 sps:$4 sm:$0xff]   ;;  %v7466_v55 = vld [vmem:[#allocation7 + $0x960] ss:$16 sps:$4 sm:$0xff]  }
 0x358   :  { %4215 = vmatprep.subr.bf16.mxu0 %v7396_v58  ;;  %v7471_v58 = vld [vmem:[#allocation7 + $0x18c] ss:$16 sps:$4 sm:$0xff]  }
 0x35a   :  { %3428 = vmatpush1.bf16.msra.mxu1 %v7391_v59  ;;  %v7474_v59 = vld [vmem:[#allocation7 + $0x984] ss:$16 sps:$4 sm:$0xff]  }
 0x35b   :  { %4216 = vmatpush1.bf16.msra.mxu0 %v7394_v63  ;;  %3483 = vmatprep.subr.bf16.mxu1 %v7399_v60  ;;  %v7469_v63 = vld [vmem:[#allocation7 + $0x188] ss:$16 sps:$4 sm:$0xff]   ;;  %v7472_v60 = vld [vmem:[#allocation7 + $0x980] ss:$16 sps:$4 sm:$0xff]  }
 0x35c   :  { %4287 = vmatprep.subr.bf16.mxu0 %v7402_v61  ;;  %v7477_v61 = vld [vmem:[#allocation7 + $0x1ac] ss:$16 sps:$4 sm:$0xff]  }
 0x35d   :  { %3430 = vmatmul.mubr.bf16.vlgmr.msra.gmra.mrb[40].mxu1 %v8585_v43 }
 0x35e   :  { %4234 = vmatmul.mubr.bf16.vlgmr.msra.gmra.mrb[32].mxu0 %v8656_v3  ;;  %3484 = vmatpush1.bf16.msra.mxu1 %v7397_v38  ;;  %v7475_v38 = vld [vmem:[#allocation7 + $0x1a8] ss:$16 sps:$4 sm:$0xff]  }
 0x35f   :  { %3515 = vmatprep.mubr.bf16.mxu1 %v8602_v49  ;;  %4288 = vmatpush1.bf16.msra.mxu0 %v7400_v9  ;;  %v7483_v9 = vld [vmem:[#allocation7 + $0x1cc] ss:$16 sps:$4 sm:$0xff]  }
 0x360   :  { %3485 = vmatprep.subr.bf16.mxu1 %v7405_v19  ;;  %4289 = vmatprep.subr.bf16.mxu0 %v7408_v17  ;;  %v7486_v19 = vld [vmem:[#allocation7 + $0x9c4] ss:$16 sps:$4 sm:$0xff]   ;;  %v7481_v17 = vld [vmem:[#allocation7 + $0x1c8] ss:$16 sps:$4 sm:$0xff]  }
 0x361   :  { %4319 = vmatprep.mubr.bf16.mxu0 %v8116_v1 }
 0x362   :  { %3486 = vmatpush1.bf16.msra.mxu1 %v7403_v11  ;;  %v7489_v11 = vld [vmem:[#allocation7 + $0x1ec] ss:$16 sps:$4 sm:$0xff]  }
 0x363   :  { %4290 = vmatpush1.bf16.msra.mxu0 %v7406_v10  ;;  %3487 = vmatprep.subr.bf16.mxu1 %v7411_v2  ;;  %v7492_v10 = vld [vmem:[#allocation7 + $0x9e4] ss:$16 sps:$4 sm:$0xff]   ;;  %v7487_v2 = vld [vmem:[#allocation7 + $0x1e8] ss:$16 sps:$4 sm:$0xff]  }
 0x364   :  { %4291 = vmatprep.subr.bf16.mxu0 %v7414_v14  ;;  %v7490_v14 = vld [vmem:[#allocation7 + $0x9e0] ss:$16 sps:$4 sm:$0xff]  }
 0x366   :  { %3488 = vmatpush1.bf16.msra.mxu1 %v7409_v44  ;;  %v7495_v44 = vld [vmem:[#allocation7 + $0x604] ss:$16 sps:$4 sm:$0xff]  }
 0x367   :  { %4292 = vmatpush1.bf16.msra.mxu0 %v7412_v57  ;;  %3489 = vmatprep.subr.bf16.mxu1 %v7417_v6  ;;  %v7498_v57 = vld [vmem:[#allocation7 + $0xa04] ss:$16 sps:$4 sm:$0xff]   ;;  %v3670_v6 = vrot.slane %v8614_v16, 2 }
 0x368   :  { %4293 = vmatprep.subr.bf16.mxu0 %v7420_v8  ;;  %v7493_v8 = vld [vmem:[#allocation7 + $0x600] ss:$16 sps:$4 sm:$0xff]  }
 0x36a   :  { %3490 = vmatpush1.bf16.msra.mxu1 %v7415_v4  ;;  %v7496_v4 = vld [vmem:[#allocation7 + $0xa00] ss:$16 sps:$4 sm:$0xff]  }
 0x36b   :  { %4294 = vmatpush1.bf16.msra.mxu0 %v7418_v48  ;;  %3491 = vmatprep.subr.bf16.mxu1 %v7423_v50  ;;  %v3669_v48 = vrot.slane %v8602_v49, 2  ;;  %v7501_v50 = vld [vmem:[#allocation7 + $0x624] ss:$16 sps:$4 sm:$0xff]  }
 0x36c   :  { %4295 = vmatprep.subr.bf16.mxu0 %v7426_v12  ;;  %v7504_v12 = vld [vmem:[#allocation7 + $0xa24] ss:$16 sps:$4 sm:$0xff]  }
 0x36e   :  { %3492 = vmatpush1.bf16.msra.mxu1 %v7421_v25  ;;  %v8672_v25 = vsel %vm1827_vm1, %v3669_v48, %v3670_v6  ;;  %v7555_v6 = vld [vmem:[#allocation7 + $0x744] ss:$16 sps:$4 sm:$0xff]   ;;  %v7556_v48 = vld [vmem:[#allocation7 + $0xb40] ss:$16 sps:$4 sm:$0xff]  }
 0x36f   :  { %4296 = vmatpush1.bf16.msra.mxu0 %v7424_v52  ;;  %3493 = vmatprep.subr.bf16.mxu1 %v7429_v0  ;;  %v7499_v52 = vld [vmem:[#allocation7 + $0x620] ss:$16 sps:$4 sm:$0xff]  }
 0x370   :  { %4297 = vmatprep.subr.bf16.mxu0 %v7432_v54  ;;  %v7502_v0 = vld [vmem:[#allocation7 + $0xa20] ss:$16 sps:$4 sm:$0xff]   ;;  %v7507_v54 = vld [vmem:[#allocation7 + $0x644] ss:$16 sps:$4 sm:$0xff]  }
 0x372   :  { %3494 = vmatpush1.bf16.msra.mxu1 %v7427_v18  ;;  %v7510_v18 = vld [vmem:[#allocation7 + $0xa44] ss:$16 sps:$4 sm:$0xff]  }
 0x373   :  { %4298 = vmatpush1.bf16.msra.mxu0 %v7430_v13  ;;  %3495 = vmatprep.subr.bf16.mxu1 %v7435_v29  ;;  %v7505_v13 = vld [vmem:[#allocation7 + $0x640] ss:$16 sps:$4 sm:$0xff]  }
 0x374   :  { %4299 = vmatprep.subr.bf16.mxu0 %v7438_v27  ;;  %v7508_v29 = vld [vmem:[#allocation7 + $0xa40] ss:$16 sps:$4 sm:$0xff]   ;;  %v7513_v27 = vld [vmem:[#allocation7 + $0x664] ss:$16 sps:$4 sm:$0xff]  }
 0x376   :  { %3496 = vmatpush1.bf16.msra.mxu1 %v7433_v20  ;;  %v7516_v20 = vld [vmem:[#allocation7 + $0xa64] ss:$16 sps:$4 sm:$0xff]  }
 0x377   :  { %4300 = vmatpush1.bf16.msra.mxu0 %v7436_v15  ;;  %3497 = vmatprep.subr.bf16.mxu1 %v7441_v33  ;;  %v7511_v15 = vld [vmem:[#allocation7 + $0x660] ss:$16 sps:$4 sm:$0xff]  }
 0x378   :  { %4301 = vmatprep.subr.bf16.mxu0 %v7444_v34  ;;  %v7514_v33 = vld [vmem:[#allocation7 + $0xa60] ss:$16 sps:$4 sm:$0xff]   ;;  %v7519_v34 = vld [vmem:[#allocation7 + $0x684] ss:$16 sps:$4 sm:$0xff]  }
 0x37a   :  { %3498 = vmatpush1.bf16.msra.mxu1 %v7439_v22  ;;  %v7522_v22 = vld [vmem:[#allocation7 + $0xa84] ss:$16 sps:$4 sm:$0xff]  }
 0x37b   :  { %4302 = vmatpush1.bf16.msra.mxu0 %v7442_v40  ;;  %3499 = vmatprep.subr.bf16.mxu1 %v7447_v35  ;;  %v7517_v40 = vld [vmem:[#allocation7 + $0x680] ss:$16 sps:$4 sm:$0xff]  }
 0x37c   :  { %4928 = vmatprep.subr.bf16.mxu0 %v7450_v36  ;;  %v7520_v35 = vld [vmem:[#allocation7 + $0xa80] ss:$16 sps:$4 sm:$0xff]   ;;  %v7525_v36 = vld [vmem:[#allocation7 + $0x6a4] ss:$16 sps:$4 sm:$0xff]  }
 0x37e   :  { %4320 = vmatmul.mubr.bf16.vlgmr.msra.gmra.mrb[36].mxu0 %v8656_v3  ;;  %3500 = vmatpush1.bf16.msra.mxu1 %v7445_v24  ;;  %v7484_v3 = vld [vmem:[#allocation7 + $0x9c0] ss:$16 sps:$4 sm:$0xff]   ;;  %v7528_v24 = vld [vmem:[#allocation7 + $0xaa4] ss:$16 sps:$4 sm:$0xff]  }
 0x37f   :  { %4929 = vmatpush1.bf16.msra.mxu0 %v7448_v31  ;;  %4960 = vmatprep.mubr.bf16.mxu0 %v8665_v23  ;;  %v7526_v31 = vld [vmem:[#allocation7 + $0xaa0] ss:$16 sps:$4 sm:$0xff]  }
 0x380   :  { %3501 = vmatprep.subr.bf16.mxu1 %v7453_v30  ;;  %4930 = vmatprep.subr.bf16.mxu0 %v7456_v21 }
 0x382   :  { %3502 = vmatpush1.bf16.msra.mxu1 %v7451_v39  ;;  %v7534_v39 = vld [vmem:[#allocation7 + $0xac4] ss:$16 sps:$4 sm:$0xff]  }
 0x383   :  { %4931 = vmatpush1.bf16.msra.mxu0 %v7454_v41  ;;  %3503 = vmatprep.subr.bf16.mxu1 %v7459_v46 }
 0x384   :  { %4932 = vmatprep.subr.bf16.mxu0 %v7462_v45 }
 0x386   :  { %3504 = vmatpush1.bf16.msra.mxu1 %v7457_v47 }
 0x387   :  { %4933 = vmatpush1.bf16.msra.mxu0 %v7460_v42  ;;  %3505 = vmatprep.subr.bf16.mxu1 %v7465_v51 }
 0x388   :  { %4934 = vmatprep.subr.bf16.mxu0 %v7468_v53  ;;  %v7529_v53 = vld [vmem:[#allocation7 + $0x6c0] ss:$16 sps:$4 sm:$0xff]  }
 0x38a   :  { %3506 = vmatpush1.bf16.msra.mxu1 %v7463_v56 }
 0x38b   :  { %4935 = vmatpush1.bf16.msra.mxu0 %v7466_v55  ;;  %3507 = vmatprep.subr.bf16.mxu1 %v7471_v58 }
 0x38c   :  { %4936 = vmatprep.subr.bf16.mxu0 %v7474_v59  ;;  %v7532_v59 = vld [vmem:[#allocation7 + $0xac0] ss:$16 sps:$4 sm:$0xff]  }
 0x38e   :  { %3508 = vmatpush1.bf16.msra.mxu1 %v7469_v63  ;;  %v7537_v63 = vld [vmem:[#allocation7 + $0x6e4] ss:$16 sps:$4 sm:$0xff]  }
 0x38f   :  { %4937 = vmatpush1.bf16.msra.mxu0 %v7472_v60  ;;  %3509 = vmatprep.subr.bf16.mxu1 %v7477_v61  ;;  %v7540_v61 = vld [vmem:[#allocation7 + $0xae4] ss:$16 sps:$4 sm:$0xff]  }
 0x390   :  { %4938 = vmatprep.subr.bf16.mxu0 %v7480_v62  ;;  %v7535_v62 = vld [vmem:[#allocation7 + $0x6e0] ss:$16 sps:$4 sm:$0xff]  }
 0x392   :  { %3510 = vmatpush1.bf16.msra.mxu1 %v7475_v38  ;;  %v7538_v38 = vld [vmem:[#allocation7 + $0xae0] ss:$16 sps:$4 sm:$0xff]  }
 0x393   :  { %4939 = vmatpush1.bf16.msra.mxu0 %v7478_v5  ;;  %3511 = vmatprep.subr.bf16.mxu1 %v7483_v9  ;;  %v7543_v5 = vld [vmem:[#allocation7 + $0x704] ss:$16 sps:$4 sm:$0xff]  }
 0x394   :  { %4940 = vmatprep.subr.bf16.mxu0 %v7486_v19  ;;  %v7546_v9 = vld [vmem:[#allocation7 + $0xb04] ss:$16 sps:$4 sm:$0xff]   ;;  %v4437_v19 = vrot.slane %v8609_v32, 3 }
 0x396   :  { %3512 = vmatpush1.bf16.msra.mxu1 %v7481_v17  ;;  %v7541_v17 = vld [vmem:[#allocation7 + $0x700] ss:$16 sps:$4 sm:$0xff]  }
 0x397   :  { %4941 = vmatpush1.bf16.msra.mxu0 %v7484_v3  ;;  %3513 = vmatprep.subr.bf16.mxu1 %v7489_v11  ;;  %v4436_v3 = vrot.slane %v8585_v43, 3  ;;  %v7544_v11 = vld [vmem:[#allocation7 + $0xb00] ss:$16 sps:$4 sm:$0xff]  }
 0x398   :  { %4942 = vmatprep.subr.bf16.mxu0 %v7492_v10  ;;  %v7549_v10 = vld [vmem:[#allocation7 + $0x724] ss:$16 sps:$4 sm:$0xff]  }
 0x39a   :  { %3514 = vmatpush1.bf16.msra.mxu1 %v7487_v2  ;;  %v7552_v2 = vld [vmem:[#allocation7 + $0xb24] ss:$16 sps:$4 sm:$0xff]  }
 0x39b   :  { %4943 = vmatpush1.bf16.msra.mxu0 %v7490_v14  ;;  %4158 = vmatprep.subr.bf16.mxu1 %v7495_v44  ;;  %v8686_v14 = vsel %vm4435_vm2, %v4436_v3, %v4437_v19  ;;  %v7547_v44 = vld [vmem:[#allocation7 + $0x720] ss:$16 sps:$4 sm:$0xff]   ;;  %v7604_v19 = vld [vmem:[#allocation7 + $0x948] ss:$16 sps:$4 sm:$0xff]   ;;  %v7612_v3 = vld [vmem:[#allocation7 + $0x96c] ss:$16 sps:$4 sm:$0xff]  }
 0x39c   :  { %4944 = vmatprep.subr.bf16.mxu0 %v7498_v57  ;;  %v7550_v57 = vld [vmem:[#allocation7 + $0xb20] ss:$16 sps:$4 sm:$0xff]  }
 0x39d   :  { %3516 = vmatmul.mubr.bf16.vlgmr.msra.gmra.mrb[44].mxu1 %v8585_v43 }
 0x39e   :  { %4159 = vmatpush1.bf16.msra.mxu1 %v7493_v8  ;;  %4190 = vmatprep.mubr.bf16.mxu1 %v8672_v25  ;;  %v7558_v8 = vld [vmem:[#allocation7 + $0xb44] ss:$16 sps:$4 sm:$0xff]  }
 0x39f   :  { %4945 = vmatpush1.bf16.msra.mxu0 %v7496_v4  ;;  %4160 = vmatprep.subr.bf16.mxu1 %v7501_v50  ;;  %v7553_v4 = vld [vmem:[#allocation7 + $0x740] ss:$16 sps:$4 sm:$0xff]   ;;  %v7561_v50 = vld [vmem:[#allocation7 + $0x764] ss:$16 sps:$4 sm:$0xff]  }
 0x3a0   :  { %4946 = vmatprep.subr.bf16.mxu0 %v7504_v12  ;;  %v7564_v12 = vld [vmem:[#allocation7 + $0xb64] ss:$16 sps:$4 sm:$0xff]  }
 0x3a2   :  { %4161 = vmatpush1.bf16.msra.mxu1 %v7499_v52  ;;  %v7559_v52 = vld [vmem:[#allocation7 + $0x760] ss:$16 sps:$4 sm:$0xff]  }
 0x3a3   :  { %4947 = vmatpush1.bf16.msra.mxu0 %v7502_v0  ;;  %4162 = vmatprep.subr.bf16.mxu1 %v7507_v54  ;;  %v7562_v0 = vld [vmem:[#allocation7 + $0xb60] ss:$16 sps:$4 sm:$0xff]   ;;  %v7567_v54 = vld [vmem:[#allocation7 + $0x784] ss:$16 sps:$4 sm:$0xff]  }
 0x3a4   :  { %4948 = vmatprep.subr.bf16.mxu0 %v7510_v18  ;;  %v7570_v18 = vld [vmem:[#allocation7 + $0xb84] ss:$16 sps:$4 sm:$0xff]  }
 0x3a6   :  { %4163 = vmatpush1.bf16.msra.mxu1 %v7505_v13  ;;  %v7565_v13 = vld [vmem:[#allocation7 + $0x780] ss:$16 sps:$4 sm:$0xff]  }
 0x3a7   :  { %4949 = vmatpush1.bf16.msra.mxu0 %v7508_v29  ;;  %4164 = vmatprep.subr.bf16.mxu1 %v7513_v27  ;;  %v7568_v29 = vld [vmem:[#allocation7 + $0xb80] ss:$16 sps:$4 sm:$0xff]   ;;  %v7573_v27 = vld [vmem:[#allocation7 + $0x7a4] ss:$16 sps:$4 sm:$0xff]  }
 0x3a8   :  { %4950 = vmatprep.subr.bf16.mxu0 %v7516_v20  ;;  %v7576_v20 = vld [vmem:[#allocation7 + $0xba4] ss:$16 sps:$4 sm:$0xff]  }
 0x3aa   :  { %4165 = vmatpush1.bf16.msra.mxu1 %v7511_v15  ;;  %v7571_v15 = vld [vmem:[#allocation7 + $0x7a0] ss:$16 sps:$4 sm:$0xff]  }
 0x3ab   :  { %4951 = vmatpush1.bf16.msra.mxu0 %v7514_v33  ;;  %4166 = vmatprep.subr.bf16.mxu1 %v7519_v34  ;;  %v7574_v33 = vld [vmem:[#allocation7 + $0xba0] ss:$16 sps:$4 sm:$0xff]   ;;  %v7579_v34 = vld [vmem:[#allocation7 + $0x7c4] ss:$16 sps:$4 sm:$0xff]  }
 0x3ac   :  { %4952 = vmatprep.subr.bf16.mxu0 %v7522_v22 }
 0x3ae   :  { %4167 = vmatpush1.bf16.msra.mxu1 %v7517_v40  ;;  %v7582_v40 = vld [vmem:[#allocation7 + $0xbc4] ss:$16 sps:$4 sm:$0xff]  }
 0x3af   :  { %4953 = vmatpush1.bf16.msra.mxu0 %v7520_v35  ;;  %4168 = vmatprep.subr.bf16.mxu1 %v7525_v36 }
 0x3b0   :  { %v2779_v30 = vpop.f32.mrb[32].mxu1  ;;  %v2822_v21 = vpop.f32.mrb[16].mxu0  ;;  %4954 = vmatprep.subr.bf16.mxu0 %v7528_v24  ;;  %v7577_v24 = vld [vmem:[#allocation7 + $0x7c0] ss:$16 sps:$4 sm:$0xff]  }
 0x3b1   :  { %v8675_v41 = vadd.f32 %v2822_v21, %v2779_v30  ;;  %v2781_v46 = vpop.f32.mrb[33].mxu1  ;;  %v2824_v45 = vpop.f32.mrb[17].mxu0  ;;  %v7588_v30 = vld [vmem:[#allocation7 + $0xbe4] ss:$16 sps:$4 sm:$0xff]   ;;  %v7583_v21 = vld [vmem:[#allocation7 + $0x7e0] ss:$16 sps:$4 sm:$0xff]  }
 0x3b2   :  { %v8677_v47 = vadd.f32 %v2824_v45, %v2781_v46  ;;  %4169 = vmatpush1.bf16.msra.mxu1 %v7523_v26  ;;  %v2783_v42 = vpop.f32.mrb[34].mxu1  ;;  %v2826_v51 = vpop.f32.mrb[18].mxu0  ;;  %v7591_v46 = vld [vmem:[#allocation7 + $0x60c] ss:$16 sps:$4 sm:$0xff]   ;;  %v3667_v45 = vrot.slane %v8609_v32, 2 }
 0x3b3   :  { %4955 = vmatpush1.bf16.msra.mxu0 %v7526_v31  ;;  %v8679_v56 = vadd.f32 %v2826_v51, %v2783_v42  ;;  %v2785_v55 = vpop.f32.mrb[35].mxu1  ;;  %v2828_v58 = vpop.f32.mrb[19].mxu0  ;;  %4170 = vmatprep.subr.bf16.mxu1 %v7531_v28  ;;  %v7580_v31 = vld [vmem:[#allocation7 + $0xbc0] ss:$16 sps:$4 sm:$0xff]   ;;  %v7585_v28 = vld [vmem:[#allocation7 + $0x7e4] ss:$16 sps:$4 sm:$0xff]  }
 0x3b4   :  { %v8681_v60 = vadd.f32 %v2828_v58, %v2785_v55  ;;  %4956 = vmatprep.subr.bf16.mxu0 %v7534_v39  ;;  %v7586_v39 = vld [vmem:[#allocation7 + $0xbe0] ss:$16 sps:$4 sm:$0xff]   ;;  %v7594_v42 = vld [vmem:[#allocation7 + $0x90c] ss:$16 sps:$4 sm:$0xff]   ;;  %v3666_v51 = vrot.slane %v8585_v43, 2 }
 0x3b5   :  { %v7592_v55 = vld [vmem:[#allocation7 + $0x908] ss:$16 sps:$4 sm:$0xff]  }
 0x3b6   :  { %4171 = vmatpush1.bf16.msra.mxu1 %v7529_v53  ;;  %v7589_v53 = vld [vmem:[#allocation7 + $0x608] ss:$16 sps:$4 sm:$0xff]   ;;  %v8701_v58 = vsel %vm1827_vm1, %v3666_v51, %v3667_v45  ;;  %v7648_v45 = vld [vmem:[#allocation7 + $0xa2c] ss:$16 sps:$4 sm:$0xff]  }
 0x3b7   :  { %4957 = vmatpush1.bf16.msra.mxu0 %v7532_v59  ;;  %4172 = vmatprep.subr.bf16.mxu1 %v7537_v63  ;;  %v7597_v59 = vld [vmem:[#allocation7 + $0x62c] ss:$16 sps:$4 sm:$0xff]  }
 0x3b8   :  { %4958 = vmatprep.subr.bf16.mxu0 %v7540_v61  ;;  %v7600_v63 = vld [vmem:[#allocation7 + $0x92c] ss:$16 sps:$4 sm:$0xff]   ;;  %v7595_v61 = vld [vmem:[#allocation7 + $0x628] ss:$16 sps:$4 sm:$0xff]  }
 0x3b9   :  { %v7651_v51 = vld [vmem:[#allocation7 + $0x74c] ss:$16 sps:$4 sm:$0xff]  }
 0x3ba   :  { %4173 = vmatpush1.bf16.msra.mxu1 %v7535_v62  ;;  %v7598_v62 = vld [vmem:[#allocation7 + $0x928] ss:$16 sps:$4 sm:$0xff]  }
 0x3bb   :  { %4959 = vmatpush1.bf16.msra.mxu0 %v7538_v38  ;;  %4174 = vmatprep.subr.bf16.mxu1 %v7543_v5  ;;  %v7603_v38 = vld [vmem:[#allocation7 + $0x64c] ss:$16 sps:$4 sm:$0xff]  }
 0x3bc   :  { %4971 = vmatprep.subr.bf16.mxu0 %v7546_v9  ;;  %v7606_v5 = vld [vmem:[#allocation7 + $0x94c] ss:$16 sps:$4 sm:$0xff]   ;;  %v7601_v9 = vld [vmem:[#allocation7 + $0x648] ss:$16 sps:$4 sm:$0xff]  }
 0x3be   :  { %4961 = vmatmul.mubr.bf16.vlgmr.msra.gmra.mrb[32].mxu0 %v8686_v14  ;;  %4175 = vmatpush1.bf16.msra.mxu1 %v7541_v17  ;;  %v7609_v17 = vld [vmem:[#allocation7 + $0x66c] ss:$16 sps:$4 sm:$0xff]  }
 0x3bf   :  { %4972 = vmatpush1.bf16.msra.mxu0 %v7544_v11  ;;  %4176 = vmatprep.subr.bf16.mxu1 %v7549_v10  ;;  %v7607_v11 = vld [vmem:[#allocation7 + $0x668] ss:$16 sps:$4 sm:$0xff]   ;;  %v7615_v10 = vld [vmem:[#allocation7 + $0x68c] ss:$16 sps:$4 sm:$0xff]  }
 0x3c0   :  { %4973 = vmatprep.subr.bf16.mxu0 %v7552_v2  ;;  %5003 = vmatprep.mubr.bf16.mxu0 %v8116_v1  ;;  %v7618_v2 = vld [vmem:[#allocation7 + $0x98c] ss:$16 sps:$4 sm:$0xff]  }
 0x3c2   :  { %4177 = vmatpush1.bf16.msra.mxu1 %v7547_v44  ;;  %v7616_v44 = vld [vmem:[#allocation7 + $0x988] ss:$16 sps:$4 sm:$0xff]  }
 0x3c3   :  { %4974 = vmatpush1.bf16.msra.mxu0 %v7550_v57  ;;  %4178 = vmatprep.subr.bf16.mxu1 %v7555_v6  ;;  %v7621_v57 = vld [vmem:[#allocation7 + $0x6ac] ss:$16 sps:$4 sm:$0xff]  }
 0x3c4   :  { %4975 = vmatprep.subr.bf16.mxu0 %v7558_v8  ;;  %v7624_v6 = vld [vmem:[#allocation7 + $0x9ac] ss:$16 sps:$4 sm:$0xff]   ;;  %v7619_v8 = vld [vmem:[#allocation7 + $0x6a8] ss:$16 sps:$4 sm:$0xff]  }
 0x3c6   :  { %4179 = vmatpush1.bf16.msra.mxu1 %v7553_v4  ;;  %v7622_v4 = vld [vmem:[#allocation7 + $0x9a8] ss:$16 sps:$4 sm:$0xff]  }
 0x3c7   :  { %4976 = vmatpush1.bf16.msra.mxu0 %v7556_v48  ;;  %4180 = vmatprep.subr.bf16.mxu1 %v7561_v50  ;;  %v7627_v48 = vld [vmem:[#allocation7 + $0x6cc] ss:$16 sps:$4 sm:$0xff]  }
 0x3c8   :  { %4977 = vmatprep.subr.bf16.mxu0 %v7564_v12 }
 0x3ca   :  { %4181 = vmatpush1.bf16.msra.mxu1 %v7559_v52  ;;  %v7630_v52 = vld [vmem:[#allocation7 + $0x9cc] ss:$16 sps:$4 sm:$0xff]  }
 0x3cb   :  { %4978 = vmatpush1.bf16.msra.mxu0 %v7562_v0  ;;  %4182 = vmatprep.subr.bf16.mxu1 %v7567_v54 }
 0x3cc   :  { %4979 = vmatprep.subr.bf16.mxu0 %v7570_v18 }
 0x3ce   :  { %4183 = vmatpush1.bf16.msra.mxu1 %v7565_v13 }
 0x3cf   :  { %4980 = vmatpush1.bf16.msra.mxu0 %v7568_v29  ;;  %4184 = vmatprep.subr.bf16.mxu1 %v7573_v27 }
 0x3d0   :  { %v8690_v22 = vpop.f32.mrb[20].mxu0  ;;  %4981 = vmatprep.subr.bf16.mxu0 %v7576_v20  ;;  %v7625_v20 = vld [vmem:[#allocation7 + $0x6c8] ss:$16 sps:$4 sm:$0xff]  }
 0x3d1   :  { %v8692_v35 = vpop.f32.mrb[21].mxu0 }
 0x3d2   :  { %v8694_v36 = vpop.f32.mrb[22].mxu0  ;;  %4185 = vmatpush1.bf16.msra.mxu1 %v7571_v15 }
 0x3d3   :  { %4982 = vmatpush1.bf16.msra.mxu0 %v7574_v33  ;;  %v8696_v26 = vpop.f32.mrb[23].mxu0  ;;  %4186 = vmatprep.subr.bf16.mxu1 %v7579_v34 }
 0x3d4   :  { %4983 = vmatprep.subr.bf16.mxu0 %v7582_v40  ;;  %v7633_v40 = vld [vmem:[#allocation7 + $0x6ec] ss:$16 sps:$4 sm:$0xff]  }
 0x3d6   :  { %4187 = vmatpush1.bf16.msra.mxu1 %v7577_v24 }
 0x3d7   :  { %4984 = vmatpush1.bf16.msra.mxu0 %v7580_v31  ;;  %4188 = vmatprep.subr.bf16.mxu1 %v7585_v28  ;;  %v7631_v31 = vld [vmem:[#allocation7 + $0x6e8] ss:$16 sps:$4 sm:$0xff]  }
 0x3d8   :  { %4985 = vmatprep.subr.bf16.mxu0 %v7588_v30  ;;  %v7634_v28 = vld [vmem:[#allocation7 + $0x9e8] ss:$16 sps:$4 sm:$0xff]   ;;  %v7639_v30 = vld [vmem:[#allocation7 + $0x70c] ss:$16 sps:$4 sm:$0xff]  }
 0x3da   :  { %4189 = vmatpush1.bf16.msra.mxu1 %v7583_v21  ;;  %v7637_v21 = vld [vmem:[#allocation7 + $0x708] ss:$16 sps:$4 sm:$0xff]  }
 0x3db   :  { %4986 = vmatpush1.bf16.msra.mxu0 %v7586_v39  ;;  %4244 = vmatprep.subr.bf16.mxu1 %v7591_v46  ;;  %v7640_v39 = vld [vmem:[#allocation7 + $0xa08] ss:$16 sps:$4 sm:$0xff]   ;;  %v7645_v46 = vld [vmem:[#allocation7 + $0x72c] ss:$16 sps:$4 sm:$0xff]  }
 0x3dc   :  { %5014 = vmatprep.subr.bf16.mxu0 %v7594_v42  ;;  %v7646_v42 = vld [vmem:[#allocation7 + $0xa28] ss:$16 sps:$4 sm:$0xff]  }
 0x3dd   :  { %4191 = vmatmul.mubr.bf16.vlgmr.msra.gmra.mrb[48].mxu1 %v8701_v58 }
 0x3de   :  { %5004 = vmatmul.mubr.bf16.vlgmr.msra.gmra.mrb[32].mxu0 %v8636_v37  ;;  %4245 = vmatpush1.bf16.msra.mxu1 %v7589_v53  ;;  %v7654_v53 = vld [vmem:[#allocation7 + $0xa4c] ss:$16 sps:$4 sm:$0xff]  }
 0x3df   :  { %4276 = vmatprep.mubr.bf16.mxu1 %v8672_v25  ;;  %5015 = vmatpush1.bf16.msra.mxu0 %v7592_v55  ;;  %v7610_v25 = vld [vmem:[#allocation7 + $0x968] ss:$16 sps:$4 sm:$0xff]  }
 0x3e0   :  { %5046 = vmatprep.mubr.bf16.mxu0 %v8665_v23  ;;  %4246 = vmatprep.subr.bf16.mxu1 %v7597_v59  ;;  %v7613_v23 = vld [vmem:[#allocation7 + $0x688] ss:$16 sps:$4 sm:$0xff]  }
 0x3e1   :  { %5016 = vmatprep.subr.bf16.mxu0 %v7600_v63  ;;  %v7649_v55 = vld [vmem:[#allocation7 + $0x748] ss:$16 sps:$4 sm:$0xff]   ;;  %v7657_v63 = vld [vmem:[#allocation7 + $0x76c] ss:$16 sps:$4 sm:$0xff]  }
 0x3e2   :  { %4247 = vmatpush1.bf16.msra.mxu1 %v7595_v61  ;;  %v7652_v59 = vld [vmem:[#allocation7 + $0xa48] ss:$16 sps:$4 sm:$0xff]   ;;  %v7660_v61 = vld [vmem:[#allocation7 + $0xa6c] ss:$16 sps:$4 sm:$0xff]  }
 0x3e3   :  { %5017 = vmatpush1.bf16.msra.mxu0 %v7598_v62  ;;  %4248 = vmatprep.subr.bf16.mxu1 %v7603_v38  ;;  %v7655_v62 = vld [vmem:[#allocation7 + $0x768] ss:$16 sps:$4 sm:$0xff]  }
 0x3e4   :  { %5018 = vmatprep.subr.bf16.mxu0 %v7606_v5  ;;  %v7658_v38 = vld [vmem:[#allocation7 + $0xa68] ss:$16 sps:$4 sm:$0xff]   ;;  %v7663_v5 = vld [vmem:[#allocation7 + $0x78c] ss:$16 sps:$4 sm:$0xff]  }
 0x3e6   :  { %4249 = vmatpush1.bf16.msra.mxu1 %v7601_v9  ;;  %v7666_v9 = vld [vmem:[#allocation7 + $0xa8c] ss:$16 sps:$4 sm:$0xff]  }
 0x3e7   :  { %5019 = vmatpush1.bf16.msra.mxu0 %v7604_v19  ;;  %4250 = vmatprep.subr.bf16.mxu1 %v7609_v17  ;;  %v7661_v19 = vld [vmem:[#allocation7 + $0x788] ss:$16 sps:$4 sm:$0xff]  }
 0x3e8   :  { %5020 = vmatprep.subr.bf16.mxu0 %v7612_v3  ;;  %v7664_v17 = vld [vmem:[#allocation7 + $0xa88] ss:$16 sps:$4 sm:$0xff]   ;;  %v7669_v3 = vld [vmem:[#allocation7 + $0x7ac] ss:$16 sps:$4 sm:$0xff]  }
 0x3ea   :  { %4251 = vmatpush1.bf16.msra.mxu1 %v7607_v11  ;;  %v7672_v11 = vld [vmem:[#allocation7 + $0xaac] ss:$16 sps:$4 sm:$0xff]  }
 0x3eb   :  { %5021 = vmatpush1.bf16.msra.mxu0 %v7610_v25  ;;  %4252 = vmatprep.subr.bf16.mxu1 %v7615_v10  ;;  %v7667_v25 = vld [vmem:[#allocation7 + $0x7a8] ss:$16 sps:$4 sm:$0xff]  }
 0x3ec   :  { %5022 = vmatprep.subr.bf16.mxu0 %v7618_v2  ;;  %v7670_v10 = vld [vmem:[#allocation7 + $0xaa8] ss:$16 sps:$4 sm:$0xff]   ;;  %v7675_v2 = vld [vmem:[#allocation7 + $0x7cc] ss:$16 sps:$4 sm:$0xff]  }
 0x3ee   :  { %4253 = vmatpush1.bf16.msra.mxu1 %v7613_v23  ;;  %v7678_v23 = vld [vmem:[#allocation7 + $0xacc] ss:$16 sps:$4 sm:$0xff]  }
 0x3ef   :  { %5023 = vmatpush1.bf16.msra.mxu0 %v7616_v44  ;;  %4254 = vmatprep.subr.bf16.mxu1 %v7621_v57 }
 0x3f0   :  { %v2865_v50 = vpop.f32.mrb[36].mxu1  ;;  %v8707_v12 = vpop.f32.mrb[24].mxu0  ;;  %5024 = vmatprep.subr.bf16.mxu0 %v7624_v6  ;;  %v7673_v6 = vld [vmem:[#allocation7 + $0x7c8] ss:$16 sps:$4 sm:$0xff]  }
 0x3f1   :  { %v8710_v0 = vadd.f32 %v8690_v22, %v2865_v50  ;;  %v2867_v54 = vpop.f32.mrb[37].mxu1  ;;  %v8712_v18 = vpop.f32.mrb[25].mxu0  ;;  %v7628_v22 = vld [vmem:[#allocation7 + $0x9c8] ss:$16 sps:$4 sm:$0xff]  }
 0x3f2   :  { %v8715_v13 = vadd.f32 %v8692_v35, %v2867_v54  ;;  %v2869_v29 = vpop.f32.mrb[38].mxu1  ;;  %v8717_v27 = vpop.f32.mrb[26].mxu0  ;;  %4255 = vmatpush1.bf16.msra.mxu1 %v7619_v8  ;;  %v7636_v35 = vld [vmem:[#allocation7 + $0x9ec] ss:$16 sps:$4 sm:$0xff]   ;;  %v7679_v54 = vld [vmem:[#allocation7 + $0x7e8] ss:$16 sps:$4 sm:$0xff]  }
 0x3f3   :  { %v8720_v15 = vadd.f32 %v8694_v36, %v2869_v29  ;;  %5025 = vmatpush1.bf16.msra.mxu0 %v7622_v4  ;;  %v2871_v33 = vpop.f32.mrb[39].mxu1  ;;  %v8722_v34 = vpop.f32.mrb[27].mxu0  ;;  %4256 = vmatprep.subr.bf16.mxu1 %v7627_v48  ;;  %v7642_v36 = vld [vmem:[#allocation7 + $0xa0c] ss:$16 sps:$4 sm:$0xff]   ;;  %v7676_v4 = vld [vmem:[#allocation7 + $0xac8] ss:$16 sps:$4 sm:$0xff]  }
 0x3f4   :  { %v8725_v24 = vadd.f32 %v8696_v26, %v2871_v33  ;;  %5026 = vmatprep.subr.bf16.mxu0 %v7630_v52  ;;  %v7643_v26 = vld [vmem:[#allocation7 + $0x728] ss:$16 sps:$4 sm:$0xff]   ;;  %v7681_v48 = vld [vmem:[#allocation7 + $0x7ec] ss:$16 sps:$4 sm:$0xff]  }
 0x3f5   :  { %v7684_v52 = vld [vmem:[#allocation7 + $0xaec] ss:$16 sps:$4 sm:$0xff]   ;;  %v7682_v29 = vld [vmem:[#allocation7 + $0xae8] ss:$16 sps:$4 sm:$0xff]  }
 0x3f6   :  { %4257 = vmatpush1.bf16.msra.mxu1 %v7625_v20  ;;  %v7687_v20 = vld [vmem:[#allocation7 + $0xb0c] ss:$16 sps:$4 sm:$0xff]   ;;  %v7685_v33 = vld [vmem:[#allocation7 + $0xb08] ss:$16 sps:$4 sm:$0xff]  }
 0x3f7   :  { %5027 = vmatpush1.bf16.msra.mxu0 %v7628_v22  ;;  %4258 = vmatprep.subr.bf16.mxu1 %v7633_v40  ;;  %v7690_v22 = vld [vmem:[#allocation7 + $0xb2c] ss:$16 sps:$4 sm:$0xff]   ;;  %v7688_v40 = vld [vmem:[#allocation7 + $0xb28] ss:$16 sps:$4 sm:$0xff]  }
 0x3f8   :  { %5028 = vmatprep.subr.bf16.mxu0 %v7636_v35  ;;  %v7693_v35 = vld [vmem:[#allocation7 + $0xb4c] ss:$16 sps:$4 sm:$0xff]  }
 0x3fa   :  { %4259 = vmatpush1.bf16.msra.mxu1 %v7631_v31  ;;  %v7691_v31 = vld [vmem:[#allocation7 + $0xb48] ss:$16 sps:$4 sm:$0xff]  }
 0x3fb   :  { %5029 = vmatpush1.bf16.msra.mxu0 %v7634_v28  ;;  %4260 = vmatprep.subr.bf16.mxu1 %v7639_v30  ;;  %v7696_v28 = vld [vmem:[#allocation7 + $0xb6c] ss:$16 sps:$4 sm:$0xff]   ;;  %v7694_v30 = vld [vmem:[#allocation7 + $0xb68] ss:$16 sps:$4 sm:$0xff]  }
 0x3fc   :  { %5030 = vmatprep.subr.bf16.mxu0 %v7642_v36  ;;  %v7699_v36 = vld [vmem:[#allocation7 + $0xb8c] ss:$16 sps:$4 sm:$0xff]  }
 0x3fe   :  { %4261 = vmatpush1.bf16.msra.mxu1 %v7637_v21  ;;  %v7697_v21 = vld [vmem:[#allocation7 + $0xb88] ss:$16 sps:$4 sm:$0xff]  }
 0x3ff   :  { %5031 = vmatpush1.bf16.msra.mxu0 %v7640_v39  ;;  %4262 = vmatprep.subr.bf16.mxu1 %v7645_v46  ;;  %v7705_v46 = vld [vmem:[#allocation7 + $0xbcc] ss:$16 sps:$4 sm:$0xff]  }
 0x400   :  { %5032 = vmatprep.subr.bf16.mxu0 %v7648_v45 }
 0x402   :  { %4263 = vmatpush1.bf16.msra.mxu1 %v7643_v26 }
 0x403   :  { %5033 = vmatpush1.bf16.msra.mxu0 %v7646_v42  ;;  %4264 = vmatprep.subr.bf16.mxu1 %v7651_v51 }
 0x404   :  { %5034 = vmatprep.subr.bf16.mxu0 %v7654_v53 }
 0x406   :  { %4265 = vmatpush1.bf16.msra.mxu1 %v7649_v55 }
 0x407   :  { %5035 = vmatpush1.bf16.msra.mxu0 %v7652_v59  ;;  %4266 = vmatprep.subr.bf16.mxu1 %v7657_v63  ;;  %v7703_v59 = vld [vmem:[#allocation7 + $0xbc8] ss:$16 sps:$4 sm:$0xff]  }
 0x408   :  { %5036 = vmatprep.subr.bf16.mxu0 %v7660_v61 }
 0x40a   :  { %4267 = vmatpush1.bf16.msra.mxu1 %v7655_v62  ;;  %v7708_v62 = vld [vmem:[#allocation7 + $0xbec] ss:$16 sps:$4 sm:$0xff]  }
 0x40b   :  { %5037 = vmatpush1.bf16.msra.mxu0 %v7658_v38  ;;  %4268 = vmatprep.subr.bf16.mxu1 %v7663_v5  ;;  %v7711_v5 = vld [vmem:[#allocation7 + $0xc04] ss:$16 sps:$4 sm:$0xff]  }
 0x40c   :  { %5038 = vmatprep.subr.bf16.mxu0 %v7666_v9  ;;  %v7709_v9 = vld [vmem:[#allocation7 + $0xc00] ss:$16 sps:$4 sm:$0xff]  }
 0x40e   :  { %4269 = vmatpush1.bf16.msra.mxu1 %v7661_v19  ;;  %v7714_v19 = vld [vmem:[#allocation7 + $0xc24] ss:$16 sps:$4 sm:$0xff]  }
 0x40f   :  { %5039 = vmatpush1.bf16.msra.mxu0 %v7664_v17  ;;  %4270 = vmatprep.subr.bf16.mxu1 %v7669_v3  ;;  %v7715_v17 = vld [vmem:[#allocation7 + $0xc40] ss:$16 sps:$4 sm:$0xff]  }
 0x410   :  { %5040 = vmatprep.subr.bf16.mxu0 %v7672_v11  ;;  %v7718_v3 = vld [vmem:[#allocation7 + $0xc60] ss:$16 sps:$4 sm:$0xff]  }
 0x411   :  { %v8727_v44 = vpop.f32.mrb[28].mxu0  ;;  %v7721_v11 = vld [vmem:[#allocation7 + $0xc80] ss:$16 sps:$4 sm:$0xff]  }
 0x412   :  { %v8729_v57 = vpop.f32.mrb[29].mxu0  ;;  %4271 = vmatpush1.bf16.msra.mxu1 %v7667_v25  ;;  %v7724_v25 = vld [vmem:[#allocation7 + $0xca0] ss:$16 sps:$4 sm:$0xff]  }
 0x413   :  { %v8731_v8 = vpop.f32.mrb[30].mxu0  ;;  %5041 = vmatpush1.bf16.msra.mxu0 %v7670_v10  ;;  %4272 = vmatprep.subr.bf16.mxu1 %v7675_v2  ;;  %v7729_v10 = vld [vmem:[#allocation7 + $0xcc4] ss:$16 sps:$4 sm:$0xff]   ;;  %v7727_v2 = vld [vmem:[#allocation7 + $0xcc0] ss:$16 sps:$4 sm:$0xff]  }
 0x414   :  { %v8733_v50 = vpop.f32.mrb[31].mxu0  ;;  %5042 = vmatprep.subr.bf16.mxu0 %v7678_v23  ;;  %v7732_v23 = vld [vmem:[#allocation7 + $0xce4] ss:$16 sps:$4 sm:$0xff]  }
 0x416   :  { %4273 = vmatpush1.bf16.msra.mxu1 %v7673_v6  ;;  %v7730_v6 = vld [vmem:[#allocation7 + $0xce0] ss:$16 sps:$4 sm:$0xff]  }
 0x417   :  { %5043 = vmatpush1.bf16.msra.mxu0 %v7676_v4  ;;  %4274 = vmatprep.subr.bf16.mxu1 %v7681_v48  ;;  %v7735_v4 = vld [vmem:[#allocation7 + $0xd04] ss:$16 sps:$4 sm:$0xff]   ;;  %v7733_v48 = vld [vmem:[#allocation7 + $0xd00] ss:$16 sps:$4 sm:$0xff]  }
 0x418   :  { %5044 = vmatprep.subr.bf16.mxu0 %v7684_v52  ;;  %v7738_v52 = vld [vmem:[#allocation7 + $0xd24] ss:$16 sps:$4 sm:$0xff]  }
 0x41a   :  { %4275 = vmatpush1.bf16.msra.mxu1 %v7679_v54  ;;  %v7736_v54 = vld [vmem:[#allocation7 + $0xd20] ss:$16 sps:$4 sm:$0xff]  }
 0x41b   :  { %5045 = vmatpush1.bf16.msra.mxu0 %v7682_v29  ;;  %v7741_v29 = vld [vmem:[#allocation7 + $0xd44] ss:$16 sps:$4 sm:$0xff]  }
 0x41c   :  { %5057 = vmatprep.subr.bf16.mxu0 %v7687_v20  ;;  %v7739_v20 = vld [vmem:[#allocation7 + $0xd40] ss:$16 sps:$4 sm:$0xff]  }
 0x41d   :  { %4277 = vmatmul.mubr.bf16.vlgmr.msra.gmra.mrb[52].mxu1 %v8701_v58  ;;  %v7702_v58 = vld [vmem:[#allocation7 + $0xbac] ss:$16 sps:$4 sm:$0xff]  }
 0x41e   :  { %5047 = vmatmul.mubr.bf16.vlgmr.msra.gmra.mrb[36].mxu0 %v8686_v14  ;;  %v7700_v14 = vld [vmem:[#allocation7 + $0xba8] ss:$16 sps:$4 sm:$0xff]  }
 0x41f   :  { %5058 = vmatpush1.bf16.msra.mxu0 %v7685_v33  ;;  %5089 = vmatprep.mubr.bf16.mxu0 %v8116_v1  ;;  %v7744_v33 = vld [vmem:[#allocation7 + $0xd64] ss:$16 sps:$4 sm:$0xff]  }
 0x420   :  { %5059 = vmatprep.subr.bf16.mxu0 %v7690_v22  ;;  %v7742_v22 = vld [vmem:[#allocation7 + $0xd60] ss:$16 sps:$4 sm:$0xff]  }
 0x423   :  { %5060 = vmatpush1.bf16.msra.mxu0 %v7688_v40  ;;  %v7747_v40 = vld [vmem:[#allocation7 + $0xd84] ss:$16 sps:$4 sm:$0xff]  }
 0x424   :  { %5061 = vmatprep.subr.bf16.mxu0 %v7693_v35  ;;  %v7745_v35 = vld [vmem:[#allocation7 + $0xd80] ss:$16 sps:$4 sm:$0xff]  }
 0x427   :  { %5062 = vmatpush1.bf16.msra.mxu0 %v7691_v31  ;;  %v7750_v31 = vld [vmem:[#allocation7 + $0xda4] ss:$16 sps:$4 sm:$0xff]  }
 0x428   :  { %5063 = vmatprep.subr.bf16.mxu0 %v7696_v28  ;;  %v7748_v28 = vld [vmem:[#allocation7 + $0xda0] ss:$16 sps:$4 sm:$0xff]  }
 0x42b   :  { %5064 = vmatpush1.bf16.msra.mxu0 %v7694_v30 }
 0x42c   :  { %5065 = vmatprep.subr.bf16.mxu0 %v7699_v36  ;;  %v7753_v36 = vld [vmem:[#allocation7 + $0xdc4] ss:$16 sps:$4 sm:$0xff]  }
 0x42f   :  { %5066 = vmatpush1.bf16.msra.mxu0 %v7697_v21 }
 0x430   :  { %v3431_v39 = vpop.f32.mrb[40].mxu1  ;;  %5067 = vmatprep.subr.bf16.mxu0 %v7702_v58 }
 0x431   :  { %v3432_v45 = vadd.f32 %v3431_v39, %v8675_v41  ;;  %v3433_v26 = vpop.f32.mrb[41].mxu1 }
 0x432   :  { %v3434_v42 = vadd.f32 %v3433_v26, %v8677_v47  ;;  %v3435_v51 = vpop.f32.mrb[42].mxu1  ;;  %v7751_v26 = vld [vmem:[#allocation7 + $0xdc0] ss:$16 sps:$4 sm:$0xff]  }
 0x433   :  { %v3436_v53 = vadd.f32 %v3435_v51, %v8679_v56  ;;  %5068 = vmatpush1.bf16.msra.mxu0 %v7700_v14  ;;  %v3437_v55 = vpop.f32.mrb[43].mxu1  ;;  %v8742_v63 = vadd.f32 %v8707_v12, %v3432_v45  ;;  %v7706_v56 = vld [vmem:[#allocation7 + $0xbe8] ss:$16 sps:$4 sm:$0xff]   ;;  %v5210_v12 = vrot.slane %v8614_v16, 4  ;;  %v7720_v16 = vld [vmem:[#allocation7 + $0xc64] ss:$16 sps:$4 sm:$0xff]  }
 0x434   :  { %v3438_v61 = vadd.f32 %v3437_v55, %v8681_v60  ;;  %5069 = vmatprep.subr.bf16.mxu0 %v7705_v46  ;;  %v8746_v38 = vadd.f32 %v8712_v18, %v3434_v42  ;;  %v5209_v60 = vrot.slane %v8602_v49, 4  ;;  %v7723_v49 = vld [vmem:[#allocation7 + $0xc84] ss:$16 sps:$4 sm:$0xff]  }
 0x435   :  { %v8749_v41 = vadd.f32 %v8717_v27, %v3436_v53  ;;  %v7712_v27 = vld [vmem:[#allocation7 + $0xc20] ss:$16 sps:$4 sm:$0xff]   ;;  %v7756_v53 = vld [vmem:[#allocation7 + $0xde4] ss:$16 sps:$4 sm:$0xff]  }
 0x436   :  { %v8752_v47 = vadd.f32 %v8722_v34, %v3438_v61  ;;  %v8758_v18 = vsel %vm5205_vm3, %v5209_v60, %v5210_v12  ;;  %v7717_v34 = vld [vmem:[#allocation7 + $0xc44] ss:$16 sps:$4 sm:$0xff]   ;;  %v7757_v61 = vld [vmem:[#allocation7 + $0xe00] ss:$16 sps:$4 sm:$0xff]  }
 0x437   :  { %5070 = vmatpush1.bf16.msra.mxu0 %v7703_v59  ;;  %v7759_v59 = vld [vmem:[#allocation7 + $0xe04] ss:$16 sps:$4 sm:$0xff]   ;;  %v7769_v12 = vld [vmem:[#allocation7 + $0xe80] ss:$16 sps:$4 sm:$0xff]  }
 0x438   :  { %5071 = vmatprep.subr.bf16.mxu0 %v7708_v62  ;;  %v7762_v62 = vld [vmem:[#allocation7 + $0xe24] ss:$16 sps:$4 sm:$0xff]   ;;  %v7772_v60 = vld [vmem:[#allocation7 + $0xea0] ss:$16 sps:$4 sm:$0xff]  }
 0x43b   :  { %5072 = vmatpush1.bf16.msra.mxu0 %v7706_v56  ;;  %v7763_v56 = vld [vmem:[#allocation7 + $0xe40] ss:$16 sps:$4 sm:$0xff]  }
 0x43c   :  { %5698 = vmatprep.subr.bf16.mxu0 %v7711_v5  ;;  %v7771_v5 = vld [vmem:[#allocation7 + $0xe84] ss:$16 sps:$4 sm:$0xff]  }
 0x43e   :  { %5090 = vmatmul.mubr.bf16.vlgmr.msra.gmra.mrb[36].mxu0 %v8636_v37  ;;  %v7726_v37 = vld [vmem:[#allocation7 + $0xca4] ss:$16 sps:$4 sm:$0xff]  }
 0x43f   :  { %5699 = vmatpush1.bf16.msra.mxu0 %v7709_v9  ;;  %5730 = vmatprep.mubr.bf16.mxu0 %v8758_v18  ;;  %v7774_v9 = vld [vmem:[#allocation7 + $0xea4] ss:$16 sps:$4 sm:$0xff]  }
 0x440   :  { %5700 = vmatprep.subr.bf16.mxu0 %v7714_v19  ;;  %v7777_v19 = vld [vmem:[#allocation7 + $0xec4] ss:$16 sps:$4 sm:$0xff]  }
 0x443   :  { %5701 = vmatpush1.bf16.msra.mxu0 %v7712_v27  ;;  %v7775_v27 = vld [vmem:[#allocation7 + $0xec0] ss:$16 sps:$4 sm:$0xff]  }
 0x444   :  { %5702 = vmatprep.subr.bf16.mxu0 %v7717_v34  ;;  %v7780_v34 = vld [vmem:[#allocation7 + $0xee4] ss:$16 sps:$4 sm:$0xff]  }
 0x447   :  { %5703 = vmatpush1.bf16.msra.mxu0 %v7715_v17  ;;  %v7778_v17 = vld [vmem:[#allocation7 + $0xee0] ss:$16 sps:$4 sm:$0xff]  }
 0x448   :  { %5704 = vmatprep.subr.bf16.mxu0 %v7720_v16  ;;  %v7783_v16 = vld [vmem:[#allocation7 + $0xc0c] ss:$16 sps:$4 sm:$0xff]  }
 0x44b   :  { %5705 = vmatpush1.bf16.msra.mxu0 %v7718_v3  ;;  %v7781_v3 = vld [vmem:[#allocation7 + $0xc08] ss:$16 sps:$4 sm:$0xff]  }
 0x44c   :  { %5706 = vmatprep.subr.bf16.mxu0 %v7723_v49  ;;  %v7786_v49 = vld [vmem:[#allocation7 + $0xc2c] ss:$16 sps:$4 sm:$0xff]  }
 0x44f   :  { %5707 = vmatpush1.bf16.msra.mxu0 %v7721_v11  ;;  %v7784_v11 = vld [vmem:[#allocation7 + $0xc28] ss:$16 sps:$4 sm:$0xff]  }
 0x450   :  { %5708 = vmatprep.subr.bf16.mxu0 %v7726_v37  ;;  %v7789_v37 = vld [vmem:[#allocation7 + $0xc4c] ss:$16 sps:$4 sm:$0xff]  }
 0x453   :  { %5709 = vmatpush1.bf16.msra.mxu0 %v7724_v25  ;;  %v7787_v25 = vld [vmem:[#allocation7 + $0xc48] ss:$16 sps:$4 sm:$0xff]  }
 0x454   :  { %5710 = vmatprep.subr.bf16.mxu0 %v7729_v10  ;;  %v7792_v10 = vld [vmem:[#allocation7 + $0xc6c] ss:$16 sps:$4 sm:$0xff]  }
 0x457   :  { %5711 = vmatpush1.bf16.msra.mxu0 %v7727_v2  ;;  %v7790_v2 = vld [vmem:[#allocation7 + $0xc68] ss:$16 sps:$4 sm:$0xff]  }
 0x458   :  { %5712 = vmatprep.subr.bf16.mxu0 %v7732_v23  ;;  %v7795_v23 = vld [vmem:[#allocation7 + $0xc8c] ss:$16 sps:$4 sm:$0xff]  }
 0x45b   :  { %5713 = vmatpush1.bf16.msra.mxu0 %v7730_v6  ;;  %v7793_v6 = vld [vmem:[#allocation7 + $0xc88] ss:$16 sps:$4 sm:$0xff]  }
 0x45c   :  { %5714 = vmatprep.subr.bf16.mxu0 %v7735_v4  ;;  %v7798_v4 = vld [vmem:[#allocation7 + $0xcac] ss:$16 sps:$4 sm:$0xff]  }
 0x45f   :  { %5715 = vmatpush1.bf16.msra.mxu0 %v7733_v48  ;;  %v7796_v48 = vld [vmem:[#allocation7 + $0xca8] ss:$16 sps:$4 sm:$0xff]  }
 0x460   :  { %5716 = vmatprep.subr.bf16.mxu0 %v7738_v52 }
 0x463   :  { %5717 = vmatpush1.bf16.msra.mxu0 %v7736_v54 }
 0x464   :  { %5718 = vmatprep.subr.bf16.mxu0 %v7741_v29 }
 0x467   :  { %5719 = vmatpush1.bf16.msra.mxu0 %v7739_v20 }
 0x468   :  { %5720 = vmatprep.subr.bf16.mxu0 %v7744_v33 }
 0x46b   :  { %5721 = vmatpush1.bf16.msra.mxu0 %v7742_v22 }
 0x46c   :  { %5722 = vmatprep.subr.bf16.mxu0 %v7747_v40 }
 0x46f   :  { %5723 = vmatpush1.bf16.msra.mxu0 %v7745_v35  ;;  %v7799_v35 = vld [vmem:[#allocation7 + $0xcc8] ss:$16 sps:$4 sm:$0xff]  }
 0x470   :  { %v3517_v30 = vpop.f32.mrb[44].mxu1  ;;  %5724 = vmatprep.subr.bf16.mxu0 %v7750_v31 }
 0x471   :  { %v3518_v21 = vadd.f32 %v3517_v30, %v8710_v0  ;;  %v3519_v58 = vpop.f32.mrb[45].mxu1  ;;  %v7802_v30 = vld [vmem:[#allocation7 + $0xce8] ss:$16 sps:$4 sm:$0xff]  }
 0x472   :  { %v3520_v14 = vadd.f32 %v3519_v58, %v8715_v13  ;;  %v3521_v39 = vpop.f32.mrb[46].mxu1  ;;  %v7811_v58 = vld [vmem:[#allocation7 + $0xd48] ss:$16 sps:$4 sm:$0xff]  }
 0x473   :  { %v3522_v46 = vadd.f32 %v3521_v39, %v8720_v15  ;;  %5725 = vmatpush1.bf16.msra.mxu0 %v7748_v28  ;;  %v3523_v45 = vpop.f32.mrb[47].mxu1  ;;  %v8765_v42 = vadd.f32 %v8727_v44, %v3518_v21  ;;  %v7754_v15 = vld [vmem:[#allocation7 + $0xde0] ss:$16 sps:$4 sm:$0xff]   ;;  %v5207_v44 = vrot.slane %v8609_v32, 4  ;;  %v7768_v32 = vld [vmem:[#allocation7 + $0xe64] ss:$16 sps:$4 sm:$0xff]  }
 0x474   :  { %v3524_v51 = vadd.f32 %v3523_v45, %v8725_v24  ;;  %5726 = vmatprep.subr.bf16.mxu0 %v7753_v36  ;;  %v8769_v55 = vadd.f32 %v8729_v57, %v3520_v14  ;;  %v5206_v24 = vrot.slane %v8585_v43, 4  ;;  %v7766_v43 = vld [vmem:[#allocation7 + $0xe60] ss:$16 sps:$4 sm:$0xff]   ;;  %v7804_v28 = vld [vmem:[#allocation7 + $0xcec] ss:$16 sps:$4 sm:$0xff]  }
 0x475   :  { %v8772_v0 = vadd.f32 %v8731_v8, %v3522_v46  ;;  %v7760_v8 = vld [vmem:[#allocation7 + $0xe20] ss:$16 sps:$4 sm:$0xff]   ;;  %v7805_v36 = vld [vmem:[#allocation7 + $0xd08] ss:$16 sps:$4 sm:$0xff]   ;;  %v7816_v14 = vld [vmem:[#allocation7 + $0xd6c] ss:$16 sps:$4 sm:$0xff]  }
 0x476   :  { %v8775_v13 = vadd.f32 %v8733_v50, %v3524_v51  ;;  %v8780_v57 = vsel %vm5205_vm3, %v5206_v24, %v5207_v44  ;;  %v7765_v50 = vld [vmem:[#allocation7 + $0xe44] ss:$16 sps:$4 sm:$0xff]   ;;  %v7808_v21 = vld [vmem:[#allocation7 + $0xd28] ss:$16 sps:$4 sm:$0xff]   ;;  %v7819_v39 = vld [vmem:[#allocation7 + $0xd8c] ss:$16 sps:$4 sm:$0xff]  }
 0x477   :  { %5727 = vmatpush1.bf16.msra.mxu0 %v7751_v26  ;;  %v7817_v46 = vld [vmem:[#allocation7 + $0xd88] ss:$16 sps:$4 sm:$0xff]   ;;  %v7822_v45 = vld [vmem:[#allocation7 + $0xdac] ss:$16 sps:$4 sm:$0xff]  }
 0x478   :  { %5728 = vmatprep.subr.bf16.mxu0 %v7756_v53  ;;  %v7820_v26 = vld [vmem:[#allocation7 + $0xda8] ss:$16 sps:$4 sm:$0xff]   ;;  %v7825_v51 = vld [vmem:[#allocation7 + $0xdcc] ss:$16 sps:$4 sm:$0xff]  }
 0x479   :  { %v7823_v53 = vld [vmem:[#allocation7 + $0xdc8] ss:$16 sps:$4 sm:$0xff]   ;;  %v7831_v44 = vld [vmem:[#allocation7 + $0xe0c] ss:$16 sps:$4 sm:$0xff]  }
 0x47a   :  { %v7829_v24 = vld [vmem:[#allocation7 + $0xe08] ss:$16 sps:$4 sm:$0xff]  }
 0x47b   :  { %5729 = vmatpush1.bf16.msra.mxu0 %v7754_v15  ;;  %v7828_v15 = vld [vmem:[#allocation7 + $0xdec] ss:$16 sps:$4 sm:$0xff]  }
 0x47c   :  { %5741 = vmatprep.subr.bf16.mxu0 %v7759_v59  ;;  %v7826_v59 = vld [vmem:[#allocation7 + $0xde8] ss:$16 sps:$4 sm:$0xff]  }
 0x47e   :  { %5731 = vmatmul.mubr.bf16.vlgmr.msra.gmra.mrb[32].mxu0 %v8780_v57 }
 0x47f   :  { %5742 = vmatpush1.bf16.msra.mxu0 %v7757_v61  ;;  %5773 = vmatprep.mubr.bf16.mxu0 %v8116_v1  ;;  %v7834_v61 = vld [vmem:[#allocation7 + $0xe2c] ss:$16 sps:$4 sm:$0xff]  }
 0x480   :  { %5743 = vmatprep.subr.bf16.mxu0 %v7762_v62  ;;  %v7832_v62 = vld [vmem:[#allocation7 + $0xe28] ss:$16 sps:$4 sm:$0xff]  }
 0x483   :  { %5744 = vmatpush1.bf16.msra.mxu0 %v7760_v8  ;;  %v7837_v8 = vld [vmem:[#allocation7 + $0xe4c] ss:$16 sps:$4 sm:$0xff]  }
 0x484   :  { %5745 = vmatprep.subr.bf16.mxu0 %v7765_v50  ;;  %v7835_v50 = vld [vmem:[#allocation7 + $0xe48] ss:$16 sps:$4 sm:$0xff]  }
 0x487   :  { %5746 = vmatpush1.bf16.msra.mxu0 %v7763_v56  ;;  %v7840_v56 = vld [vmem:[#allocation7 + $0xe6c] ss:$16 sps:$4 sm:$0xff]  }
 0x488   :  { %5747 = vmatprep.subr.bf16.mxu0 %v7768_v32  ;;  %v7838_v32 = vld [vmem:[#allocation7 + $0xe68] ss:$16 sps:$4 sm:$0xff]  }
 0x48b   :  { %5748 = vmatpush1.bf16.msra.mxu0 %v7766_v43  ;;  %v7843_v43 = vld [vmem:[#allocation7 + $0xe8c] ss:$16 sps:$4 sm:$0xff]  }
 0x48c   :  { %5749 = vmatprep.subr.bf16.mxu0 %v7771_v5  ;;  %v7841_v5 = vld [vmem:[#allocation7 + $0xe88] ss:$16 sps:$4 sm:$0xff]  }
 0x48f   :  { %5750 = vmatpush1.bf16.msra.mxu0 %v7769_v12  ;;  %v7846_v12 = vld [vmem:[#allocation7 + $0xeac] ss:$16 sps:$4 sm:$0xff]  }
 0x490   :  { %5751 = vmatprep.subr.bf16.mxu0 %v7774_v9 }
 0x493   :  { %5752 = vmatpush1.bf16.msra.mxu0 %v7772_v60  ;;  %v7849_v60 = vld [vmem:[#allocation7 + $0xecc] ss:$16 sps:$4 sm:$0xff]  }
 0x494   :  { %5753 = vmatprep.subr.bf16.mxu0 %v7777_v19 }
 0x497   :  { %5754 = vmatpush1.bf16.msra.mxu0 %v7775_v27 }
 0x498   :  { %5755 = vmatprep.subr.bf16.mxu0 %v7780_v34 }
 0x49b   :  { %5756 = vmatpush1.bf16.msra.mxu0 %v7778_v17 }
 0x49c   :  { %5784 = vmatprep.subr.bf16.mxu0 %v7783_v16 }
 0x49e   :  { %5774 = vmatmul.mubr.bf16.vlgmr.msra.gmra.mrb[32].mxu0 %v8639_v7 }
 0x49f   :  { %5785 = vmatpush1.bf16.msra.mxu0 %v7781_v3  ;;  %5816 = vmatprep.mubr.bf16.mxu0 %v8758_v18  ;;  %v7801_v18 = vld [vmem:[#allocation7 + $0xccc] ss:$16 sps:$4 sm:$0xff]   ;;  %v7847_v3 = vld [vmem:[#allocation7 + $0xec8] ss:$16 sps:$4 sm:$0xff]  }
 0x4a0   :  { %5786 = vmatprep.subr.bf16.mxu0 %v7786_v49 }
 0x4a3   :  { %5787 = vmatpush1.bf16.msra.mxu0 %v7784_v11  ;;  %v7852_v11 = vld [vmem:[#allocation7 + $0xeec] ss:$16 sps:$4 sm:$0xff]  }
 0x4a4   :  { %5788 = vmatprep.subr.bf16.mxu0 %v7789_v37  ;;  %v7850_v37 = vld [vmem:[#allocation7 + $0xee8] ss:$16 sps:$4 sm:$0xff]  }
 0x4a7   :  { %5789 = vmatpush1.bf16.msra.mxu0 %v7787_v25 }
 0x4a8   :  { %5790 = vmatprep.subr.bf16.mxu0 %v7792_v10 }
 0x4ab   :  { %5791 = vmatpush1.bf16.msra.mxu0 %v7790_v2 }
 0x4ac   :  { %5792 = vmatprep.subr.bf16.mxu0 %v7795_v23 }
 0x4af   :  { %5793 = vmatpush1.bf16.msra.mxu0 %v7793_v6  ;;  %v5923_v6 = vld [vmem:[%s8841_s5] sm:$0xff] }
 0x4b0   :  { %v4192_v52 = vpop.f32.mrb[48].mxu1  ;;  %5794 = vmatprep.subr.bf16.mxu0 %v7798_v4 }
 0x4b1   :  { %v8787_v54 = vadd.f32 %v4192_v52, %v8742_v63  ;;  %v4194_v29 = vpop.f32.mrb[49].mxu1  ;;  %v7807_v63 = vld [vmem:[#allocation7 + $0xd0c] ss:$16 sps:$4 sm:$0xff]   ;;  %v8117_v52 = vmov 0.0|0.0  }
 0x4b2   :  { %v8790_v20 = vadd.f32 %v4194_v29, %v8746_v38  ;;  %v4196_v33 = vpop.f32.mrb[50].mxu1  ;;  %v7810_v38 = vld [vmem:[#allocation7 + $0xd2c] ss:$16 sps:$4 sm:$0xff]   ;;  %6714 = vmatprep.subr.bf16.mxu1 %v8117_v52 }
 0x4b3   :  { %v8793_v22 = vadd.f32 %v4196_v33, %v8749_v41  ;;  %5795 = vmatpush1.bf16.msra.mxu0 %v7796_v48  ;;  %v4198_v40 = vpop.f32.mrb[51].mxu1  ;;  %v7813_v41 = vld [vmem:[#allocation7 + $0xd4c] ss:$16 sps:$4 sm:$0xff]  }
 0x4b4   :  { %v8796_v31 = vadd.f32 %v4198_v40, %v8752_v47  ;;  %5796 = vmatprep.subr.bf16.mxu0 %v7801_v18  ;;  %v7814_v47 = vld [vmem:[#allocation7 + $0xd68] ss:$16 sps:$4 sm:$0xff]  }
 0x4b5   :  { %v5925_v33 = vld [vmem:[%s8841_s5 + $0x10] sm:$0xff] }
 0x4b7   :  { %5797 = vmatpush1.bf16.msra.mxu0 %v7799_v35 }
 0x4b8   :  { %5798 = vmatprep.subr.bf16.mxu0 %v7804_v28 }
 0x4bb   :  { %5799 = vmatpush1.bf16.msra.mxu0 %v7802_v30 }
 0x4bc   :  { %5800 = vmatprep.subr.bf16.mxu0 %v7807_v63 }
 0x4bf   :  { %5801 = vmatpush1.bf16.msra.mxu0 %v7805_v36 }
 0x4c0   :  { %5802 = vmatprep.subr.bf16.mxu0 %v7810_v38 }
 0x4c3   :  { %5803 = vmatpush1.bf16.msra.mxu0 %v7808_v21 }
 0x4c4   :  { %5804 = vmatprep.subr.bf16.mxu0 %v7813_v41  ;;  %v5927_v41 = vld [vmem:[%s8841_s5 + $0x20] sm:$0xff] }
 0x4c7   :  { %5805 = vmatpush1.bf16.msra.mxu0 %v7811_v58  ;;  %v5928_v58 = vld [vmem:[%s8841_s5 + $0x28] sm:$0xff] }
 0x4c8   :  { %5806 = vmatprep.subr.bf16.mxu0 %v7816_v14  ;;  %v6721_v14 = vpack.c.bf16 %v5928_v58, %v5927_v41 }
 0x4cb   :  { %5807 = vmatpush1.bf16.msra.mxu0 %v7814_v47 }
 0x4cc   :  { %5808 = vmatprep.subr.bf16.mxu0 %v7819_v39  ;;  %v5929_v39 = vld [vmem:[%s8841_s5 + $0x30] sm:$0xff] }
 0x4cf   :  { %5809 = vmatpush1.bf16.msra.mxu0 %v7817_v46  ;;  %v5930_v46 = vld [vmem:[%s8841_s5 + $0x38] sm:$0xff] }
 0x4d0   :  { %5810 = vmatprep.subr.bf16.mxu0 %v7822_v45  ;;  %v6724_v45 = vpack.c.bf16 %v5930_v46, %v5929_v39 }
 0x4d3   :  { %5811 = vmatpush1.bf16.msra.mxu0 %v7820_v26  ;;  %v8120_v26 = vmov 0.0  }
 0x4d4   :  { %5812 = vmatprep.subr.bf16.mxu0 %v7825_v51  ;;  %6711 = vmatprep.mubr.msk.f32.mxu1 %vm8119_vm4, %v8120_v26 }
 0x4d7   :  { %5813 = vmatpush1.bf16.msra.mxu0 %v7823_v53 }
 0x4d8   :  { %5814 = vmatprep.subr.bf16.mxu0 %v7828_v15 }
 0x4db   :  { %5815 = vmatpush1.bf16.msra.mxu0 %v7826_v59 }
 0x4dc   :  { %5827 = vmatprep.subr.bf16.mxu0 %v7831_v44 }
 0x4de   :  { %5817 = vmatmul.mubr.bf16.vlgmr.msra.gmra.mrb[36].mxu0 %v8780_v57  ;;  %v7844_v57 = vld [vmem:[#allocation7 + $0xea8] ss:$16 sps:$4 sm:$0xff]  }
 0x4df   :  { %5828 = vmatpush1.bf16.msra.mxu0 %v7829_v24  ;;  %5859 = vmatprep.mubr.bf16.mxu0 %v8116_v1 }
 0x4e0   :  { %5829 = vmatprep.subr.bf16.mxu0 %v7834_v61 }
 0x4e3   :  { %5830 = vmatpush1.bf16.msra.mxu0 %v7832_v62 }
 0x4e4   :  { %5831 = vmatprep.subr.bf16.mxu0 %v7837_v8 }
 0x4e7   :  { %5832 = vmatpush1.bf16.msra.mxu0 %v7835_v50 }
 0x4e8   :  { %5833 = vmatprep.subr.bf16.mxu0 %v7840_v56 }
 0x4eb   :  { %5834 = vmatpush1.bf16.msra.mxu0 %v7838_v32 }
 0x4ec   :  { %5835 = vmatprep.subr.bf16.mxu0 %v7843_v43 }
 0x4ef   :  { %5836 = vmatpush1.bf16.msra.mxu0 %v7841_v5 }
 0x4f0   :  { %v4278_v9 = vpop.f32.mrb[52].mxu1  ;;  %5837 = vmatprep.subr.bf16.mxu0 %v7846_v12 }
 0x4f1   :  { %v6749_v1 = vadd.f32 %v4278_v9, %v8765_v42  ;;  %v4280_v19 = vpop.f32.mrb[53].mxu1  ;;  %v6681_v9 = vld [vmem:[#allocation8] ss:$0 sm:$0xff] }
 0x4f2   :  { %v6754_v27 = vadd.f32 %v4280_v19, %v8769_v55  ;;  %v4282_v34 = vpop.f32.mrb[54].mxu1  ;;  %v6682_v19 = vld [vmem:[#allocation10] ss:$0 sm:$0xff] }
 0x4f3   :  { %v6759_v17 = vadd.f32 %v4282_v34, %v8772_v0  ;;  %5838 = vmatpush1.bf16.msra.mxu0 %v7844_v57  ;;  %v4284_v16 = vpop.f32.mrb[55].mxu1 }
 0x4f4   :  { %v6764_v49 = vadd.f32 %v4284_v16, %v8775_v13  ;;  %5839 = vmatprep.subr.bf16.mxu0 %v7849_v60  ;;  %v6684_v16 = vld [vmem:[#allocation11] ss:$0 sm:$0xff] }
 0x4f7   :  { %5840 = vmatpush1.bf16.msra.mxu0 %v7847_v3 }
 0x4f8   :  { %5841 = vmatprep.subr.bf16.mxu0 %v7852_v11 }
 0x4fb   :  { %5842 = vmatpush1.bf16.msra.mxu0 %v7850_v37  ;;  %v6685_v37 = vld [vmem:[#allocation2] ss:$0 sm:$0xff] }
 0x4fe   :  { %5860 = vmatmul.mubr.bf16.vlgmr.msra.gmra.mrb[36].mxu0 %v8639_v7  ;;  %v5924_v7 = vld [vmem:[%s8841_s5 + $0x8] sm:$0xff] }
 0x4ff   :  { %v6715_v4 = vpack.c.bf16 %v5924_v7, %v5923_v6 }
 0x501   :  { %6716 = vmatpush3.bf16.msra.mxu1 %v6715_v4 }
 0x502   :  { %6717 = vmatprep.subr.bf16.mxu1 %v8117_v52 }
 0x571   :  { %v5775_v42 = vpop.f32.mrb[32].mxu0 }
 0x572   :  { %v6730_v25 = vadd.f32 %v8787_v54, %v5775_v42  ;;  %v5777_v55 = vpop.f32.mrb[33].mxu0 }
 0x573   :  { %v6735_v10 = vadd.f32 %v8790_v20, %v5777_v55  ;;  %v5779_v0 = vpop.f32.mrb[34].mxu0 }
 0x574   :  { %v6740_v2 = vadd.f32 %v8793_v22, %v5779_v0  ;;  %v5781_v23 = vpop.f32.mrb[35].mxu0  ;;  %v5926_v22 = vld [vmem:[%s8841_s5 + $0x18] sm:$0xff] }
 0x575   :  { %v6745_v13 = vadd.f32 %v8796_v31, %v5781_v23  ;;  %v6718_v28 = vpack.c.bf16 %v5926_v22, %v5925_v33 }
 0x577   :  { %6719 = vmatpush3.bf16.msra.mxu1 %v6718_v28 }
 0x578   :  { %6720 = vmatprep.subr.bf16.mxu1 %v8117_v52 }
 0x57b   :  { %6722 = vmatpush3.bf16.msra.mxu1 %v6721_v14 }
 0x57c   :  { %6723 = vmatprep.subr.bf16.mxu1 %v8117_v52 }
 0x57f   :  { %6725 = vmatpush3.bf16.msra.mxu1 %v6724_v45 }
 0x5d1   :  { %v5861_v48 = vpop.f32.mrb[36].mxu0 }
 0x5d2   :  { %v6750_v18 = vadd.f32 %v6749_v1, %v5861_v48  ;;  %v5863_v54 = vpop.f32.mrb[37].mxu0 }
 0x5d3   :  { %v6755_v29 = vadd.f32 %v6754_v27, %v5863_v54  ;;  %v5865_v20 = vpop.f32.mrb[38].mxu0 }
 0x5d4   :  { %v5878_v40 = vmax.f32 %v6730_v25, %v6750_v18  ;;  %v6760_v35 = vadd.f32 %v6759_v17, %v5865_v20  ;;  %v5867_v31 = vpop.f32.mrb[39].mxu0 }
 0x5d5   :  { %v5879_v30 = vmax.f32 %v6735_v10, %v6755_v29  ;;  %v6765_v63 = vadd.f32 %v6764_v49, %v5867_v31 }
 0x5d6   :  { %v5880_v36 = vmax.f32 %v6740_v2, %v6760_v35 }
 0x5d7   :  { %v5881_v38 = vmax.f32 %v6745_v13, %v6765_v63  ;;  %v5882_v21 = vmax.f32 %v5878_v40, %v5879_v30 }
 0x5d9   :  { %5886 = vrot.lane.b32.xlu0 %v5882_v21, %s8118_s22  ;;  %v5883_v47 = vmax.f32 %v5880_v36, %v5881_v38 }
 0x5dd   :  { %5888 = vrot.lane.b32.xlu0 %v5883_v47, %s8118_s22 }
 0x64b   :  { %v5887_v51 = vpop.permute.xlu0 %5886 }
 0x64c   :  { %v5892_v53 = vmax.f32 %v5882_v21, %v5887_v51 }
 0x64e   :  { %v5895_v15 = vrot.slane %v5892_v53, 2  ;;  %v5898_v24 = vrot.slane %v5892_v53, 4  ;;  %v5901_v62 = vrot.slane %v5892_v53, 6 }
 0x64f   :  { %v5889_v59 = vpop.permute.xlu0 %5888 }
 0x650   :  { %v5897_v44 = vmax.f32 %v5892_v53, %v5895_v15  ;;  %v5893_v8 = vmax.f32 %v5883_v47, %v5889_v59 }
 0x652   :  { %v5900_v61 = vmax.f32 %v5897_v44, %v5898_v24  ;;  %v5906_v32 = vrot.slane %v5893_v8, 2  ;;  %v5909_v5 = vrot.slane %v5893_v8, 4  ;;  %v5912_v57 = vrot.slane %v5893_v8, 6 }
 0x654   :  { %v5903_v50 = vmax.f32 %v5900_v61, %v5901_v62 }
 0x656   :  { %v5904_v56 = vmax.f32 %v5903_v50, %v5893_v8 }
 0x658   :  { %v5908_v43 = vmax.f32 %v5904_v56, %v5906_v32 }
 0x65a   :  { %v5911_v12 = vmax.f32 %v5908_v43, %v5909_v5 }
 0x65c   :  { %v5914_v60 = vmax.f32 %v5911_v12, %v5912_v57 }
 0x65e   :  { %v5922_v1 = vadd.f32 %v6681_v9, %v5914_v60 }
 0x660   :  { %6712 = vmatmul.mubr.msk.f32.vlgmr.msra.gmra.mrb[56].mxu1 %vm5938_vm5, %v5922_v1 }
 0x733   :  { %v6008_v27 = vpop.f32.mrb[56].mxu1 }
 0x734   :  { %v6009_v34 = vadd.f32 %v6682_v19, %v6008_v27  ;;  %v6713_v17 = vpop.f32.mrb[57].mxu1 }
 0x736   :  { %v6012_v3 = vmax.f32 %v6009_v34, 0.0 }
 0x738   :  { %v6020_v49 = vmul.f32 %v6684_v16, %v6012_v3 }
 0x73a   :  { %v6022_v11 = vsel %vm6021_vm6, %v6020_v49, 0.0 }
 0x73b   :  { %6023 = vadd.xlane.f32.xlu1 %v6022_v11 }
 0x7c8   :  { %v6024_v42 = vpop.xlane.xlu1 %6023 }
 0x7c9   :  { %v6032_v25 = vadd.f32 %v6685_v37, %v6024_v42 }
 0x7cb   :  { %v6033_v55 = vsub.f32 0.0, %v6032_v25 }
 0x7cd   :  { %v6034_v10 = vmul.f32 1.442695, %v6033_v55 }
 0x7cf   :  { %7853 = vpow2.f32 %v6034_v10 }
 0x7d9   :  { %v7854_v0 = vpop.eup %7853 }
 0x7da   :  { %v6036_v2 = vadd.f32 1.0, %v7854_v0 }
 0x7dc   :  { %7855 = vrcp.f32 %v6036_v2 }
 0x7e6   :  { %v7856_v23 = vpop.eup %7855 }
 0x7e7   :  { %6040 = vst.msk [vmem:[%s8845_s9] sm:$0x3] %vm6039_vm7, %v7856_v23 }
 0x7e8   :  { %6045 = vsyncpa [#allocation4], 1 }
 0x7e9   :  { %6046 = vsyncpa [#allocation6], 1 }
 0x7ea   :  { %6047 = vsyncpa [#allocation9], 1 }
 0x7eb   :  { %6048 = vsyncpa [#allocation12], 1 }

</bundles_post_ra>
